<compile_context>
chip_gen: v6e
topology: v6e:2x2x1
jax: 0.10.0
libtpu: 0.0.40
codegen_flags: <defaults>
</compile_context>

<pallas_src>
import functools
import math

import jax
import jax.numpy as jnp
from jax.experimental import pallas as pl
from jax.experimental.pallas import tpu as pltpu


_VMEM_LIMIT = 56 * 1024 * 1024  # stays under v7x's 64 MiB physical VMEM


def _row_tile(n, target):
    """Largest tile <= target that divides n and is a multiple of 8, else n."""
    if n <= target:
        return n
    for t in range(target - (target % 8), 7, -8):
        if n % t == 0:
            return t
    return n


# ----------------------------- Pallas kernels -----------------------------

def _adaln_mod_kernel(c_ref, w_ref, o_ref):
    # mod = 1 + cond_norm @ ada   (tiny [B, tw] @ [tw, C], single block)
    o_ref[...] = 1.0 + jnp.dot(c_ref[...].astype(jnp.bfloat16), w_ref[...],
                               preferred_element_type=jnp.float32)


def adaln_mod(cond_norm, w):
    B, _ = cond_norm.shape
    N = w.shape[1]
    return pl.pallas_call(
        _adaln_mod_kernel,
        out_shape=jax.ShapeDtypeStruct((B, N), jnp.float32),
    )(cond_norm, w)


def _matmul_kernel(x_ref, w_ref, o_ref):
    o_ref[...] = jnp.dot(x_ref[...], w_ref[...],
                         preferred_element_type=jnp.float32).astype(o_ref.dtype)


def matmul_2d(x, w, out_dtype=jnp.bfloat16, tm_target=512):
    """[M, K] @ [K, N]; resident weight, rows tiled."""
    M, K = x.shape
    N = w.shape[1]
    tm = _row_tile(M, tm_target)
    return pl.pallas_call(
        _matmul_kernel,
        out_shape=jax.ShapeDtypeStruct((M, N), out_dtype),
        grid=(M // tm,),
        in_specs=[pl.BlockSpec((tm, K), lambda i: (i, 0)),
                  pl.BlockSpec((K, N), lambda i: (0, 0))],   # weight resident
        out_specs=pl.BlockSpec((tm, N), lambda i: (i, 0)),
        compiler_params=pltpu.CompilerParams(
            dimension_semantics=("parallel",),
            vmem_limit_bytes=_VMEM_LIMIT),
    )(x, w)


def _norm_matmul_kernel(x_ref, m_ref, w_ref, o_ref):
    # AdaRMSNorm prologue (f32) + bf16 matmul with f32 accumulation.
    x = x_ref[0].astype(jnp.float32)                       # [tm, C]
    ms = jnp.mean(x * x, axis=-1, keepdims=True)
    xn = x * jax.lax.rsqrt(ms + 1e-6) * m_ref[0]           # mod broadcast [1, C]
    o_ref[0] = jnp.dot(xn.astype(jnp.bfloat16), w_ref[...],
                       preferred_element_type=jnp.float32).astype(o_ref.dtype)


def norm_matmul(x, mod, w, tm_target=256):
    B, T, C = x.shape
    N = w.shape[1]
    tm = _row_tile(T, tm_target)
    mod3 = mod.reshape(B, 1, C)
    return pl.pallas_call(
        _norm_matmul_kernel,
        out_shape=jax.ShapeDtypeStruct((B, T, N), jnp.bfloat16),
        grid=(B, T // tm),
        in_specs=[pl.BlockSpec((1, tm, C), lambda b, i: (b, i, 0)),
                  pl.BlockSpec((1, 1, C), lambda b, i: (b, 0, 0)),
                  pl.BlockSpec((C, N), lambda b, i: (0, 0))],
        out_specs=pl.BlockSpec((1, tm, N), lambda b, i: (b, i, 0)),
        compiler_params=pltpu.CompilerParams(
            dimension_semantics=("parallel", "parallel"),
            vmem_limit_bytes=_VMEM_LIMIT),
    )(x, mod3, w)


def _norm_matmul_geglu_kernel(x_ref, m_ref, w_ref, o_ref, *, d_ff):
    x = x_ref[0].astype(jnp.float32)
    ms = jnp.mean(x * x, axis=-1, keepdims=True)
    xn = (x * jax.lax.rsqrt(ms + 1e-6) * m_ref[0]).astype(jnp.bfloat16)
    u = jnp.dot(xn, w_ref[...], preferred_element_type=jnp.float32)  # [tm, 2*d_ff]
    a = u[:, :d_ff]
    g = u[:, d_ff:]
    gelu_g = 0.5 * g * (1.0 + jnp.tanh(0.7978845608028654 *
                                       (g + 0.044715 * g * g * g)))
    o_ref[0] = (a * gelu_g).astype(o_ref.dtype)


def norm_matmul_geglu(x, mod, w, d_ff, tm_target=256):
    B, T, C = x.shape
    tm = _row_tile(T, tm_target)
    mod3 = mod.reshape(B, 1, C)
    kern = functools.partial(_norm_matmul_geglu_kernel, d_ff=d_ff)
    return pl.pallas_call(
        kern,
        out_shape=jax.ShapeDtypeStruct((B, T, d_ff), jnp.bfloat16),
        grid=(B, T // tm),
        in_specs=[pl.BlockSpec((1, tm, C), lambda b, i: (b, i, 0)),
                  pl.BlockSpec((1, 1, C), lambda b, i: (b, 0, 0)),
                  pl.BlockSpec((C, 2 * d_ff), lambda b, i: (0, 0))],
        out_specs=pl.BlockSpec((1, tm, d_ff), lambda b, i: (b, i, 0)),
        compiler_params=pltpu.CompilerParams(
            dimension_semantics=("parallel", "parallel"),
            vmem_limit_bytes=_VMEM_LIMIT),
    )(x, mod3, w)


def _matmul_residual_kernel(h_ref, w_ref, r_ref, o_ref):
    acc = jnp.dot(h_ref[0], w_ref[...], preferred_element_type=jnp.float32)
    o_ref[0] = (acc + r_ref[0].astype(jnp.float32)).astype(o_ref.dtype)


def matmul_residual(h, w, res, tm_target=256):
    B, T, K = h.shape
    N = w.shape[1]
    tm = _row_tile(T, tm_target)
    return pl.pallas_call(
        _matmul_residual_kernel,
        out_shape=jax.ShapeDtypeStruct((B, T, N), jnp.bfloat16),
        grid=(B, T // tm),
        in_specs=[pl.BlockSpec((1, tm, K), lambda b, i: (b, i, 0)),
                  pl.BlockSpec((K, N), lambda b, i: (0, 0)),
                  pl.BlockSpec((1, tm, N), lambda b, i: (b, i, 0))],
        out_specs=pl.BlockSpec((1, tm, N), lambda b, i: (b, i, 0)),
        compiler_params=pltpu.CompilerParams(
            dimension_semantics=("parallel", "parallel"),
            vmem_limit_bytes=_VMEM_LIMIT),
    )(h, w, res)


def _flash_kernel(q_ref, k_ref, v_ref, o_ref, m_sc, l_sc, acc_sc):
    kv = pl.program_id(2)

    @pl.when(kv == 0)
    def _():
        m_sc[...] = jnp.full_like(m_sc, -1e30)
        l_sc[...] = jnp.zeros_like(l_sc)
        acc_sc[...] = jnp.zeros_like(acc_sc)

    q = q_ref[0]                                   # [tq, Dh] bf16 (scale folded)
    k = k_ref[0]                                   # [tk, Dh] bf16
    v = v_ref[0]                                   # [tk, Dh] bf16
    s = jax.lax.dot_general(q, k, (((1,), (1,)), ((), ())),
                            preferred_element_type=jnp.float32)  # [tq, tk]
    m_prev = m_sc[...]
    m_new = jnp.maximum(m_prev, jnp.max(s, axis=-1, keepdims=True))
    alpha = jnp.exp(m_prev - m_new)
    p = jnp.exp(s - m_new)
    l_sc[...] = alpha * l_sc[...] + jnp.sum(p, axis=-1, keepdims=True)
    acc_sc[...] = alpha * acc_sc[...] + jnp.dot(p.astype(v.dtype), v,
                                                preferred_element_type=jnp.float32)
    m_sc[...] = m_new

    @pl.when(kv == pl.num_programs(2) - 1)
    def _():
        o_ref[0] = (acc_sc[...] * pl.reciprocal(l_sc[...], approx=True)
                    ).astype(o_ref.dtype)


def flash_attention(q, k, v, tq_target=256, tk_target=256):
    """q, k, v: [BH, T, Dh] (scale already folded into q). Online softmax."""
    BH, T, Dh = q.shape
    tq = _row_tile(T, tq_target)
    tk = _row_tile(T, tk_target)
    q_spec = pl.BlockSpec((1, tq, Dh), lambda b, i, j: (b, i, 0))
    kv_spec = pl.BlockSpec((1, tk, Dh), lambda b, i, j: (b, j, 0))
    # TODO(synk): for the production config (d_head=72) zero-pad Dh to 128 for
    # lane-dense MXU tiles; the demo d_head already maps to a full-dim block.
    return pl.pallas_call(
        _flash_kernel,
        out_shape=jax.ShapeDtypeStruct((BH, T, Dh), jnp.bfloat16),
        grid=(BH, T // tq, T // tk),
        in_specs=[q_spec, kv_spec, kv_spec],
        out_specs=q_spec,
        scratch_shapes=[pltpu.VMEM((tq, 1), jnp.float32),
                        pltpu.VMEM((tq, 1), jnp.float32),
                        pltpu.VMEM((tq, Dh), jnp.float32)],
        compiler_params=pltpu.CompilerParams(
            dimension_semantics=("parallel", "parallel", "arbitrary"),
            vmem_limit_bytes=_VMEM_LIMIT),
    )(q, k, v)


# ----------------------------- model pieces -----------------------------

def rope_cos_sin(pos, d_head):
    """Axial RoPE angles from 2-D positions: pos [B,T,2] -> cos/sin [B,T,d_head//2]."""
    d_rot = d_head // 2
    n_per_axis = d_rot // 2
    freqs = jnp.exp(jnp.linspace(0.0, math.log(50.0), n_per_axis)
                    ).astype(jnp.float32)
    theta_y = pos[..., 0:1] * freqs
    theta_x = pos[..., 1:2] * freqs
    theta = jnp.concatenate([theta_y, theta_x], axis=-1)      # [B, T, d_rot]
    return jnp.cos(theta), jnp.sin(theta)


def apply_rope(x, cos, sin):
    """x: [B, H, T, Dh] (f32); rotates the first 2*d_rot channels."""
    d_rot = cos.shape[-1]
    x1 = x[..., :d_rot]
    x2 = x[..., d_rot:2 * d_rot]
    c = cos[:, None]
    s = sin[:, None]
    y1 = x1 * c - x2 * s
    y2 = x1 * s + x2 * c
    if 2 * d_rot == x.shape[-1]:
        return jnp.concatenate([y1, y2], axis=-1)
    return jnp.concatenate([y1, y2, x[..., 2 * d_rot:]], axis=-1)


def transformer_layer(x, cos, sin, cond_norm, p, n_heads, d_head, d_ff):
    B, T, C = x.shape

    # --- self-attention block (AdaRMSNorm fused into qkv projection) ---
    mod = adaln_mod(cond_norm, p["attn_ada"])                 # [B, C] f32
    qkv = norm_matmul(x, mod, p["w_qkv"])                     # [B, T, 3C] bf16
    qkv = qkv.reshape(B, T, 3, n_heads, d_head)
    q = jnp.transpose(qkv[:, :, 0], (0, 2, 1, 3)).astype(jnp.float32)
    k = jnp.transpose(qkv[:, :, 1], (0, 2, 1, 3)).astype(jnp.float32)
    v = jnp.transpose(qkv[:, :, 2], (0, 2, 1, 3))             # bf16
    q = apply_rope(q, cos, sin) * (1.0 / math.sqrt(d_head))   # fold scale into q
    k = apply_rope(k, cos, sin)
    q = q.astype(jnp.bfloat16).reshape(B * n_heads, T, d_head)
    k = k.astype(jnp.bfloat16).reshape(B * n_heads, T, d_head)
    v = v.reshape(B * n_heads, T, d_head)

    o = flash_attention(q, k, v)                              # [BH, T, Dh] bf16
    o = jnp.transpose(o.reshape(B, n_heads, T, d_head),
                      (0, 2, 1, 3)).reshape(B, T, C)
    x = matmul_residual(o, p["w_out"], x)                     # residual fused

    # --- feed-forward block (AdaRMSNorm + GEGLU fused into up matmul) ---
    mod = adaln_mod(cond_norm, p["ff_ada"])
    h = norm_matmul_geglu(x, mod, p["w_up"], d_ff)            # [B, T, d_ff] bf16
    x = matmul_residual(h, p["w_down"], x)                    # residual fused
    return x


def init_params(key, *, width, depth, d_head, timestep_width,
                in_channels=4, out_channels=4, d_ff=None):
    d_ff = d_ff or 2 * width

    def w(k, shape, scale):
        return (jax.random.normal(k, shape, jnp.float32) * scale
                ).astype(jnp.bfloat16)

    params = {
        "merge_w": w(jax.random.fold_in(key, 1),
                     (4 * in_channels, width), 1.0 / math.sqrt(4 * in_channels)),
        "split_w": w(jax.random.fold_in(key, 2),
                     (width, 4 * out_channels), 1.0 / math.sqrt(width)),
        "layers": [],
    }
    for i in range(depth):
        lk = jax.random.fold_in(key, 100 + i)
        params["layers"].append({
            "attn_ada": w(jax.random.fold_in(lk, 0), (timestep_width, width), 0.02),
            "w_qkv":    w(jax.random.fold_in(lk, 1), (width, 3 * width),
                          1.0 / math.sqrt(width)),
            "w_out":    w(jax.random.fold_in(lk, 2), (width, width), 0.02),
            "ff_ada":   w(jax.random.fold_in(lk, 3), (timestep_width, width), 0.02),
            "w_up":     w(jax.random.fold_in(lk, 4), (width, 2 * d_ff),
                          1.0 / math.sqrt(width)),
            "w_down":   w(jax.random.fold_in(lk, 5), (d_ff, width), 0.02),
        })
    return params


def make_forward(*, width, depth, d_head, d_ff, out_channels=4):
    n_heads = width // d_head

    @jax.jit
    def forward(x, pos, cond_norm, params):
        # x: [B, C, H, W], pos: [B, C_pos, H, W] (NCHW like PyTorch)
        B, C, H, W = x.shape
        x = jnp.transpose(x, (0, 2, 3, 1))        # b c h w -> b h w c
        pos = jnp.transpose(pos, (0, 2, 3, 1))    # b cn h w -> b h w cn
        C_pos = pos.shape[-1]

        # --- TokenMerge2D: 2x2 patchify + linear (resident-weight matmul) ---
        Hh, Wh = H // 2, W // 2
        xm = x.reshape(B, Hh, 2, Wh, 2, C)
        xm = jnp.transpose(xm, (0, 1, 3, 2, 4, 5)).reshape(B * Hh * Wh, 4 * C)
        xm = matmul_2d(xm.astype(jnp.bfloat16), params["merge_w"])  # bf16

        # downscale_pos: average positions within each 2x2 patch
        pos_d = pos.reshape(B, Hh, 2, Wh, 2, C_pos).mean(axis=(2, 4))

        T = Hh * Wh
        xt = xm.reshape(B, T, width)
        pos_t = pos_d.reshape(B, T, C_pos)
        cos, sin = rope_cos_sin(pos_t, d_head)

        # --- mid_level: stack of TransformerLayers ---
        for lp in params["layers"]:
            xt = transformer_layer(xt, cos, sin, cond_norm, lp,
                                   n_heads, d_head, d_ff)

        # --- TokenSplitLast2D: linear + 2x2 un-patchify ---
        y = matmul_2d(xt.reshape(B * T, width), params["split_w"],
                      out_dtype=jnp.float32)
        y = y.reshape(B, Hh, Wh, 2, 2, out_channels)
        y = jnp.transpose(y, (0, 1, 3, 2, 4, 5)).reshape(B, H, W, out_channels)
        y = jnp.transpose(y, (0, 3, 1, 2))        # b h w c -> b c h w
        return y

    return forward


# ----------------------------- demo / entry -----------------------------

if __name__ == "__main__":
    # Module defaults are width=1152, depth=28, d_head=72; a reduced config is
    # used here so the demo compiles/runs quickly.  Structure is identical.
    WIDTH, DEPTH, D_HEAD = 128, 2, 32
    D_FF = 2 * WIDTH
    TIMESTEP_WIDTH = 128
    B, C_IN, H, W = 2, 4, 16, 16

    key = jax.random.PRNGKey(0)
    kx, kc, kp = jax.random.split(key, 3)

    x = jax.random.normal(kx, (B, C_IN, H, W), jnp.float32)
    ys, xs = jnp.meshgrid(jnp.linspace(-1.0, 1.0, H),
                          jnp.linspace(-1.0, 1.0, W), indexing="ij")
    pos = jnp.broadcast_to(jnp.stack([ys, xs])[None],
                           (B, 2, H, W)).astype(jnp.float32)
    cond_norm = jax.random.normal(kc, (B, TIMESTEP_WIDTH), jnp.float32)

    params = init_params(kp, width=WIDTH, depth=DEPTH, d_head=D_HEAD,
                         timestep_width=TIMESTEP_WIDTH, d_ff=D_FF)

    forward = make_forward(width=WIDTH, depth=DEPTH, d_head=D_HEAD, d_ff=D_FF)
    out = forward(x, pos, cond_norm, params)
    jax.block_until_ready(out)

    assert out.shape == (B, 4, H, W), out.shape
    assert jnp.all(jnp.isfinite(out))
    print("KERNEL_OK")
</pallas_src>

<mosaic_0001>
module attributes {stable_mosaic.version = 11 : i64} {
  func.func @_matmul_kernel(%arg0: i32, %arg1: memref<128x16xbf16, #tpu.memory_space<vmem>>, %arg2: memref<16x128xbf16, #tpu.memory_space<vmem>>, %arg3: memref<128x128xbf16, #tpu.memory_space<vmem>>) attributes {dimension_semantics = [#tpu.dimension_semantics<parallel>], iteration_bounds = array<i64: 1>, scalar_prefetch = 0 : i64, scratch_operands = 0 : i64, tpu.core_type = #tpu.core_type<tc>, window_params = [{transform_indices = @transform_0, window_bounds = array<i64: 128, 16>}, {pipeline_mode = #tpu.pipeline_mode<synchronous>, transform_indices = @transform_1, window_bounds = array<i64: 16, 128>}, {transform_indices = @transform_2, window_bounds = array<i64: 128, 128>}]} {
    %c0 = arith.constant 0 : index
    %c0_0 = arith.constant 0 : index
    %0 = vector.load %arg1[%c0, %c0_0] : memref<128x16xbf16, #tpu.memory_space<vmem>>, vector<128x16xbf16>
    %c0_1 = arith.constant 0 : index
    %c0_2 = arith.constant 0 : index
    %1 = vector.load %arg2[%c0_1, %c0_2] : memref<16x128xbf16, #tpu.memory_space<vmem>>, vector<16x128xbf16>
    %cst = arith.constant dense<0.000000e+00> : vector<128x128xf32>
    %2 = tpu.matmul %0, %1, %cst {dimension_numbers = #tpu.dot_dimension_numbers<[1], [0], [0], [1], [0, 0, 1, 1], [], []>} : vector<128x16xbf16>, vector<16x128xbf16>, vector<128x128xf32> -> vector<128x128xf32>
    %3 = arith.truncf %2 : vector<128x128xf32> to vector<128x128xbf16>
    %c0_3 = arith.constant 0 : index
    %c0_4 = arith.constant 0 : index
    %4 = vector.load %arg3[%c0_3, %c0_4] : memref<128x128xbf16, #tpu.memory_space<vmem>>, vector<128x128xbf16>
    tpu.vector_store %arg3[%c0_3, %c0_4], %3 {strides = array<i32>} : memref<128x128xbf16, #tpu.memory_space<vmem>>, vector<128x128xbf16>,
    return
  }
  func.func @transform_0(%arg0: i32) -> (i32, i32) {
    %c0_i32 = arith.constant 0 : i32
    %c0_i32_0 = arith.constant 0 : i32
    return %arg0, %c0_i32 : i32, i32
  }
  func.func @transform_1(%arg0: i32) -> (i32, i32) {
    %c0_i32 = arith.constant 0 : i32
    %c0_i32_0 = arith.constant 0 : i32
    %c0_i32_1 = arith.constant 0 : i32
    return %c0_i32, %c0_i32_0 : i32, i32
  }
  func.func @transform_2(%arg0: i32) -> (i32, i32) {
    %c0_i32 = arith.constant 0 : i32
    %c0_i32_0 = arith.constant 0 : i32
    return %arg0, %c0_i32 : i32, i32
  }
}

module attributes {stable_mosaic.version = 11 : i64} {
  func.func @_norm_matmul_kernel(%arg0: i32, %arg1: i32, %arg2: memref<1x64x128xbf16, #tpu.memory_space<vmem>>, %arg3: memref<1x1x128xf32, #tpu.memory_space<vmem>>, %arg4: memref<128x384xbf16, #tpu.memory_space<vmem>>, %arg5: memref<1x64x384xbf16, #tpu.memory_space<vmem>>) attributes {dimension_semantics = [#tpu.dimension_semantics<parallel>, #tpu.dimension_semantics<parallel>], iteration_bounds = array<i64: 2, 1>, scalar_prefetch = 0 : i64, scratch_operands = 0 : i64, tpu.core_type = #tpu.core_type<tc>, window_params = [{transform_indices = @transform_0, window_bounds = array<i64: 1, 64, 128>}, {transform_indices = @transform_1, window_bounds = array<i64: 1, 1, 128>}, {pipeline_mode = #tpu.pipeline_mode<synchronous>, transform_indices = @transform_2, window_bounds = array<i64: 128, 384>}, {transform_indices = @transform_3, window_bounds = array<i64: 1, 64, 384>}]} {
    %c0 = arith.constant 0 : index
    %c0_0 = arith.constant 0 : index
    %c0_1 = arith.constant 0 : index
    %0 = vector.load %arg2[%c0, %c0_0, %c0_1] : memref<1x64x128xbf16, #tpu.memory_space<vmem>>, vector<1x64x128xbf16>
    %1 = vector.shape_cast %0 : vector<1x64x128xbf16> to vector<64x128xbf16>
    %2 = arith.extf %1 : vector<64x128xbf16> to vector<64x128xf32>
    %3 = arith.mulf %2, %2 : vector<64x128xf32>
    %cst = arith.constant dense<0.000000e+00> : vector<64xf32>
    %4 = vector.multi_reduction <add>, %3, %cst [1] : vector<64x128xf32> to vector<64xf32>
    %5 = vector.shape_cast %4 : vector<64xf32> to vector<64x1xf32>
    %cst_2 = arith.constant 1.280000e+02 : f32
    %6 = vector.broadcast %cst_2 : f32 to vector<64x1xf32>
    %7 = arith.divf %5, %6 : vector<64x1xf32>
    %cst_3 = arith.constant 9.99999997E-7 : f32
    %8 = vector.broadcast %cst_3 : f32 to vector<64x1xf32>
    %9 = arith.addf %7, %8 : vector<64x1xf32>
    %10 = math.rsqrt %9 : vector<64x1xf32>
    %11 = vector.broadcast %10 : vector<64x1xf32> to vector<64x128xf32>
    %12 = arith.mulf %2, %11 : vector<64x128xf32>
    %c0_4 = arith.constant 0 : index
    %c0_5 = arith.constant 0 : index
    %c0_6 = arith.constant 0 : index
    %13 = vector.load %arg3[%c0_4, %c0_5, %c0_6] : memref<1x1x128xf32, #tpu.memory_space<vmem>>, vector<1x1x128xf32>
    %14 = vector.shape_cast %13 : vector<1x1x128xf32> to vector<1x128xf32>
    %15 = vector.broadcast %14 : vector<1x128xf32> to vector<64x128xf32>
    %16 = arith.mulf %12, %15 : vector<64x128xf32>
    %17 = arith.truncf %16 : vector<64x128xf32> to vector<64x128xbf16>
    %c0_7 = arith.constant 0 : index
    %c0_8 = arith.constant 0 : index
    %18 = vector.load %arg4[%c0_7, %c0_8] : memref<128x384xbf16, #tpu.memory_space<vmem>>, vector<128x384xbf16>
    %cst_9 = arith.constant dense<0.000000e+00> : vector<64x384xf32>
    %19 = tpu.matmul %17, %18, %cst_9 {dimension_numbers = #tpu.dot_dimension_numbers<[1], [0], [0], [1], [0, 0, 1, 1], [], []>} : vector<64x128xbf16>, vector<128x384xbf16>, vector<64x384xf32> -> vector<64x384xf32>
    %20 = arith.truncf %19 : vector<64x384xf32> to vector<64x384xbf16>
    %c0_10 = arith.constant 0 : index
    %c0_11 = arith.constant 0 : index
    %c0_12 = arith.constant 0 : index
    %21 = vector.load %arg5[%c0_10, %c0_11, %c0_12] : memref<1x64x384xbf16, #tpu.memory_space<vmem>>, vector<1x64x384xbf16>
    %22 = vector.shape_cast %21 : vector<1x64x384xbf16> to vector<64x384xbf16>
    %23 = vector.shape_cast %20 : vector<64x384xbf16> to vector<1x64x384xbf16>
    tpu.vector_store %arg5[%c0_10, %c0_11, %c0_12], %23 {strides = array<i32>} : memref<1x64x384xbf16, #tpu.memory_space<vmem>>, vector<1x64x384xbf16>,
    return
  }
  func.func @transform_0(%arg0: i32, %arg1: i32) -> (i32, i32, i32) {
    %c0_i32 = arith.constant 0 : i32
    %c0_i32_0 = arith.constant 0 : i32
    return %arg0, %arg1, %c0_i32 : i32, i32, i32
  }
  func.func @transform_1(%arg0: i32, %arg1: i32) -> (i32, i32, i32) {
    %c0_i32 = arith.constant 0 : i32
    %c0_i32_0 = arith.constant 0 : i32
    %c0_i32_1 = arith.constant 0 : i32
    return %arg0, %c0_i32, %c0_i32_0 : i32, i32, i32
  }
  func.func @transform_2(%arg0: i32, %arg1: i32) -> (i32, i32) {
    %c0_i32 = arith.constant 0 : i32
    %c0_i32_0 = arith.constant 0 : i32
    %c0_i32_1 = arith.constant 0 : i32
    return %c0_i32, %c0_i32_0 : i32, i32
  }
  func.func @transform_3(%arg0: i32, %arg1: i32) -> (i32, i32, i32) {
    %c0_i32 = arith.constant 0 : i32
    %c0_i32_0 = arith.constant 0 : i32
    return %arg0, %arg1, %c0_i32 : i32, i32, i32
  }
}

module attributes {stable_mosaic.version = 11 : i64} {
  func.func @_adaln_mod_kernel(%arg0: memref<2x128xf32, #tpu.memory_space<vmem>>, %arg1: memref<128x128xbf16, #tpu.memory_space<vmem>>, %arg2: memref<2x128xf32, #tpu.memory_space<vmem>>) attributes {dimension_semantics = [], scalar_prefetch = 0 : i64, scratch_operands = 0 : i64, tpu.core_type = #tpu.core_type<tc>} {
    %c0 = arith.constant 0 : index
    %c0_0 = arith.constant 0 : index
    %0 = vector.load %arg0[%c0, %c0_0] : memref<2x128xf32, #tpu.memory_space<vmem>>, vector<2x128xf32>
    %1 = arith.truncf %0 : vector<2x128xf32> to vector<2x128xbf16>
    %c0_1 = arith.constant 0 : index
    %c0_2 = arith.constant 0 : index
    %2 = vector.load %arg1[%c0_1, %c0_2] : memref<128x128xbf16, #tpu.memory_space<vmem>>, vector<128x128xbf16>
    %cst = arith.constant dense<0.000000e+00> : vector<2x128xf32>
    %3 = tpu.matmul %1, %2, %cst {dimension_numbers = #tpu.dot_dimension_numbers<[1], [0], [0], [1], [0, 0, 1, 1], [], []>} : vector<2x128xbf16>, vector<128x128xbf16>, vector<2x128xf32> -> vector<2x128xf32>
    %cst_3 = arith.constant 1.000000e+00 : f32
    %4 = vector.broadcast %cst_3 : f32 to vector<2x128xf32>
    %5 = arith.addf %4, %3 : vector<2x128xf32>
    %c0_4 = arith.constant 0 : index
    %c0_5 = arith.constant 0 : index
    %6 = vector.load %arg2[%c0_4, %c0_5] : memref<2x128xf32, #tpu.memory_space<vmem>>, vector<2x128xf32>
    tpu.vector_store %arg2[%c0_4, %c0_5], %5 {strides = array<i32>} : memref<2x128xf32, #tpu.memory_space<vmem>>, vector<2x128xf32>,
    return
  }
}

module attributes {stable_mosaic.version = 11 : i64} {
  func.func @_flash_kernel(%arg0: i32, %arg1: i32, %arg2: i32, %arg3: memref<1x64x32xbf16, #tpu.memory_space<vmem>>, %arg4: memref<1x64x32xbf16, #tpu.memory_space<vmem>>, %arg5: memref<1x64x32xbf16, #tpu.memory_space<vmem>>, %arg6: memref<1x64x32xbf16, #tpu.memory_space<vmem>>, %arg7: memref<64x1xf32, #tpu.memory_space<vmem>>, %arg8: memref<64x1xf32, #tpu.memory_space<vmem>>, %arg9: memref<64x32xf32, #tpu.memory_space<vmem>>) attributes {dimension_semantics = [#tpu.dimension_semantics<parallel>, #tpu.dimension_semantics<parallel>, #tpu.dimension_semantics<arbitrary>], iteration_bounds = array<i64: 8, 1, 1>, scalar_prefetch = 0 : i64, scratch_operands = 3 : i64, tpu.core_type = #tpu.core_type<tc>, window_params = [{transform_indices = @transform_0, window_bounds = array<i64: 1, 64, 32>}, {transform_indices = @transform_1, window_bounds = array<i64: 1, 64, 32>}, {transform_indices = @transform_2, window_bounds = array<i64: 1, 64, 32>}, {transform_indices = @transform_3, window_bounds = array<i64: 1, 64, 32>}]} {
    %c0_i32 = arith.constant 0 : i32
    %0 = arith.cmpi eq, %arg2, %c0_i32 : i32
    %1 = arith.extui %0 : i1 to i32
    %c0_i32_0 = arith.constant 0 : i32
    %2 = arith.cmpi ne, %1, %c0_i32_0 : i32
    scf.if %2 {
      %cst_26 = arith.constant -1.000000e+30 : f32
      %36 = vector.broadcast %cst_26 : f32 to vector<64x1xf32>
      %c0_27 = arith.constant 0 : index
      %c0_28 = arith.constant 0 : index
      %37 = vector.load %arg7[%c0_27, %c0_28] : memref<64x1xf32, #tpu.memory_space<vmem>>, vector<64x1xf32>
      tpu.vector_store %arg7[%c0_27, %c0_28], %36 {strides = array<i32>} : memref<64x1xf32, #tpu.memory_space<vmem>>, vector<64x1xf32>,
      %cst_29 = arith.constant 0.000000e+00 : f32
      %38 = vector.broadcast %cst_29 : f32 to vector<64x1xf32>
      %c0_30 = arith.constant 0 : index
      %c0_31 = arith.constant 0 : index
      %39 = vector.load %arg8[%c0_30, %c0_31] : memref<64x1xf32, #tpu.memory_space<vmem>>, vector<64x1xf32>
      tpu.vector_store %arg8[%c0_30, %c0_31], %38 {strides = array<i32>} : memref<64x1xf32, #tpu.memory_space<vmem>>, vector<64x1xf32>,
      %cst_32 = arith.constant 0.000000e+00 : f32
      %40 = vector.broadcast %cst_32 : f32 to vector<64x32xf32>
      %c0_33 = arith.constant 0 : index
      %c0_34 = arith.constant 0 : index
      %41 = vector.load %arg9[%c0_33, %c0_34] : memref<64x32xf32, #tpu.memory_space<vmem>>, vector<64x32xf32>
      tpu.vector_store %arg9[%c0_33, %c0_34], %40 {strides = array<i32>} : memref<64x32xf32, #tpu.memory_space<vmem>>, vector<64x32xf32>,
    } else {
    }
    %c0 = arith.constant 0 : index
    %c0_1 = arith.constant 0 : index
    %c0_2 = arith.constant 0 : index
    %3 = vector.load %arg3[%c0, %c0_1, %c0_2] : memref<1x64x32xbf16, #tpu.memory_space<vmem>>, vector<1x64x32xbf16>
    %4 = vector.shape_cast %3 : vector<1x64x32xbf16> to vector<64x32xbf16>
    %c0_3 = arith.constant 0 : index
    %c0_4 = arith.constant 0 : index
    %c0_5 = arith.constant 0 : index
    %5 = vector.load %arg4[%c0_3, %c0_4, %c0_5] : memref<1x64x32xbf16, #tpu.memory_space<vmem>>, vector<1x64x32xbf16>
    %6 = vector.shape_cast %5 : vector<1x64x32xbf16> to vector<64x32xbf16>
    %c0_6 = arith.constant 0 : index
    %c0_7 = arith.constant 0 : index
    %c0_8 = arith.constant 0 : index
    %7 = vector.load %arg5[%c0_6, %c0_7, %c0_8] : memref<1x64x32xbf16, #tpu.memory_space<vmem>>, vector<1x64x32xbf16>
    %8 = vector.shape_cast %7 : vector<1x64x32xbf16> to vector<64x32xbf16>
    %cst = arith.constant dense<0.000000e+00> : vector<64x64xf32>
    %9 = tpu.matmul %4, %6, %cst {dimension_numbers = #tpu.dot_dimension_numbers<[1], [1], [0], [0], [0, 0, 1, 0], [], []>} : vector<64x32xbf16>, vector<64x32xbf16>, vector<64x64xf32> -> vector<64x64xf32>
    %c0_9 = arith.constant 0 : index
    %c0_10 = arith.constant 0 : index
    %10 = vector.load %arg7[%c0_9, %c0_10] : memref<64x1xf32, #tpu.memory_space<vmem>>, vector<64x1xf32>
    %cst_11 = arith.constant dense<0xFF800000> : vector<64xf32>
    %11 = vector.multi_reduction <maximumf>, %9, %cst_11 [1] : vector<64x64xf32> to vector<64xf32>
    %12 = vector.shape_cast %11 : vector<64xf32> to vector<64x1xf32>
    %13 = arith.maximumf %10, %12 : vector<64x1xf32>
    %14 = arith.subf %10, %13 : vector<64x1xf32>
    %15 = math.exp %14 : vector<64x1xf32>
    %16 = vector.broadcast %13 : vector<64x1xf32> to vector<64x64xf32>
    %17 = arith.subf %9, %16 : vector<64x64xf32>
    %18 = math.exp %17 : vector<64x64xf32>
    %c0_12 = arith.constant 0 : index
    %c0_13 = arith.constant 0 : index
    %19 = vector.load %arg8[%c0_12, %c0_13] : memref<64x1xf32, #tpu.memory_space<vmem>>, vector<64x1xf32>
    %20 = arith.mulf %15, %19 : vector<64x1xf32>
    %cst_14 = arith.constant dense<0.000000e+00> : vector<64xf32>
    %21 = vector.multi_reduction <add>, %18, %cst_14 [1] : vector<64x64xf32> to vector<64xf32>
    %22 = vector.shape_cast %21 : vector<64xf32> to vector<64x1xf32>
    %23 = arith.addf %20, %22 : vector<64x1xf32>
    %c0_15 = arith.constant 0 : index
    %c0_16 = arith.constant 0 : index
    %24 = vector.load %arg8[%c0_15, %c0_16] : memref<64x1xf32, #tpu.memory_space<vmem>>, vector<64x1xf32>
    tpu.vector_store %arg8[%c0_15, %c0_16], %23 {strides = array<i32>} : memref<64x1xf32, #tpu.memory_space<vmem>>, vector<64x1xf32>,
    %c0_17 = arith.constant 0 : index
    %c0_18 = arith.constant 0 : index
    %25 = vector.load %arg9[%c0_17, %c0_18] : memref<64x32xf32, #tpu.memory_space<vmem>>, vector<64x32xf32>
    %26 = vector.broadcast %15 : vector<64x1xf32> to vector<64x32xf32>
    %27 = arith.mulf %26, %25 : vector<64x32xf32>
    %28 = arith.truncf %18 : vector<64x64xf32> to vector<64x64xbf16>
    %cst_19 = arith.constant dense<0.000000e+00> : vector<64x32xf32>
    %29 = tpu.matmul %28, %8, %cst_19 {dimension_numbers = #tpu.dot_dimension_numbers<[1], [0], [0], [1], [0, 0, 1, 1], [], []>} : vector<64x64xbf16>, vector<64x32xbf16>, vector<64x32xf32> -> vector<64x32xf32>
    %30 = arith.addf %27, %29 : vector<64x32xf32>
    %c0_20 = arith.constant 0 : index
    %c0_21 = arith.constant 0 : index
    %31 = vector.load %arg9[%c0_20, %c0_21] : memref<64x32xf32, #tpu.memory_space<vmem>>, vector<64x32xf32>
    tpu.vector_store %arg9[%c0_20, %c0_21], %30 {strides = array<i32>} : memref<64x32xf32, #tpu.memory_space<vmem>>, vector<64x32xf32>,
    %c0_22 = arith.constant 0 : index
    %c0_23 = arith.constant 0 : index
    %32 = vector.load %arg7[%c0_22, %c0_23] : memref<64x1xf32, #tpu.memory_space<vmem>>, vector<64x1xf32>
    tpu.vector_store %arg7[%c0_22, %c0_23], %13 {strides = array<i32>} : memref<64x1xf32, #tpu.memory_space<vmem>>, vector<64x1xf32>,
    %c0_i32_24 = arith.constant 0 : i32
    %33 = arith.cmpi eq, %arg2, %c0_i32_24 : i32
    %34 = arith.extui %33 : i1 to i32
    %c0_i32_25 = arith.constant 0 : i32
    %35 = arith.cmpi ne, %34, %c0_i32_25 : i32
    scf.if %35 {
      %c0_26 = arith.constant 0 : index
      %c0_27 = arith.constant 0 : index
      %36 = vector.load %arg9[%c0_26, %c0_27] : memref<64x32xf32, #tpu.memory_space<vmem>>, vector<64x32xf32>
      %c0_28 = arith.constant 0 : index
      %c0_29 = arith.constant 0 : index
      %37 = vector.load %arg8[%c0_28, %c0_29] : memref<64x1xf32, #tpu.memory_space<vmem>>, vector<64x1xf32>
      %38 = tpu.reciprocal %37 {approx = true} : vector<64x1xf32> -> vector<64x1xf32>
      %39 = vector.broadcast %38 : vector<64x1xf32> to vector<64x32xf32>
      %40 = arith.mulf %36, %39 : vector<64x32xf32>
      %41 = arith.truncf %40 : vector<64x32xf32> to vector<64x32xbf16>
      %c0_30 = arith.constant 0 : index
      %c0_31 = arith.constant 0 : index
      %c0_32 = arith.constant 0 : index
      %42 = vector.load %arg6[%c0_30, %c0_31, %c0_32] : memref<1x64x32xbf16, #tpu.memory_space<vmem>>, vector<1x64x32xbf16>
      %43 = vector.shape_cast %42 : vector<1x64x32xbf16> to vector<64x32xbf16>
      %44 = vector.shape_cast %41 : vector<64x32xbf16> to vector<1x64x32xbf16>
      tpu.vector_store %arg6[%c0_30, %c0_31, %c0_32], %44 {strides = array<i32>} : memref<1x64x32xbf16, #tpu.memory_space<vmem>>, vector<1x64x32xbf16>,
    } else {
    }
    return
  }
  func.func @transform_0(%arg0: i32, %arg1: i32, %arg2: i32) -> (i32, i32, i32) {
    %c0_i32 = arith.constant 0 : i32
    %c0_i32_0 = arith.constant 0 : i32
    return %arg0, %arg1, %c0_i32 : i32, i32, i32
  }
  func.func @transform_1(%arg0: i32, %arg1: i32, %arg2: i32) -> (i32, i32, i32) {
    %c0_i32 = arith.constant 0 : i32
    %c0_i32_0 = arith.constant 0 : i32
    return %arg0, %arg2, %c0_i32 : i32, i32, i32
  }
  func.func @transform_2(%arg0: i32, %arg1: i32, %arg2: i32) -> (i32, i32, i32) {
    %c0_i32 = arith.constant 0 : i32
    %c0_i32_0 = arith.constant 0 : i32
    return %arg0, %arg2, %c0_i32 : i32, i32, i32
  }
  func.func @transform_3(%arg0: i32, %arg1: i32, %arg2: i32) -> (i32, i32, i32) {
    %c0_i32 = arith.constant 0 : i32
    %c0_i32_0 = arith.constant 0 : i32
    return %arg0, %arg1, %c0_i32 : i32, i32, i32
  }
}

module attributes {stable_mosaic.version = 11 : i64} {
  func.func @_matmul_residual_kernel(%arg0: i32, %arg1: i32, %arg2: memref<1x64x256xbf16, #tpu.memory_space<vmem>>, %arg3: memref<256x128xbf16, #tpu.memory_space<vmem>>, %arg4: memref<1x64x128xbf16, #tpu.memory_space<vmem>>, %arg5: memref<1x64x128xbf16, #tpu.memory_space<vmem>>) attributes {dimension_semantics = [#tpu.dimension_semantics<parallel>, #tpu.dimension_semantics<parallel>], iteration_bounds = array<i64: 2, 1>, scalar_prefetch = 0 : i64, scratch_operands = 0 : i64, tpu.core_type = #tpu.core_type<tc>, window_params = [{transform_indices = @transform_0, window_bounds = array<i64: 1, 64, 256>}, {pipeline_mode = #tpu.pipeline_mode<synchronous>, transform_indices = @transform_1, window_bounds = array<i64: 256, 128>}, {transform_indices = @transform_2, window_bounds = array<i64: 1, 64, 128>}, {transform_indices = @transform_3, window_bounds = array<i64: 1, 64, 128>}]} {
    %c0 = arith.constant 0 : index
    %c0_0 = arith.constant 0 : index
    %c0_1 = arith.constant 0 : index
    %0 = vector.load %arg2[%c0, %c0_0, %c0_1] : memref<1x64x256xbf16, #tpu.memory_space<vmem>>, vector<1x64x256xbf16>
    %1 = vector.shape_cast %0 : vector<1x64x256xbf16> to vector<64x256xbf16>
    %c0_2 = arith.constant 0 : index
    %c0_3 = arith.constant 0 : index
    %2 = vector.load %arg3[%c0_2, %c0_3] : memref<256x128xbf16, #tpu.memory_space<vmem>>, vector<256x128xbf16>
    %cst = arith.constant dense<0.000000e+00> : vector<64x128xf32>
    %3 = tpu.matmul %1, %2, %cst {dimension_numbers = #tpu.dot_dimension_numbers<[1], [0], [0], [1], [0, 0, 1, 1], [], []>} : vector<64x256xbf16>, vector<256x128xbf16>, vector<64x128xf32> -> vector<64x128xf32>
    %c0_4 = arith.constant 0 : index
    %c0_5 = arith.constant 0 : index
    %c0_6 = arith.constant 0 : index
    %4 = vector.load %arg4[%c0_4, %c0_5, %c0_6] : memref<1x64x128xbf16, #tpu.memory_space<vmem>>, vector<1x64x128xbf16>
    %5 = vector.shape_cast %4 : vector<1x64x128xbf16> to vector<64x128xbf16>
    %6 = arith.extf %5 : vector<64x128xbf16> to vector<64x128xf32>
    %7 = arith.addf %3, %6 : vector<64x128xf32>
    %8 = arith.truncf %7 : vector<64x128xf32> to vector<64x128xbf16>
    %c0_7 = arith.constant 0 : index
    %c0_8 = arith.constant 0 : index
    %c0_9 = arith.constant 0 : index
    %9 = vector.load %arg5[%c0_7, %c0_8, %c0_9] : memref<1x64x128xbf16, #tpu.memory_space<vmem>>, vector<1x64x128xbf16>
    %10 = vector.shape_cast %9 : vector<1x64x128xbf16> to vector<64x128xbf16>
    %11 = vector.shape_cast %8 : vector<64x128xbf16> to vector<1x64x128xbf16>
    tpu.vector_store %arg5[%c0_7, %c0_8, %c0_9], %11 {strides = array<i32>} : memref<1x64x128xbf16, #tpu.memory_space<vmem>>, vector<1x64x128xbf16>,
    return
  }
  func.func @transform_0(%arg0: i32, %arg1: i32) -> (i32, i32, i32) {
    %c0_i32 = arith.constant 0 : i32
    %c0_i32_0 = arith.constant 0 : i32
    return %arg0, %arg1, %c0_i32 : i32, i32, i32
  }
  func.func @transform_1(%arg0: i32, %arg1: i32) -> (i32, i32) {
    %c0_i32 = arith.constant 0 : i32
    %c0_i32_0 = arith.constant 0 : i32
    %c0_i32_1 = arith.constant 0 : i32
    return %c0_i32, %c0_i32_0 : i32, i32
  }
  func.func @transform_2(%arg0: i32, %arg1: i32) -> (i32, i32, i32) {
    %c0_i32 = arith.constant 0 : i32
    %c0_i32_0 = arith.constant 0 : i32
    return %arg0, %arg1, %c0_i32 : i32, i32, i32
  }
  func.func @transform_3(%arg0: i32, %arg1: i32) -> (i32, i32, i32) {
    %c0_i32 = arith.constant 0 : i32
    %c0_i32_0 = arith.constant 0 : i32
    return %arg0, %arg1, %c0_i32 : i32, i32, i32
  }
}

module attributes {stable_mosaic.version = 11 : i64} {
  func.func @_matmul_residual_kernel(%arg0: i32, %arg1: i32, %arg2: memref<1x64x128xbf16, #tpu.memory_space<vmem>>, %arg3: memref<128x128xbf16, #tpu.memory_space<vmem>>, %arg4: memref<1x64x128xbf16, #tpu.memory_space<vmem>>, %arg5: memref<1x64x128xbf16, #tpu.memory_space<vmem>>) attributes {dimension_semantics = [#tpu.dimension_semantics<parallel>, #tpu.dimension_semantics<parallel>], iteration_bounds = array<i64: 2, 1>, scalar_prefetch = 0 : i64, scratch_operands = 0 : i64, tpu.core_type = #tpu.core_type<tc>, window_params = [{transform_indices = @transform_0, window_bounds = array<i64: 1, 64, 128>}, {pipeline_mode = #tpu.pipeline_mode<synchronous>, transform_indices = @transform_1, window_bounds = array<i64: 128, 128>}, {transform_indices = @transform_2, window_bounds = array<i64: 1, 64, 128>}, {transform_indices = @transform_3, window_bounds = array<i64: 1, 64, 128>}]} {
    %c0 = arith.constant 0 : index
    %c0_0 = arith.constant 0 : index
    %c0_1 = arith.constant 0 : index
    %0 = vector.load %arg2[%c0, %c0_0, %c0_1] : memref<1x64x128xbf16, #tpu.memory_space<vmem>>, vector<1x64x128xbf16>
    %1 = vector.shape_cast %0 : vector<1x64x128xbf16> to vector<64x128xbf16>
    %c0_2 = arith.constant 0 : index
    %c0_3 = arith.constant 0 : index
    %2 = vector.load %arg3[%c0_2, %c0_3] : memref<128x128xbf16, #tpu.memory_space<vmem>>, vector<128x128xbf16>
    %cst = arith.constant dense<0.000000e+00> : vector<64x128xf32>
    %3 = tpu.matmul %1, %2, %cst {dimension_numbers = #tpu.dot_dimension_numbers<[1], [0], [0], [1], [0, 0, 1, 1], [], []>} : vector<64x128xbf16>, vector<128x128xbf16>, vector<64x128xf32> -> vector<64x128xf32>
    %c0_4 = arith.constant 0 : index
    %c0_5 = arith.constant 0 : index
    %c0_6 = arith.constant 0 : index
    %4 = vector.load %arg4[%c0_4, %c0_5, %c0_6] : memref<1x64x128xbf16, #tpu.memory_space<vmem>>, vector<1x64x128xbf16>
    %5 = vector.shape_cast %4 : vector<1x64x128xbf16> to vector<64x128xbf16>
    %6 = arith.extf %5 : vector<64x128xbf16> to vector<64x128xf32>
    %7 = arith.addf %3, %6 : vector<64x128xf32>
    %8 = arith.truncf %7 : vector<64x128xf32> to vector<64x128xbf16>
    %c0_7 = arith.constant 0 : index
    %c0_8 = arith.constant 0 : index
    %c0_9 = arith.constant 0 : index
    %9 = vector.load %arg5[%c0_7, %c0_8, %c0_9] : memref<1x64x128xbf16, #tpu.memory_space<vmem>>, vector<1x64x128xbf16>
    %10 = vector.shape_cast %9 : vector<1x64x128xbf16> to vector<64x128xbf16>
    %11 = vector.shape_cast %8 : vector<64x128xbf16> to vector<1x64x128xbf16>
    tpu.vector_store %arg5[%c0_7, %c0_8, %c0_9], %11 {strides = array<i32>} : memref<1x64x128xbf16, #tpu.memory_space<vmem>>, vector<1x64x128xbf16>,
    return
  }
  func.func @transform_0(%arg0: i32, %arg1: i32) -> (i32, i32, i32) {
    %c0_i32 = arith.constant 0 : i32
    %c0_i32_0 = arith.constant 0 : i32
    return %arg0, %arg1, %c0_i32 : i32, i32, i32
  }
  func.func @transform_1(%arg0: i32, %arg1: i32) -> (i32, i32) {
    %c0_i32 = arith.constant 0 : i32
    %c0_i32_0 = arith.constant 0 : i32
    %c0_i32_1 = arith.constant 0 : i32
    return %c0_i32, %c0_i32_0 : i32, i32
  }
  func.func @transform_2(%arg0: i32, %arg1: i32) -> (i32, i32, i32) {
    %c0_i32 = arith.constant 0 : i32
    %c0_i32_0 = arith.constant 0 : i32
    return %arg0, %arg1, %c0_i32 : i32, i32, i32
  }
  func.func @transform_3(%arg0: i32, %arg1: i32) -> (i32, i32, i32) {
    %c0_i32 = arith.constant 0 : i32
    %c0_i32_0 = arith.constant 0 : i32
    return %arg0, %arg1, %c0_i32 : i32, i32, i32
  }
}

module attributes {stable_mosaic.version = 11 : i64} {
  func.func @_norm_matmul_geglu_kernel(%arg0: i32, %arg1: i32, %arg2: memref<1x64x128xbf16, #tpu.memory_space<vmem>>, %arg3: memref<1x1x128xf32, #tpu.memory_space<vmem>>, %arg4: memref<128x512xbf16, #tpu.memory_space<vmem>>, %arg5: memref<1x64x256xbf16, #tpu.memory_space<vmem>>) attributes {dimension_semantics = [#tpu.dimension_semantics<parallel>, #tpu.dimension_semantics<parallel>], iteration_bounds = array<i64: 2, 1>, scalar_prefetch = 0 : i64, scratch_operands = 0 : i64, tpu.core_type = #tpu.core_type<tc>, window_params = [{transform_indices = @transform_0, window_bounds = array<i64: 1, 64, 128>}, {transform_indices = @transform_1, window_bounds = array<i64: 1, 1, 128>}, {pipeline_mode = #tpu.pipeline_mode<synchronous>, transform_indices = @transform_2, window_bounds = array<i64: 128, 512>}, {transform_indices = @transform_3, window_bounds = array<i64: 1, 64, 256>}]} {
    %c0 = arith.constant 0 : index
    %c0_0 = arith.constant 0 : index
    %c0_1 = arith.constant 0 : index
    %0 = vector.load %arg2[%c0, %c0_0, %c0_1] : memref<1x64x128xbf16, #tpu.memory_space<vmem>>, vector<1x64x128xbf16>
    %1 = vector.shape_cast %0 : vector<1x64x128xbf16> to vector<64x128xbf16>
    %2 = arith.extf %1 : vector<64x128xbf16> to vector<64x128xf32>
    %3 = arith.mulf %2, %2 : vector<64x128xf32>
    %cst = arith.constant dense<0.000000e+00> : vector<64xf32>
    %4 = vector.multi_reduction <add>, %3, %cst [1] : vector<64x128xf32> to vector<64xf32>
    %5 = vector.shape_cast %4 : vector<64xf32> to vector<64x1xf32>
    %cst_2 = arith.constant 1.280000e+02 : f32
    %6 = vector.broadcast %cst_2 : f32 to vector<64x1xf32>
    %7 = arith.divf %5, %6 : vector<64x1xf32>
    %cst_3 = arith.constant 9.99999997E-7 : f32
    %8 = vector.broadcast %cst_3 : f32 to vector<64x1xf32>
    %9 = arith.addf %7, %8 : vector<64x1xf32>
    %10 = math.rsqrt %9 : vector<64x1xf32>
    %11 = vector.broadcast %10 : vector<64x1xf32> to vector<64x128xf32>
    %12 = arith.mulf %2, %11 : vector<64x128xf32>
    %c0_4 = arith.constant 0 : index
    %c0_5 = arith.constant 0 : index
    %c0_6 = arith.constant 0 : index
    %13 = vector.load %arg3[%c0_4, %c0_5, %c0_6] : memref<1x1x128xf32, #tpu.memory_space<vmem>>, vector<1x1x128xf32>
    %14 = vector.shape_cast %13 : vector<1x1x128xf32> to vector<1x128xf32>
    %15 = vector.broadcast %14 : vector<1x128xf32> to vector<64x128xf32>
    %16 = arith.mulf %12, %15 : vector<64x128xf32>
    %17 = arith.truncf %16 : vector<64x128xf32> to vector<64x128xbf16>
    %c0_7 = arith.constant 0 : index
    %c0_8 = arith.constant 0 : index
    %18 = vector.load %arg4[%c0_7, %c0_8] : memref<128x512xbf16, #tpu.memory_space<vmem>>, vector<128x512xbf16>
    %cst_9 = arith.constant dense<0.000000e+00> : vector<64x512xf32>
    %19 = tpu.matmul %17, %18, %cst_9 {dimension_numbers = #tpu.dot_dimension_numbers<[1], [0], [0], [1], [0, 0, 1, 1], [], []>} : vector<64x128xbf16>, vector<128x512xbf16>, vector<64x512xf32> -> vector<64x512xf32>
    %20 = vector.extract_strided_slice %19 {offsets = [0, 0], sizes = [64, 256], strides = [1, 1]} : vector<64x512xf32> to vector<64x256xf32>
    %21 = vector.extract_strided_slice %19 {offsets = [0, 256], sizes = [64, 256], strides = [1, 1]} : vector<64x512xf32> to vector<64x256xf32>
    %cst_10 = arith.constant 5.000000e-01 : f32
    %22 = vector.broadcast %cst_10 : f32 to vector<64x256xf32>
    %23 = arith.mulf %22, %21 : vector<64x256xf32>
    %cst_11 = arith.constant 4.471500e-02 : f32
    %24 = vector.broadcast %cst_11 : f32 to vector<64x256xf32>
    %25 = arith.mulf %24, %21 : vector<64x256xf32>
    %26 = arith.mulf %25, %21 : vector<64x256xf32>
    %27 = arith.mulf %26, %21 : vector<64x256xf32>
    %28 = arith.addf %21, %27 : vector<64x256xf32>
    %cst_12 = arith.constant 0.797884583 : f32
    %29 = vector.broadcast %cst_12 : f32 to vector<64x256xf32>
    %30 = arith.mulf %29, %28 : vector<64x256xf32>
    %31 = math.tanh %30 : vector<64x256xf32>
    %cst_13 = arith.constant 1.000000e+00 : f32
    %32 = vector.broadcast %cst_13 : f32 to vector<64x256xf32>
    %33 = arith.addf %32, %31 : vector<64x256xf32>
    %34 = arith.mulf %23, %33 : vector<64x256xf32>
    %35 = arith.mulf %20, %34 : vector<64x256xf32>
    %36 = arith.truncf %35 : vector<64x256xf32> to vector<64x256xbf16>
    %c0_14 = arith.constant 0 : index
    %c0_15 = arith.constant 0 : index
    %c0_16 = arith.constant 0 : index
    %37 = vector.load %arg5[%c0_14, %c0_15, %c0_16] : memref<1x64x256xbf16, #tpu.memory_space<vmem>>, vector<1x64x256xbf16>
    %38 = vector.shape_cast %37 : vector<1x64x256xbf16> to vector<64x256xbf16>
    %39 = vector.shape_cast %36 : vector<64x256xbf16> to vector<1x64x256xbf16>
    tpu.vector_store %arg5[%c0_14, %c0_15, %c0_16], %39 {strides = array<i32>} : memref<1x64x256xbf16, #tpu.memory_space<vmem>>, vector<1x64x256xbf16>,
    return
  }
  func.func @transform_0(%arg0: i32, %arg1: i32) -> (i32, i32, i32) {
    %c0_i32 = arith.constant 0 : i32
    %c0_i32_0 = arith.constant 0 : i32
    return %arg0, %arg1, %c0_i32 : i32, i32, i32
  }
  func.func @transform_1(%arg0: i32, %arg1: i32) -> (i32, i32, i32) {
    %c0_i32 = arith.constant 0 : i32
    %c0_i32_0 = arith.constant 0 : i32
    %c0_i32_1 = arith.constant 0 : i32
    return %arg0, %c0_i32, %c0_i32_0 : i32, i32, i32
  }
  func.func @transform_2(%arg0: i32, %arg1: i32) -> (i32, i32) {
    %c0_i32 = arith.constant 0 : i32
    %c0_i32_0 = arith.constant 0 : i32
    %c0_i32_1 = arith.constant 0 : i32
    return %c0_i32, %c0_i32_0 : i32, i32
  }
  func.func @transform_3(%arg0: i32, %arg1: i32) -> (i32, i32, i32) {
    %c0_i32 = arith.constant 0 : i32
    %c0_i32_0 = arith.constant 0 : i32
    return %arg0, %arg1, %c0_i32 : i32, i32, i32
  }
}

module attributes {stable_mosaic.version = 11 : i64} {
  func.func @_matmul_kernel(%arg0: i32, %arg1: memref<128x128xbf16, #tpu.memory_space<vmem>>, %arg2: memref<128x16xbf16, #tpu.memory_space<vmem>>, %arg3: memref<128x16xf32, #tpu.memory_space<vmem>>) attributes {dimension_semantics = [#tpu.dimension_semantics<parallel>], iteration_bounds = array<i64: 1>, scalar_prefetch = 0 : i64, scratch_operands = 0 : i64, tpu.core_type = #tpu.core_type<tc>, window_params = [{transform_indices = @transform_0, window_bounds = array<i64: 128, 128>}, {pipeline_mode = #tpu.pipeline_mode<synchronous>, transform_indices = @transform_1, window_bounds = array<i64: 128, 16>}, {transform_indices = @transform_2, window_bounds = array<i64: 128, 16>}]} {
    %c0 = arith.constant 0 : index
    %c0_0 = arith.constant 0 : index
    %0 = vector.load %arg1[%c0, %c0_0] : memref<128x128xbf16, #tpu.memory_space<vmem>>, vector<128x128xbf16>
    %c0_1 = arith.constant 0 : index
    %c0_2 = arith.constant 0 : index
    %1 = vector.load %arg2[%c0_1, %c0_2] : memref<128x16xbf16, #tpu.memory_space<vmem>>, vector<128x16xbf16>
    %cst = arith.constant dense<0.000000e+00> : vector<128x16xf32>
    %2 = tpu.matmul %0, %1, %cst {dimension_numbers = #tpu.dot_dimension_numbers<[1], [0], [0], [1], [0, 0, 1, 1], [], []>} : vector<128x128xbf16>, vector<128x16xbf16>, vector<128x16xf32> -> vector<128x16xf32>
    %c0_3 = arith.constant 0 : index
    %c0_4 = arith.constant 0 : index
    %3 = vector.load %arg3[%c0_3, %c0_4] : memref<128x16xf32, #tpu.memory_space<vmem>>, vector<128x16xf32>
    tpu.vector_store %arg3[%c0_3, %c0_4], %2 {strides = array<i32>} : memref<128x16xf32, #tpu.memory_space<vmem>>, vector<128x16xf32>,
    return
  }
  func.func @transform_0(%arg0: i32) -> (i32, i32) {
    %c0_i32 = arith.constant 0 : i32
    %c0_i32_0 = arith.constant 0 : i32
    return %arg0, %c0_i32 : i32, i32
  }
  func.func @transform_1(%arg0: i32) -> (i32, i32) {
    %c0_i32 = arith.constant 0 : i32
    %c0_i32_0 = arith.constant 0 : i32
    %c0_i32_1 = arith.constant 0 : i32
    return %c0_i32, %c0_i32_0 : i32, i32
  }
  func.func @transform_2(%arg0: i32) -> (i32, i32) {
    %c0_i32 = arith.constant 0 : i32
    %c0_i32_0 = arith.constant 0 : i32
    return %arg0, %c0_i32 : i32, i32
  }
}

</mosaic_0001>

<bundles_post_ra>
// kernel: forward.16
= control target key start
LH: loop header
LB: loop body
LE: loop exit
PB: predicated region body
PF: predicated region fallthrough
CT: control target
= control target key end

     0   :  { %vm76_vm0 = vcmask 130048   ;;  %s490_s1 = inlined_call_operand.vmem [shape: bf16[16,128], index: 1, kind: input, shape index: {}]   ;;  %s491_s0 = inlined_call_operand.vmem [shape: bf16[128,16], index: 0, kind: input, shape index: {}]   ;;  %s492_s2 = inlined_call_operand.vmem [shape: bf16[128,128], index: 2, kind: output, shape index: {}]  }
   0x1   :  { %v407_v0 = vld [vmem:[%s490_s1] sm:$0xff]   ;;  %v410_v3 = vld [vmem:[%s491_s0 + $0x8] sm:$0xff]   ;;  %v412_v5 = vld [vmem:[%s491_s0 + $0x10] sm:$0xff]  }
   0x2   :  { %v408_v1 = vld [vmem:[%s491_s0] sm:$0xff]   ;;  %387 = vmatprep.subr.bf16.mxu0 %v407_v0  ;;  %405 = vmatprep.subr.bf16.mxu1 %v407_v0  ;;  %v411_v4 = vld [vmem:[%s491_s0 + $0x28] sm:$0xff]   ;;  %v413_v6 = vld [vmem:[%s491_s0 + $0x30] sm:$0xff]  }
   0x3   :  { %v409_v2 = vld [vmem:[%s491_s0 + $0x20] sm:$0xff]   ;;  %388 = vmatpush3.bf16.msra.mxu0 %v407_v0  ;;  %406 = vmatpush3.bf16.msra.mxu1 %v407_v0  ;;  %v414_v7 = vld [vmem:[%s491_s0 + $0x18] sm:$0xff]  }
   0x4   :  { %389 = vmatprep.mubr.msk.bf16.mxu0 %vm76_vm0, %v408_v1  ;;  %397 = vmatprep.mubr.msk.bf16.mxu1 %vm76_vm0, %v409_v2  ;;  %v415_v8 = vld [vmem:[%s491_s0 + $0x38] sm:$0xff]  }
   0x6   :  { %390 = vmatmul.mubr.msk.bf16.vlgmr.msra.gmra.mxu0 %vm76_vm0, %v410_v3  ;;  %398 = vmatmul.mubr.msk.bf16.vlgmr.msra.gmra.mxu1 %vm76_vm0, %v411_v4 }
   0x7   :  { %393 = vmatprep.mubr.msk.bf16.mxu0 %vm76_vm0, %v412_v5  ;;  %401 = vmatprep.mubr.msk.bf16.mxu1 %vm76_vm0, %v413_v6 }
   0xe   :  { %394 = vmatmul.mubr.msk.bf16.gmra.mxu0 %vm76_vm0, %v414_v7  ;;  %402 = vmatmul.mubr.msk.bf16.gmra.mxu1 %vm76_vm0, %v415_v8 }
  0xc6   :  { %v391_v9 = vpop.f32.mrf.mxu0  ;;  %v399_v10 = vpop.f32.mrf.mxu1 }
  0xc8   :  { %v135_v11 = vpop.f32.mrf.mxu0  ;;  %v167_v12 = vpop.f32.mrf.mxu1 }
  0xca   :  { %v392_v13 = vpop.f32.mrf.mxu0  ;;  %v400_v14 = vpop.f32.mrf.mxu1 }
  0xcb   :  { %v339_v15 = vpack.c.bf16 %v392_v13, %v391_v9  ;;  %v359_v16 = vpack.c.bf16 %v400_v14, %v399_v10 }
  0xcc   :  { %v138_v17 = vpop.f32.mrf.mxu0  ;;  %v170_v18 = vpop.f32.mrf.mxu1 }
  0xcd   :  { %371 = vst [vmem:[%s492_s2 + $0x8] sm:$0xff] %v339_v15   ;;  %375 = vst [vmem:[%s492_s2 + $0x28] sm:$0xff] %v359_v16   ;;  %v334_v19 = vpack.c.bf16 %v138_v17, %v135_v11  ;;  %v354_v20 = vpack.c.bf16 %v170_v18, %v167_v12 }
  0xce   :  { %v395_v21 = vpop.f32.mrf.mxu0  ;;  %v403_v22 = vpop.f32.mrf.mxu1 }
  0xcf   :  { %335 = vst [vmem:[%s492_s2] sm:$0xff] %v334_v19   ;;  %374 = vst [vmem:[%s492_s2 + $0x20] sm:$0xff] %v354_v20  }
  0xd0   :  { %v151_v23 = vpop.f32.mrf.mxu0  ;;  %v183_v24 = vpop.f32.mrf.mxu1 }
  0xd2   :  { %v396_v25 = vpop.f32.mrf.mxu0  ;;  %v404_v26 = vpop.f32.mrf.mxu1 }
  0xd3   :  { %v349_v27 = vpack.c.bf16 %v396_v25, %v395_v21  ;;  %v369_v28 = vpack.c.bf16 %v404_v26, %v403_v22 }
  0xd4   :  { %v154_v29 = vpop.f32.mrf.mxu0  ;;  %v186_v30 = vpop.f32.mrf.mxu1 }
  0xd5   :  { %373 = vst [vmem:[%s492_s2 + $0x18] sm:$0xff] %v349_v27   ;;  %377 = vst [vmem:[%s492_s2 + $0x38] sm:$0xff] %v369_v28   ;;  %v344_v31 = vpack.c.bf16 %v154_v29, %v151_v23  ;;  %v364_v32 = vpack.c.bf16 %v186_v30, %v183_v24 }
  0xd7   :  { %372 = vst [vmem:[%s492_s2 + $0x10] sm:$0xff] %v344_v31   ;;  %376 = vst [vmem:[%s492_s2 + $0x30] sm:$0xff] %v364_v32  }

// kernel: forward.17
= control target key start
LH: loop header
LB: loop body
LE: loop exit
PB: predicated region body
PF: predicated region fallthrough
CT: control target
= control target key end

     0   :  { %v170_v0 = vmov 0.0   ;;  %vm171_vm0 = vmmov 0   ;;  %s217_s1 = inlined_call_operand.vmem [shape: bf16[128,128], index: 1, kind: input, shape index: {}]   ;;  %s218_s0 = inlined_call_operand.vmem [shape: f32[2,128], index: 0, kind: input, shape index: {}]   ;;  %s219_s2 = inlined_call_operand.vmem [shape: f32[2,128], index: 2, kind: output, shape index: {}]  }
   0x1   :  { %140 = vmatprep.subr.bf16.mxu0 %v170_v0  ;;  %v162_v1 = vld [vmem:[%s217_s1 + $0x38] sm:$0xff]   ;;  %156 = vmatprep.mubr.msk.bf16.mxu0 %vm171_vm0, %v170_v0  ;;  %v163_v2 = vld [vmem:[%s217_s1 + $0x30] sm:$0xff]   ;;  %v164_v3 = vld [vmem:[%s217_s1 + $0x28] sm:$0xff]  }
   0x2   :  { %141 = vmatpush3.bf16.msra.mxu0 %v162_v1  ;;  %v165_v4 = vld [vmem:[%s217_s1 + $0x20] sm:$0xff]   ;;  %v166_v5 = vld [vmem:[%s217_s1 + $0x18] sm:$0xff]   ;;  %v167_v6 = vld [vmem:[%s217_s1 + $0x10] sm:$0xff]  }
   0x3   :  { %142 = vmatprep.subr.bf16.mxu0 %v170_v0  ;;  %v168_v7 = vld [vmem:[%s217_s1 + $0x8] sm:$0xff]   ;;  %v169_v8 = vld [vmem:[%s217_s1] sm:$0xff]  }
   0x4   :  { %v12_v9 = vld [vmem:[%s218_s0] sm:$0x3] }
   0x5   :  { %v13_v10 = vpack.c.bf16 %v12_v9, %v12_v9 }
   0x6   :  { %143 = vmatpush3.bf16.msra.mxu0 %v163_v2 }
   0x7   :  { %144 = vmatprep.subr.bf16.mxu0 %v170_v0 }
   0xa   :  { %145 = vmatpush3.bf16.msra.mxu0 %v164_v3 }
   0xb   :  { %146 = vmatprep.subr.bf16.mxu0 %v170_v0 }
   0xe   :  { %147 = vmatpush3.bf16.msra.mxu0 %v165_v4 }
   0xf   :  { %148 = vmatprep.subr.bf16.mxu0 %v170_v0 }
  0x12   :  { %149 = vmatpush3.bf16.msra.mxu0 %v166_v5 }
  0x13   :  { %150 = vmatprep.subr.bf16.mxu0 %v170_v0 }
  0x16   :  { %151 = vmatpush3.bf16.msra.mxu0 %v167_v6 }
  0x17   :  { %152 = vmatprep.subr.bf16.mxu0 %v170_v0 }
  0x1a   :  { %153 = vmatpush3.bf16.msra.mxu0 %v168_v7 }
  0x1b   :  { %154 = vmatprep.subr.bf16.mxu0 %v170_v0 }
  0x1e   :  { %155 = vmatpush3.bf16.msra.mxu0 %v169_v8 }
  0x21   :  { %157 = vmatmul.mubr.bf16.vlgmr.msra.gmra.mxu0 %v13_v10 }
  0xe1   :  { %v112_v11 = vpop.f32.mrf.mxu0 }
  0xe2   :  { %v113_v12 = vadd.f32 1.0, %v112_v11 }
  0xe3   :  { %v158_v13 = vpop.f32.mrf.mxu0 }
  0xe4   :  { %118 = vst [vmem:[%s219_s2] sm:$0x3] %v113_v12 }
  0xe5   :  { %v115_v14 = vpop.f32.mrf.mxu0 }
  0xe7   :  { %v159_v15 = vpop.f32.mrf.mxu0 }

// kernel: forward.18
= control target key start
LH: loop header
LB: loop body
LE: loop exit
PB: predicated region body
PF: predicated region fallthrough
CT: control target
= control target key end

     0   :  { %s1057_s12 = smov 0   ;;  %s1059_s13 = smov 0   ;;  %s1232_s0 = inlined_call_operand.vmem [shape: bf16[2,64,128], index: 0, kind: input, shape index: {}]   ;;  %s1233_s1 = inlined_call_operand.vmem [shape: f32[2,1,128], index: 1, kind: input, shape index: {}]   ;;  %s1234_s2 = inlined_call_operand.vmem [shape: bf16[128,384], index: 2, kind: input, shape index: {}]   ;;  %s1235_s3 = inlined_call_operand.vmem [shape: bf16[2,64,384], index: 3, kind: output, shape index: {}]  }
   0x1   :  { %s1061_s14 = smov 0  }
   0x2 LB: > { %s25_s15 = sadd.s32 1, %s1030_s13  ;;  %p819_p0 = scmp.ge.s32.totalorder %s1034_s14, 1  ;;  %s1034_s14 = sphi %s1061_s14, %s13_s14   ;;  %s1030_s13 = sphi %s1059_s13, %s1237_s13   ;;  %s1026_s12 = sphi %s1057_s12, %s1236_s12  }
   0x3   : > { %p27_p1 = scmp.ge.s32.totalorder %s25_s15, 2  ;;  %p166_p2 = scmp.lt.s32.totalorder %s1034_s14, 3 }
   0x5   : > { %s1239_s15 = smov (%p27_p1, %s25_s15), 0  ;;  %p167_p3 = pnand %p819_p0, %p166_p2 }
   0x6   : > { %p203_p4 = scmp.lt.s32.totalorder (!%p167_p3), %s1026_s12, 1 }
   0x7   : > { %170 = sbr.rel (%p167_p3) target bundleno = 412 (0x19c), region = 32 }
   0xc   : > { %v964_v0 = vld [vmem:[%s1234_s2 + $0xac] ss:$12 sps:$4 sm:$0xff]   ;;  %v966_v1 = vld [vmem:[%s1234_s2 + $0xa8] ss:$12 sps:$4 sm:$0xff]   ;;  %s1241_s12 = smov (!%p203_p4, %s1026_s12), 1  ;;  %v1036_v42 = vmov 0  }
   0xd   : > { %479 = vmatprep.subr.bf16.mxu0 %v964_v0  ;;  %v967_v2 = vld [vmem:[%s1234_s2 + $0xb0] ss:$12 sps:$4 sm:$0xff]   ;;  %s866_s22 = sshll.u32 %s1241_s12, 5  ;;  %v968_v23 = vld [vmem:[%s1234_s2 + $0x94] ss:$12 sps:$4 sm:$0xff]   ;;  %511 = vmatprep.mubr.bf16.mxu0 %v1036_v42  ;;  %s214_s24 = scalar_lea.vmem %s1233_s1, %s1241_s12 }
   0xe   : > { %480 = vmatpush1.bf16.msra.mxu0 %v966_v1  ;;  %914 = vmatprep.subr.bf16.mxu1 %v967_v2  ;;  %s210_s25 = scalar_lea.vmem %s1232_s0, %s866_s22  ;;  %v970_v24 = vld [vmem:[%s1234_s2 + $0x90] ss:$12 sps:$4 sm:$0xff]   ;;  %v971_v25 = vld [vmem:[%s1234_s2 + $0x98] ss:$12 sps:$4 sm:$0xff]   ;;  %v975_v28 = vld [vmem:[%s1234_s2 + $0x80] ss:$12 sps:$4 sm:$0xff]  }
   0xf   : > { %915 = vmatpush3.bf16.msra.mxu1 %v967_v2  ;;  %v884_v3 = vld [vmem:[%s210_s25] sm:$0xff]   ;;  %v899_v4 = vld [vmem:[%s210_s25 + $0x8] sm:$0xff]   ;;  %v900_v9 = vld [vmem:[%s210_s25 + $0x10] sm:$0xff]   ;;  %481 = vmatprep.subr.bf16.mxu0 %v968_v23 }
  0x10   : > { %v1090_v5 = vunpack.c.l.bf16 %v884_v3  ;;  %v1092_v6 = vunpack.c.l.bf16 %v899_v4  ;;  %v1094_v7 = vunpack.c.h.bf16 %v884_v3  ;;  %v1096_v8 = vunpack.c.h.bf16 %v899_v4  ;;  %v901_v12 = vld [vmem:[%s210_s25 + $0x18] sm:$0xff]   ;;  %916 = vmatprep.subr.bf16.mxu1 %v971_v25  ;;  %v976_v29 = vld [vmem:[%s1234_s2 + $0x64] ss:$12 sps:$4 sm:$0xff]   ;;  %v978_v30 = vld [vmem:[%s1234_s2 + $0x60] ss:$12 sps:$4 sm:$0xff]   ;;  %s938_s25 = smul.u32 96, %s1241_s12 }
  0x11   : > { %v1106_v15 = vunpack.c.h.bf16 %v900_v9  ;;  %v1108_v16 = vunpack.c.l.bf16 %v900_v9  ;;  %v1114_v19 = vunpack.c.h.bf16 %v901_v12  ;;  %v1116_v20 = vunpack.c.l.bf16 %v901_v12  ;;  %v972_v26 = vld [vmem:[%s1234_s2 + $0x7c] ss:$12 sps:$4 sm:$0xff]   ;;  %v974_v27 = vld [vmem:[%s1234_s2 + $0x78] ss:$12 sps:$4 sm:$0xff]   ;;  %v984_v35 = vld [vmem:[%s1234_s2 + $0x34] ss:$12 sps:$4 sm:$0xff]  }
  0x12   : > { %v243_v10 = vmul.f32 %v1090_v5, %v1090_v5  ;;  %v245_v11 = vmul.f32 %v1092_v6, %v1092_v6  ;;  %v244_v13 = vmul.f32 %v1094_v7, %v1094_v7  ;;  %v246_v14 = vmul.f32 %v1096_v8, %v1096_v8  ;;  %482 = vmatpush1.bf16.msra.mxu0 %v970_v24  ;;  %v979_v31 = vld [vmem:[%s1234_s2 + $0x68] ss:$12 sps:$4 sm:$0xff]   ;;  %v980_v32 = vld [vmem:[%s1234_s2 + $0x4c] ss:$12 sps:$4 sm:$0xff]   ;;  %v983_v34 = vld [vmem:[%s1234_s2 + $0x50] ss:$12 sps:$4 sm:$0xff]   ;;  %s1205_s28 = scalar_lea.vmem %s1235_s3, %s938_s25 }
  0x13   : > { %v248_v17 = vmul.f32 %v1106_v15, %v1106_v15  ;;  %v247_v18 = vmul.f32 %v1108_v16, %v1108_v16  ;;  %v250_v21 = vmul.f32 %v1114_v19, %v1114_v19  ;;  %v249_v22 = vmul.f32 %v1116_v20, %v1116_v20  ;;  %917 = vmatpush3.bf16.msra.mxu1 %v971_v25  ;;  %v982_v33 = vld [vmem:[%s1234_s2 + $0x48] ss:$12 sps:$4 sm:$0xff]   ;;  %v987_v36 = vld [vmem:[%s1234_s2 + $0x38] ss:$12 sps:$4 sm:$0xff]   ;;  %v986_v37 = vld [vmem:[%s1234_s2 + $0x30] ss:$12 sps:$4 sm:$0xff]  }
  0x14   : > { %251 = vadd.xlane.f32.xlu0 %v243_v10  ;;  %255 = vadd.xlane.f32.xlu1 %v245_v11  ;;  %v988_v38 = vld [vmem:[%s1234_s2 + $0x1c] ss:$12 sps:$4 sm:$0xff]   ;;  %v991_v39 = vld [vmem:[%s1234_s2 + $0x20] ss:$12 sps:$4 sm:$0xff]   ;;  %v990_v40 = vld [vmem:[%s1234_s2 + $0x18] ss:$12 sps:$4 sm:$0xff]  }
  0x15   : > { %483 = vmatprep.subr.bf16.mxu0 %v972_v26  ;;  %918 = vmatprep.subr.bf16.mxu1 %v975_v28  ;;  %v992_v41 = vld [vmem:[%s1234_s2 + $0x4] ss:$12 sps:$4 sm:$0xff]   ;;  %v995_v43 = vld [vmem:[%s1234_s2 + $0x8] ss:$12 sps:$4 sm:$0xff]   ;;  %v994_v44 = vld [vmem:[%s1234_s2] ss:$12 sps:$4 sm:$0xff]  }
  0x16   : > { %484 = vmatpush1.bf16.msra.mxu0 %v974_v27 }
  0x17   : > { %919 = vmatpush3.bf16.msra.mxu1 %v975_v28  ;;  %485 = vmatprep.subr.bf16.mxu0 %v976_v29 }
  0x18   : > { %253 = vadd.xlane.f32.xlu0 %v244_v13  ;;  %257 = vadd.xlane.f32.xlu1 %v246_v14  ;;  %v823_v14 = vld [vmem:[%s214_s24] ss:$0 sm:$0xff] }
  0x19   : > { %920 = vmatprep.subr.bf16.mxu1 %v979_v31 }
  0x1a   : > { %486 = vmatpush1.bf16.msra.mxu0 %v978_v30 }
  0x1b   : > { %921 = vmatpush3.bf16.msra.mxu1 %v979_v31  ;;  %487 = vmatprep.subr.bf16.mxu0 %v980_v32 }
  0x1c   : > { %261 = vadd.xlane.f32.xlu1 %v248_v17  ;;  %259 = vadd.xlane.f32.xlu0 %v247_v18 }
  0x1d   : > { %922 = vmatprep.subr.bf16.mxu1 %v983_v34 }
  0x1e   : > { %488 = vmatpush1.bf16.msra.mxu0 %v982_v33 }
  0x1f   : > { %489 = vmatprep.subr.bf16.mxu0 %v984_v35  ;;  %923 = vmatpush3.bf16.msra.mxu1 %v983_v34 }
  0x20   : > { %265 = vadd.xlane.f32.xlu1 %v250_v21  ;;  %263 = vadd.xlane.f32.xlu0 %v249_v22 }
  0x21   : > { %924 = vmatprep.subr.bf16.mxu1 %v987_v36 }
  0x22   : > { %490 = vmatpush1.bf16.msra.mxu0 %v986_v37 }
  0x23   : > { %491 = vmatprep.subr.bf16.mxu0 %v988_v38  ;;  %925 = vmatpush3.bf16.msra.mxu1 %v987_v36 }
  0x24   : > { %926 = vmatprep.subr.bf16.mxu1 %v991_v39 }
  0x26   : > { %492 = vmatpush1.bf16.msra.mxu0 %v990_v40 }
  0x27   : > { %493 = vmatprep.subr.bf16.mxu0 %v992_v41  ;;  %927 = vmatpush3.bf16.msra.mxu1 %v991_v39 }
  0x28   : > { %928 = vmatprep.subr.bf16.mxu1 %v995_v43 }
  0x2a   : > { %494 = vmatpush1.bf16.msra.mxu0 %v994_v44 }
  0x2b   : > { %929 = vmatpush3.bf16.msra.mxu1 %v995_v43 }
  0x9d   : > { %v252_v45 = vpop.xlane.xlu0 %251  ;;  %v256_v46 = vpop.xlane.xlu1 %255 }
  0x9e   : > { %v268_v47 = vmul.f32 0.0078125, %v252_v45  ;;  %v270_v48 = vmul.f32 0.0078125, %v256_v46 }
  0xa0   : > { %v276_v49 = vadd.f32 1e-06, %v268_v47  ;;  %v278_v50 = vadd.f32 1e-06, %v270_v48 }
  0xa1   : > { %v254_v51 = vpop.xlane.xlu0 %253  ;;  %v258_v52 = vpop.xlane.xlu1 %257 }
  0xa2   : > { %996 = vrsqrt.f32 %v276_v49  ;;  %v269_v53 = vmul.f32 0.0078125, %v254_v51  ;;  %v271_v54 = vmul.f32 0.0078125, %v258_v52 }
  0xa3   : > { %998 = vrsqrt.f32 %v278_v50 }
  0xa4   : > { %v277_v55 = vadd.f32 1e-06, %v269_v53  ;;  %v279_v56 = vadd.f32 1e-06, %v271_v54 }
  0xa5   : > { %v262_v57 = vpop.xlane.xlu1 %261  ;;  %v260_v58 = vpop.xlane.xlu0 %259 }
  0xa6   : > { %1000 = vrsqrt.f32 %v277_v55  ;;  %v273_v59 = vmul.f32 0.0078125, %v262_v57  ;;  %v272_v60 = vmul.f32 0.0078125, %v260_v58 }
  0xa7   : > { %1002 = vrsqrt.f32 %v279_v56 }
  0xa8   : > { %v281_v61 = vadd.f32 1e-06, %v273_v59  ;;  %v280_v62 = vadd.f32 1e-06, %v272_v60 }
  0xa9   : > { %v266_v63 = vpop.xlane.xlu1 %265  ;;  %v264_v0 = vpop.xlane.xlu0 %263 }
  0xaa   : > { %1004 = vrsqrt.f32 %v281_v61  ;;  %v275_v1 = vmul.f32 0.0078125, %v266_v63  ;;  %v274_v2 = vmul.f32 0.0078125, %v264_v0 }
  0xab   : > { %1006 = vrsqrt.f32 %v280_v62 }
  0xac   : > { %v283_v3 = vadd.f32 1e-06, %v275_v1  ;;  %v282_v4 = vadd.f32 1e-06, %v274_v2 }
  0xae   : > { %1008 = vrsqrt.f32 %v283_v3 }
  0xaf   : > { %v997_v9 = vpop.eup %996  ;;  %1010 = vrsqrt.f32 %v282_v4 }
  0xb0   : > { %v999_v10 = vpop.eup %998  ;;  %v292_v12 = vmul.f32 %v997_v9, %v1090_v5 }
  0xb1   : > { %v294_v11 = vmul.f32 %v999_v10, %v1092_v6 }
  0xb2   : > { %v307_v23 = vmul.f32 %v823_v14, %v292_v12 }
  0xb3   : > { %v1001_v13 = vpop.eup %1000  ;;  %v309_v22 = vmul.f32 %v823_v14, %v294_v11 }
  0xb4   : > { %v1003_v17 = vpop.eup %1002  ;;  %v293_v18 = vmul.f32 %v1001_v13, %v1094_v7 }
  0xb5   : > { %v295_v21 = vmul.f32 %v1003_v17, %v1096_v8 }
  0xb6   : > { %v308_v24 = vmul.f32 %v823_v14, %v293_v18 }
  0xb7   : > { %v1005_v25 = vpop.eup %1004  ;;  %v310_v26 = vmul.f32 %v823_v14, %v295_v21 }
  0xb8   : > { %v1007_v27 = vpop.eup %1006  ;;  %v315_v28 = vpack.c.bf16 %v308_v24, %v307_v23  ;;  %v297_v29 = vmul.f32 %v1005_v25, %v1106_v15 }
  0xb9   : > { %v316_v30 = vpack.c.bf16 %v310_v26, %v309_v22  ;;  %v296_v6 = vmul.f32 %v1007_v27, %v1108_v16 }
  0xba   : > { %512 = vmatmul.mubr.bf16.vlgmr.msra.gmra.mxu0 %v315_v28  ;;  %930 = vmatprep.mubr.bf16.mxu1 %v315_v28  ;;  %v312_v5 = vmul.f32 %v823_v14, %v297_v29 }
  0xbb   : > { %v1009_v31 = vpop.eup %1008  ;;  %931 = vmatmul.mubr.bf16.vlgmr.msra.gmra.mxu1 %v316_v30  ;;  %521 = vmatprep.mubr.bf16.mxu0 %v1036_v42  ;;  %v311_v7 = vmul.f32 %v823_v14, %v296_v6 }
  0xbc   : > { %v1011_v8 = vpop.eup %1010  ;;  %v299_v32 = vmul.f32 %v1009_v31, %v1114_v19 }
  0xbd   : > { %v317_v33 = vpack.c.bf16 %v312_v5, %v311_v7  ;;  %v298_v34 = vmul.f32 %v1011_v8, %v1116_v20 }
  0xbe   : > { %v314_v35 = vmul.f32 %v823_v14, %v299_v32 }
  0xbf   : > { %934 = vmatprep.mubr.bf16.mxu1 %v317_v33  ;;  %v313_v15 = vmul.f32 %v823_v14, %v298_v34 }
  0xc1   : > { %v318_v36 = vpack.c.bf16 %v314_v35, %v313_v15 }
  0xc2   : > { %522 = vmatmul.mubr.bf16.gmra.mxu0 %v316_v30 }
  0xc3   : > { %531 = vmatprep.mubr.bf16.mxu0 %v1036_v42  ;;  %935 = vmatmul.mubr.bf16.gmra.mxu1 %v318_v36 }
  0xca   : > { %532 = vmatmul.mubr.bf16.gmra.mxu0 %v317_v33 }
  0xcb   : > { %541 = vmatprep.mubr.bf16.mxu0 %v1036_v42 }
  0xd2   : > { %542 = vmatmul.mubr.bf16.gmra.mxu0 %v318_v36 }
 0x17a   : > { %v513_v16 = vpop.f32.mrf.mxu0 }
 0x17b   : > { %v932_v37 = vpop.f32.mrf.mxu1 }
 0x17c   : > { %v872_v19 = vpack.c.bf16 %v932_v37, %v932_v37  ;;  %v515_v20 = vpop.f32.mrf.mxu0 }
 0x17d   : > { %v867_v38 = vpack.c.bf16 %v515_v20, %v513_v16  ;;  %v586_v39 = vpop.f32.mrf.mxu1 }
 0x17e   : > { %702 = vst [vmem:[%s1205_s28 + $0x20] sm:$0xf] %v872_v19  ;;  %v868_v40 = vpack.c.bf16 %v586_v39, %v586_v39  ;;  %v517_v41 = vpop.f32.mrf.mxu0 }
 0x17f   : > { %697 = vst [vmem:[%s1205_s28] sm:$0xff] %v867_v38  ;;  %v933_v42 = vpop.f32.mrf.mxu1 }
 0x180   : > { %698 = vst [vmem:[%s1205_s28 + $0x8] sm:$0xf] %v868_v40  ;;  %v874_v43 = vpack.c.bf16 %v933_v42, %v933_v42  ;;  %v519_v44 = vpop.f32.mrf.mxu0 }
 0x181   : > { %v869_v45 = vpack.c.bf16 %v519_v44, %v517_v41  ;;  %v589_v46 = vpop.f32.mrf.mxu1 }
 0x182   : > { %704 = vst [vmem:[%s1205_s28 + $0x2c] sm:$0xf] %v874_v43  ;;  %v870_v47 = vpack.c.bf16 %v589_v46, %v589_v46  ;;  %v523_v48 = vpop.f32.mrf.mxu0 }
 0x183   : > { %699 = vst [vmem:[%s1205_s28 + $0xc] sm:$0xff] %v869_v45  ;;  %v936_v49 = vpop.f32.mrf.mxu1 }
 0x184   : > { %700 = vst [vmem:[%s1205_s28 + $0x14] sm:$0xf] %v870_v47  ;;  %v525_v50 = vpop.f32.mrf.mxu0  ;;  %v880_v51 = vpack.c.bf16 %v936_v49, %v936_v49 }
 0x185   : > { %v871_v52 = vpack.c.bf16 %v525_v50, %v523_v48  ;;  %v602_v53 = vpop.f32.mrf.mxu1 }
 0x186   : > { %v527_v54 = vpop.f32.mrf.mxu0  ;;  %710 = vst [vmem:[%s1205_s28 + $0x50] sm:$0xf] %v880_v51  ;;  %v876_v55 = vpack.c.bf16 %v602_v53, %v602_v53 }
 0x187   : > { %701 = vst [vmem:[%s1205_s28 + $0x18] sm:$0xff] %v871_v52  ;;  %v937_v56 = vpop.f32.mrf.mxu1 }
 0x188   : > { %v529_v57 = vpop.f32.mrf.mxu0  ;;  %706 = vst [vmem:[%s1205_s28 + $0x38] sm:$0xf] %v876_v55  ;;  %v882_v58 = vpack.c.bf16 %v937_v56, %v937_v56 }
 0x189   : > { %v873_v59 = vpack.c.bf16 %v529_v57, %v527_v54  ;;  %v605_v60 = vpop.f32.mrf.mxu1 }
 0x18a   : > { %v533_v61 = vpop.f32.mrf.mxu0  ;;  %712 = vst [vmem:[%s1205_s28 + $0x5c] sm:$0xf] %v882_v58  ;;  %v878_v62 = vpack.c.bf16 %v605_v60, %v605_v60 }
 0x18b   : > { %703 = vst [vmem:[%s1205_s28 + $0x24] sm:$0xff] %v873_v59 }
 0x18c   : > { %v535_v63 = vpop.f32.mrf.mxu0  ;;  %708 = vst [vmem:[%s1205_s28 + $0x44] sm:$0xf] %v878_v62 }
 0x18d   : > { %v875_v0 = vpack.c.bf16 %v535_v63, %v533_v61 }
 0x18e   : > { %v537_v1 = vpop.f32.mrf.mxu0 }
 0x18f   : > { %705 = vst [vmem:[%s1205_s28 + $0x30] sm:$0xff] %v875_v0 }
 0x190   : > { %v539_v2 = vpop.f32.mrf.mxu0 }
 0x191   : > { %v877_v3 = vpack.c.bf16 %v539_v2, %v537_v1 }
 0x192   : > { %v543_v4 = vpop.f32.mrf.mxu0 }
 0x193   : > { %707 = vst [vmem:[%s1205_s28 + $0x3c] sm:$0xff] %v877_v3 }
 0x194   : > { %v545_v9 = vpop.f32.mrf.mxu0 }
 0x195   : > { %v879_v10 = vpack.c.bf16 %v545_v9, %v543_v4 }
 0x196   : > { %v547_v11 = vpop.f32.mrf.mxu0 }
 0x197   : > { %709 = vst [vmem:[%s1205_s28 + $0x48] sm:$0xff] %v879_v10 }
 0x198   : > { %v549_v12 = vpop.f32.mrf.mxu0 }
 0x199   : > { %v881_v13 = vpack.c.bf16 %v549_v12, %v547_v11 }
 0x19b   : > { %711 = vst [vmem:[%s1205_s28 + $0x54] sm:$0xff] %v881_v13 }
 0x19c PF: > { %s13_s14 = sadd.s32 1, %s1034_s14   ;;  %s1236_s12 = smov %s1030_s13 }
 0x19d   : > { %p10_p5 = scmp.ge.s32.totalorder %s13_s14, 4   ;;  %s1237_s13 = smov %s1239_s15 }
 0x19f   :  { %12 = sbr.rel (!%p10_p5) target bundleno = 2 (0x2), region = 65 }

// kernel: forward.19
= control target key start
LH: loop header
LB: loop body
LE: loop exit
PB: predicated region body
PF: predicated region fallthrough
CT: control target
= control target key end

     0   :  { %s1330_s12 = smov 0   ;;  %s1332_s13 = smov 0   ;;  %s1601_s0 = inlined_call_operand.vmem [shape: bf16[8,64,32], index: 0, kind: input, shape index: {}]   ;;  %s1602_s1 = inlined_call_operand.vmem [shape: bf16[8,64,32], index: 1, kind: input, shape index: {}]   ;;  %s1603_s2 = inlined_call_operand.vmem [shape: bf16[8,64,32], index: 2, kind: input, shape index: {}]   ;;  %s1604_s3 = inlined_call_operand.vmem [shape: bf16[8,64,32], index: 3, kind: output, shape index: {}]  }
   0x1   :  { %s1334_s14 = smov 0  }
   0x2 LB: > { %s32_s15 = sadd.s32 1, %s1301_s13  ;;  %p1091_p0 = scmp.ge.s32.totalorder %s1305_s14, 1  ;;  %s1305_s14 = sphi %s1334_s14, %s13_s14   ;;  %s1301_s13 = sphi %s1332_s13, %s1606_s13   ;;  %s1297_s12 = sphi %s1330_s12, %s1605_s12  }
   0x3   : > { %p34_p1 = scmp.ge.s32.totalorder %s32_s15, 8  ;;  %p199_p2 = scmp.lt.s32.totalorder %s1305_s14, 9 }
   0x5   : > { %s1608_s15 = smov (%p34_p1, %s32_s15), 0  ;;  %p200_p3 = pnand %p1091_p0, %p199_p2 }
   0x6   : > { %p250_p4 = scmp.lt.s32.totalorder (!%p200_p3), %s1297_s12, 7 }
   0x7   : > { %203 = sbr.rel (%p200_p3) target bundleno = 843 (0x34b), region = 32 }
   0xc   : > { %s1610_s12 = smov (!%p250_p4, %s1297_s12), 7  ;;  %vm311_vm0 = vcmask 261120   ;;  %vm294_vm1 = vcmask 7168   ;;  %v1307_v12 = vmov -1e+30   ;;  %vm482_vm2 = vcmask 523264  }
   0xd   : > { %s1348_s16 = sshll.u32 %s1610_s12, 5  ;;  %297 = vst.msk [vmem:[#allocation2 + $0x10] sm:$0xff] %vm294_vm1, %v1307_v12  ;;  %295 = vst.msk [vmem:[#allocation2] sm:$0xff] %vm294_vm1, %v1307_v12  ;;  %v1308_v25 = vmov 0   ;;  %v1309_v30 = vmov 0.0   ;;  %vm952_vm3 = vcmask 257024  }
   0xe   : > { %s267_s19 = scalar_lea.vmem %s1602_s1, %s1348_s16  ;;  %s257_s22 = scalar_lea.vmem %s1601_s0, %s1348_s16  ;;  %296 = vst.msk [vmem:[#allocation2 + $0x8] sm:$0xff] %vm294_vm1, %v1307_v12  ;;  %298 = vst.msk [vmem:[#allocation2 + $0x18] sm:$0xff] %vm294_vm1, %v1307_v12  ;;  %1222 = vset.pattern.permute.xlu1 %v1308_v25  ;;  %1221 = vset.pattern.permute.xlu0 %v1308_v25 }
   0xf   : > { %v1223_v0 = vld [vmem:[%s267_s19 + $0x18] sm:$0xff]   ;;  %v1224_v1 = vld [vmem:[%s267_s19 + $0x10] sm:$0xff]   ;;  %v1227_v3 = vld [vmem:[%s257_s22] sm:$0xff]   ;;  %299 = vst.msk [vmem:[#allocation2 + $0x20] sm:$0xff] %vm294_vm1, %v1307_v12  ;;  %s277_s25 = scalar_lea.vmem %s1603_s2, %s1348_s16  ;;  %s1574_s28 = scalar_lea.vmem %s1604_s3, %s1348_s16 }
  0x10   : > { %1190 = vmatprep.subr.msk.bf16.mxu0 %vm311_vm0, %v1223_v0  ;;  %v407_v2 = vsel %vm311_vm0, %v1223_v0, 0  ;;  %1166 = vmatprep.mubr.msk.bf16.mxu0 %vm311_vm0, %v1227_v3  ;;  %v404_v4 = vsel %vm311_vm0, %v1224_v1, 0  ;;  %v1225_v5 = vld [vmem:[%s267_s19 + $0x8] sm:$0xff]   ;;  %v1226_v7 = vld [vmem:[%s267_s19] sm:$0xff]   ;;  %v1229_v10 = vld [vmem:[%s257_s22 + $0x10] sm:$0xff]   ;;  %300 = vst.msk [vmem:[#allocation2 + $0x28] sm:$0xff] %vm294_vm1, %v1307_v12 }
  0x11   : > { %1159 = vmatpush3.bf16.xpose.msra.mxu0 %v407_v2  ;;  %v401_v6 = vsel %vm311_vm0, %v1225_v5, 0  ;;  %v398_v8 = vsel %vm311_vm0, %v1226_v7, 0  ;;  %v1228_v9 = vld [vmem:[%s257_s22 + $0x8] sm:$0xff]   ;;  %v1230_v11 = vld [vmem:[%s257_s22 + $0x18] sm:$0xff]   ;;  %301 = vst.msk [vmem:[#allocation2 + $0x30] sm:$0xff] %vm294_vm1, %v1307_v12  ;;  %302 = vst.msk [vmem:[#allocation2 + $0x38] sm:$0xff] %vm294_vm1, %v1307_v12 }
  0x12   : > { %1191 = vmatprep.subr.msk.bf16.mxu0 %vm311_vm0, %v1224_v1  ;;  %305 = vst.msk [vmem:[#allocation3 + $0x10] sm:$0xff] %vm294_vm1, %v1309_v30  ;;  %303 = vst.msk [vmem:[#allocation3] sm:$0xff] %vm294_vm1, %v1309_v30  ;;  %v1231_v52 = vld [vmem:[%s277_s25 + $0x18] sm:$0xff]   ;;  %v1232_v58 = vld [vmem:[%s277_s25 + $0x10] sm:$0xff]  }
  0x13   : > { %304 = vst.msk [vmem:[#allocation3 + $0x8] sm:$0xff] %vm294_vm1, %v1309_v30  ;;  %306 = vst.msk [vmem:[#allocation3 + $0x18] sm:$0xff] %vm294_vm1, %v1309_v30  ;;  %1174 = vmatprep.subr.bf16.mxu1 %v1231_v52  ;;  %v1233_v0 = vld [vmem:[%s277_s25 + $0x8] sm:$0xff]   ;;  %v1234_v2 = vld [vmem:[%s277_s25] sm:$0xff]  }
  0x14   : > { %307 = vst.msk [vmem:[#allocation3 + $0x20] sm:$0xff] %vm294_vm1, %v1309_v30  ;;  %308 = vst.msk [vmem:[#allocation3 + $0x28] sm:$0xff] %vm294_vm1, %v1309_v30  ;;  %v1426_v31 = vld [vmem:[#allocation2 + $0x10] sm:$0xff]  ;;  %v1428_v33 = vld [vmem:[#allocation2] sm:$0xff]  ;;  %1175 = vmatpush3.bf16.msra.mxu1 %v1231_v52 }
  0x15   : > { %309 = vst.msk [vmem:[#allocation3 + $0x30] sm:$0xff] %vm294_vm1, %v1309_v30  ;;  %310 = vst.msk [vmem:[#allocation3 + $0x38] sm:$0xff] %vm294_vm1, %v1309_v30  ;;  %v1433_v36 = vld [vmem:[#allocation2 + $0x18] sm:$0xff]  ;;  %v1443_v40 = vld [vmem:[#allocation2 + $0x8] sm:$0xff]  ;;  %1176 = vmatprep.subr.bf16.mxu1 %v1232_v58 }
  0x16   : > { %312 = vst.msk [vmem:[#allocation4] sm:$0xff] %vm311_vm0, %v1309_v30  ;;  %313 = vst.msk [vmem:[#allocation4 + $0x8] sm:$0xff] %vm311_vm0, %v1309_v30  ;;  %v1461_v46 = vld [vmem:[#allocation2 + $0x20] sm:$0xff] }
  0x17   : > { %314 = vst.msk [vmem:[#allocation4 + $0x10] sm:$0xff] %vm311_vm0, %v1309_v30  ;;  %315 = vst.msk [vmem:[#allocation4 + $0x18] sm:$0xff] %vm311_vm0, %v1309_v30  ;;  %v1477_v51 = vld [vmem:[#allocation2 + $0x28] sm:$0xff] }
  0x18   : > { %316 = vst.msk [vmem:[#allocation4 + $0x20] sm:$0xff] %vm311_vm0, %v1309_v30  ;;  %317 = vst.msk [vmem:[#allocation4 + $0x28] sm:$0xff] %vm311_vm0, %v1309_v30  ;;  %v1467_v49 = vld [vmem:[#allocation2 + $0x30] sm:$0xff]  ;;  %v1489_v59 = vld [vmem:[#allocation2 + $0x38] sm:$0xff]  ;;  %1177 = vmatpush3.bf16.msra.mxu1 %v1232_v58 }
  0x19   : > { %1161 = vmatpush3.bf16.xpose.msra.mxu0 %v404_v4  ;;  %318 = vst.msk [vmem:[#allocation4 + $0x30] sm:$0xff] %vm311_vm0, %v1309_v30  ;;  %319 = vst.msk [vmem:[#allocation4 + $0x38] sm:$0xff] %vm311_vm0, %v1309_v30  ;;  %1178 = vmatprep.subr.bf16.mxu1 %v1233_v0 }
  0x1a   : > { %1192 = vmatprep.subr.msk.bf16.mxu0 %vm311_vm0, %v1225_v5 }
  0x1c   : > { %1179 = vmatpush3.bf16.msra.mxu1 %v1233_v0 }
  0x1d   : > { %1180 = vmatprep.subr.bf16.mxu1 %v1234_v2 }
  0x20   : > { %1181 = vmatpush3.bf16.msra.mxu1 %v1234_v2 }
  0x21   : > { %1163 = vmatpush3.bf16.xpose.msra.mxu0 %v401_v6 }
  0x22   : > { %1193 = vmatprep.subr.msk.bf16.mxu0 %vm311_vm0, %v1226_v7 }
  0x29   : > { %1165 = vmatpush3.bf16.xpose.msra.mxu0 %v398_v8 }
  0x30   : > { %1167 = vmatmul.mubr.msk.bf16.vlgmr.msra.gmra.mxu0 %vm311_vm0, %v1228_v9 }
  0x31   : > { %1170 = vmatprep.mubr.msk.bf16.mxu0 %vm311_vm0, %v1229_v10 }
  0x38   : > { %1171 = vmatmul.mubr.msk.bf16.gmra.mxu0 %vm311_vm0, %v1230_v11 }
  0xf0   : > { %v1378_v13 = vpop.f32.mrf.mxu0 }
  0xf1   : > { %v489_v14 = vsel %vm482_vm2, %v1378_v13, -inf }
  0xf2   : > { %490 = vmax.xlane.f32.xlu1 %v489_v14  ;;  %v1382_v15 = vpop.f32.mrf.mxu0 }
  0xf3   : > { %v483_v16 = vsel %vm482_vm2, %v1382_v15, -inf }
  0xf4   : > { %484 = vmax.xlane.f32.xlu0 %v483_v16  ;;  %v1386_v17 = vpop.f32.mrf.mxu0 }
  0xf5   : > { %v492_v18 = vsel %vm482_vm2, %v1386_v17, -inf }
  0xf6   : > { %493 = vmax.xlane.f32.xlu1 %v492_v18  ;;  %v1390_v19 = vpop.f32.mrf.mxu0 }
  0xf7   : > { %v486_v20 = vsel %vm482_vm2, %v1390_v19, -inf }
  0xf8   : > { %487 = vmax.xlane.f32.xlu0 %v486_v20  ;;  %v1394_v21 = vpop.f32.mrf.mxu0 }
  0xf9   : > { %v501_v27 = vsel %vm482_vm2, %v1394_v21, -inf }
  0xfa   : > { %v1396_v22 = vpop.f32.mrf.mxu0 }
  0xfb   : > { %v495_v23 = vsel %vm482_vm2, %v1396_v22, -inf }
  0xfc   : > { %496 = vmax.xlane.f32.xlu0 %v495_v23  ;;  %v1400_v24 = vpop.f32.mrf.mxu0 }
  0xfd   : > { %v504_v29 = vsel %vm482_vm2, %v1400_v24, -inf }
  0xfe   : > { %v1402_v26 = vpop.f32.mrf.mxu0 }
  0xff   : > { %v498_v28 = vsel %vm482_vm2, %v1402_v26, -inf }
 0x100   : > { %502 = vmax.xlane.f32.xlu0 %v501_v27  ;;  %499 = vmax.xlane.f32.xlu1 %v498_v28 }
 0x104   : > { %505 = vmax.xlane.f32.xlu1 %v504_v29 }
 0x17b   : > { %v491_v32 = vpop.xlane.xlu1 %490 }
 0x17c   : > { %v1431_v34 = vmax.f32 %v1426_v31, %v491_v32 }
 0x17d   : > { %v485_v35 = vpop.xlane.xlu0 %484 }
 0x17e   : > { %v517_v37 = vsub.f32 %v1426_v31, %v1431_v34  ;;  %839 = vst.msk [vmem:[#allocation2 + $0x10] sm:$0xff] %vm294_vm1, %v1431_v34  ;;  %v1440_v38 = vmax.f32 %v1428_v33, %v485_v35  ;;  %551 = vperm.xlu1 %1222, %v1431_v34  }
 0x17f   : > { %v494_v39 = vpop.xlane.xlu1 %493 }
 0x180   : > { %v515_v41 = vsub.f32 %v1428_v33, %v1440_v38  ;;  %837 = vst.msk [vmem:[#allocation2] sm:$0xff] %vm294_vm1, %v1440_v38  ;;  %v1450_v42 = vmax.f32 %v1433_v36, %v494_v39  ;;  %541 = vperm.xlu0 %1221, %v1440_v38  }
 0x181   : > { %v488_v43 = vpop.xlane.xlu0 %487 }
 0x182   : > { %v518_v44 = vsub.f32 %v1433_v36, %v1450_v42  ;;  %840 = vst.msk [vmem:[#allocation2 + $0x18] sm:$0xff] %vm294_vm1, %v1450_v42  ;;  %v1458_v45 = vmax.f32 %v1443_v40, %v488_v43  ;;  %556 = vperm.xlu1 %1222, %v1450_v42  }
 0x184   : > { %v516_v47 = vsub.f32 %v1443_v40, %v1458_v45  ;;  %838 = vst.msk [vmem:[#allocation2 + $0x8] sm:$0xff] %vm294_vm1, %v1458_v45  ;;  %v529_v40 = vmul.f32 1.442695, %v518_v44 }
 0x185   : > { %v497_v48 = vpop.xlane.xlu0 %496 }
 0x186   : > { %v1474_v50 = vmax.f32 %v1461_v46, %v497_v48  ;;  %546 = vperm.xlu1 %1222, %v1458_v45  }
 0x188   : > { %v519_v53 = vsub.f32 %v1461_v46, %v1474_v50  ;;  %841 = vst.msk [vmem:[#allocation2 + $0x20] sm:$0xff] %vm294_vm1, %v1474_v50 }
 0x189   : > { %v503_v54 = vpop.xlane.xlu0 %502  ;;  %v500_v55 = vpop.xlane.xlu1 %499 }
 0x18a   : > { %v1484_v56 = vmax.f32 %v1467_v49, %v503_v54  ;;  %v1487_v57 = vmax.f32 %v1477_v51, %v500_v55  ;;  %v531_v45 = vmul.f32 1.442695, %v519_v53 }
 0x18c   : > { %v521_v60 = vsub.f32 %v1467_v49, %v1484_v56  ;;  %843 = vst.msk [vmem:[#allocation2 + $0x30] sm:$0xff] %vm294_vm1, %v1484_v56  ;;  %v520_v61 = vsub.f32 %v1477_v51, %v1487_v57  ;;  %842 = vst.msk [vmem:[#allocation2 + $0x28] sm:$0xff] %vm294_vm1, %v1487_v57  ;;  %571 = vperm.xlu1 %1222, %v1484_v56   ;;  %v605_v49 = vld [vmem:[#allocation3 + $0x10] sm:$0xff] }
 0x18d   : > { %v506_v62 = vpop.xlane.xlu1 %505 }
 0x18e   : > { %v1501_v63 = vmax.f32 %v1489_v59, %v506_v62  ;;  %v533_v33 = vmul.f32 1.442695, %v520_v61  ;;  %v535_v31 = vmul.f32 1.442695, %v521_v60  ;;  %v606_v60 = vld [vmem:[#allocation3 + $0x18] sm:$0xff] }
 0x190   : > { %v522_v1 = vsub.f32 %v1489_v59, %v1501_v63  ;;  %844 = vst.msk [vmem:[#allocation2 + $0x38] sm:$0xff] %vm294_vm1, %v1501_v63  ;;  %561 = vperm.xlu1 %1222, %v1474_v50   ;;  %v603_v50 = vld [vmem:[#allocation3] sm:$0xff] }
 0x192   : > { %v537_v34 = vmul.f32 1.442695, %v522_v1 }
 0x194   : > { %566 = vperm.xlu1 %1222, %v1487_v57  }
 0x198   : > { %576 = vperm.xlu1 %1222, %v1501_v63   ;;  %v604_v63 = vld [vmem:[#allocation3 + $0x8] sm:$0xff] }
 0x1f9   : > { %v552_v3 = vpop.permute.xlu1 %551 }
 0x1fa   : > { %v581_v4 = vsub.f32 %v1378_v13, %v552_v3 }
 0x1fb   : > { %v542_v5 = vpop.permute.xlu0 %541 }
 0x1fc   : > { %v591_v6 = vmul.f32 1.442695, %v581_v4  ;;  %v579_v7 = vsub.f32 %v1382_v15, %v542_v5  ;;  %v525_v5 = vmul.f32 1.442695, %v516_v47 }
 0x1fd   : > { %v557_v8 = vpop.permute.xlu1 %556 }
 0x1fe   : > { %1235 = vpow2.f32 %v591_v6  ;;  %v587_v9 = vmul.f32 1.442695, %v579_v7  ;;  %v582_v10 = vsub.f32 %v1386_v17, %v557_v8  ;;  %v523_v8 = vmul.f32 1.442695, %v515_v41 }
 0x200   : > { %1237 = vpow2.f32 %v587_v9  ;;  %v593_v11 = vmul.f32 1.442695, %v582_v10  ;;  %v527_v9 = vmul.f32 1.442695, %v517_v37 }
 0x201   : > { %v547_v12 = vpop.permute.xlu1 %546 }
 0x202   : > { %1239 = vpow2.f32 %v593_v11  ;;  %v580_v14 = vsub.f32 %v1390_v19, %v547_v12 }
 0x204   : > { %v589_v16 = vmul.f32 1.442695, %v580_v14 }
 0x206   : > { %1241 = vpow2.f32 %v589_v16 }
 0x207   : > { %v572_v18 = vpop.permute.xlu1 %571 }
 0x208   : > { %v585_v13 = vsub.f32 %v1394_v21, %v572_v18 }
 0x20a   : > { %v599_v17 = vmul.f32 1.442695, %v585_v13 }
 0x20b   : > { %v1236_v20 = vpop.eup %1235  ;;  %v562_v23 = vpop.permute.xlu1 %561 }
 0x20c   : > { %v583_v15 = vsub.f32 %v1396_v22, %v562_v23  ;;  %v625_v25 = vsel %vm482_vm2, %v1236_v20, 0.0 }
 0x20d   : > { %v1238_v27 = vpop.eup %1237  ;;  %626 = vadd.xlane.f32.xlu0 %v625_v25 }
 0x20e   : > { %v595_v28 = vmul.f32 1.442695, %v583_v15  ;;  %v619_v29 = vsel %vm482_vm2, %v1238_v27, 0.0 }
 0x20f   : > { %v1240_v30 = vpop.eup %1239  ;;  %620 = vadd.xlane.f32.xlu1 %v619_v29  ;;  %v567_v19 = vpop.permute.xlu1 %566 }
 0x210   : > { %1243 = vpow2.f32 %v595_v28  ;;  %v584_v32 = vsub.f32 %v1402_v26, %v567_v19  ;;  %v628_v35 = vsel %vm482_vm2, %v1240_v30, 0.0  ;;  %v717_v54 = vpack.c.bf16 %v1240_v30, %v1236_v20  ;;  %v607_v20 = vld [vmem:[#allocation3 + $0x20] sm:$0xff] }
 0x211   : > { %1245 = vpow2.f32 %v599_v17  ;;  %v608_v17 = vld [vmem:[#allocation3 + $0x28] sm:$0xff] }
 0x212   : > { %v597_v21 = vmul.f32 1.442695, %v584_v32 }
 0x213   : > { %v1242_v39 = vpop.eup %1241  ;;  %629 = vadd.xlane.f32.xlu1 %v628_v35  ;;  %v577_v22 = vpop.permute.xlu1 %576  ;;  %v610_v35 = vld [vmem:[#allocation3 + $0x38] sm:$0xff] }
 0x214   : > { %1247 = vpow2.f32 %v597_v21  ;;  %v586_v43 = vsub.f32 %v1400_v24, %v577_v22  ;;  %v622_v48 = vsel %vm482_vm2, %v1242_v39, 0.0  ;;  %v716_v52 = vpack.c.bf16 %v1242_v39, %v1238_v27  ;;  %v609_v27 = vld [vmem:[#allocation3 + $0x30] sm:$0xff] }
 0x215   : > { %623 = vadd.xlane.f32.xlu0 %v622_v48 }
 0x216   : > { %v601_v55 = vmul.f32 1.442695, %v586_v43  ;;  %1182 = vmatprep.mubr.msk.bf16.mxu1 %vm482_vm2, %v716_v52 }
 0x217   : > { %1183 = vmatmul.mubr.msk.bf16.vlgmr.msra.gmra.mxu1 %vm482_vm2, %v717_v54 }
 0x218   : > { %1249 = vpow2.f32 %v601_v55 }
 0x219   : > { %1251 = vpow2.f32 %v525_v5 }
 0x21a   : > { %1253 = vpow2.f32 %v523_v8 }
 0x21b   : > { %1255 = vpow2.f32 %v527_v9  ;;  %v662_v9 = vld [vmem:[#allocation4 + $0x10] sm:$0xff] }
 0x21c   : > { %1257 = vpow2.f32 %v529_v40 }
 0x21d   : > { %v1244_v26 = vpop.eup %1243  ;;  %1259 = vpow2.f32 %v531_v45  ;;  %v660_v45 = vld [vmem:[#allocation4] sm:$0xff] }
 0x21e   : > { %v631_v58 = vsel %vm482_vm2, %v1244_v26, 0.0  ;;  %v1246_v62 = vpop.eup %1245  ;;  %1261 = vpow2.f32 %v533_v33 }
 0x21f   : > { %632 = vadd.xlane.f32.xlu0 %v631_v58  ;;  %v637_v2 = vsel %vm482_vm2, %v1246_v62, 0.0  ;;  %1263 = vpow2.f32 %v535_v31  ;;  %v663_v31 = vld [vmem:[#allocation4 + $0x18] sm:$0xff] }
 0x220   : > { %1265 = vpow2.f32 %v537_v34 }
 0x221   : > { %v1248_v0 = vpop.eup %1247 }
 0x222   : > { %v634_v24 = vsel %vm482_vm2, %v1248_v0, 0.0  ;;  %v718_v3 = vpack.c.bf16 %v1248_v0, %v1244_v26 }
 0x223   : > { %638 = vadd.xlane.f32.xlu0 %v637_v2  ;;  %635 = vadd.xlane.f32.xlu1 %v634_v24 }
 0x224   : > { %1186 = vmatprep.mubr.msk.bf16.mxu1 %vm482_vm2, %v718_v3 }
 0x225   : > { %v1250_v4 = vpop.eup %1249 }
 0x226   : > { %v640_v6 = vsel %vm482_vm2, %v1250_v4, 0.0  ;;  %v719_v7 = vpack.c.bf16 %v1250_v4, %v1246_v62  ;;  %v1252_v36 = vpop.eup %1251 }
 0x227   : > { %641 = vadd.xlane.f32.xlu1 %v640_v6  ;;  %v1254_v37 = vpop.eup %1253  ;;  %v612_v12 = vmul.f32 %v1252_v36, %v604_v63 }
 0x228   : > { %1187 = vmatmul.mubr.msk.bf16.gmra.mxu1 %vm482_vm2, %v719_v7  ;;  %v1256_v38 = vpop.eup %1255  ;;  %v611_v57 = vmul.f32 %v1254_v37, %v603_v50 }
 0x229   : > { %v1258_v41 = vpop.eup %1257  ;;  %v613_v51 = vmul.f32 %v1256_v38, %v605_v49 }
 0x22a   : > { %v1260_v42 = vpop.eup %1259  ;;  %v614_v1 = vmul.f32 %v1258_v41, %v606_v60 }
 0x22b   : > { %v1262_v44 = vpop.eup %1261  ;;  %v615_v15 = vmul.f32 %v1260_v42, %v607_v20 }
 0x22c   : > { %v1264_v46 = vpop.eup %1263  ;;  %v616_v19 = vmul.f32 %v1262_v44, %v608_v17 }
 0x22d   : > { %v1266_v47 = vpop.eup %1265  ;;  %v617_v30 = vmul.f32 %v1264_v46, %v609_v27 }
 0x22e   : > { %v618_v48 = vmul.f32 %v1266_v47, %v610_v35 }
 0x238   : > { %675 = vperm.xlu1 %1222, %v1252_v36  }
 0x239   : > { %670 = vperm.xlu0 %1221, %v1254_v37  }
 0x23c   : > { %680 = vperm.xlu1 %1222, %v1256_v38  }
 0x23d   : > { %685 = vperm.xlu0 %1221, %v1258_v41   ;;  %v661_v41 = vld [vmem:[#allocation4 + $0x8] sm:$0xff] }
 0x240   : > { %690 = vperm.xlu1 %1222, %v1260_v42  }
 0x241   : > { %695 = vperm.xlu0 %1221, %v1262_v44  }
 0x244   : > { %700 = vperm.xlu1 %1222, %v1264_v46  }
 0x245   : > { %705 = vperm.xlu0 %1221, %v1266_v47  }
 0x296   : > { %v627_v53 = vpop.xlane.xlu0 %626 }
 0x297   : > { %v645_v56 = vadd.f32 %v627_v53, %v613_v51 }
 0x298   : > { %v621_v59 = vpop.xlane.xlu1 %620 }
 0x299   : > { %654 = vst.msk [vmem:[#allocation3 + $0x10] sm:$0xff] %vm294_vm1, %v645_v56  ;;  %v643_v61 = vadd.f32 %v621_v59, %v611_v57  ;;  %v666_v59 = vld [vmem:[#allocation4 + $0x30] sm:$0xff] }
 0x29b   : > { %652 = vst.msk [vmem:[#allocation3] sm:$0xff] %vm294_vm1, %v643_v61  ;;  %v664_v61 = vld [vmem:[#allocation4 + $0x20] sm:$0xff] }
 0x29c   : > { %v630_v10 = vpop.xlane.xlu1 %629 }
 0x29d   : > { %v646_v11 = vadd.f32 %v630_v10, %v614_v1  ;;  %v667_v1 = vld [vmem:[#allocation4 + $0x38] sm:$0xff] }
 0x29e   : > { %v624_v14 = vpop.xlane.xlu0 %623 }
 0x29f   : > { %655 = vst.msk [vmem:[#allocation3 + $0x18] sm:$0xff] %vm294_vm1, %v646_v11  ;;  %v644_v16 = vadd.f32 %v624_v14, %v612_v12 }
 0x2a0   : > { %v858_v18 = vld [vmem:[#allocation3 + $0x10] sm:$0xff] }
 0x2a1   : > { %653 = vst.msk [vmem:[#allocation3 + $0x8] sm:$0xff] %vm294_vm1, %v644_v16  ;;  %1267 = vrcp.f32 %v858_v18  ;;  %v665_v16 = vld [vmem:[#allocation4 + $0x28] sm:$0xff] }
 0x2a2   : > { %v856_v13 = vld [vmem:[#allocation3] sm:$0xff] }
 0x2a3   : > { %1269 = vrcp.f32 %v856_v13 }
 0x2a6   : > { %v859_v23 = vld [vmem:[#allocation3 + $0x18] sm:$0xff] }
 0x2a7   : > { %1271 = vrcp.f32 %v859_v23 }
 0x2a8   : > { %v633_v25 = vpop.xlane.xlu0 %632  ;;  %v857_v28 = vld [vmem:[#allocation3 + $0x8] sm:$0xff] }
 0x2a9   : > { %v647_v29 = vadd.f32 %v633_v25, %v615_v15  ;;  %1273 = vrcp.f32 %v857_v28 }
 0x2ab   : > { %656 = vst.msk [vmem:[#allocation3 + $0x20] sm:$0xff] %vm294_vm1, %v647_v29 }
 0x2ac   : > { %v639_v32 = vpop.xlane.xlu0 %638  ;;  %v636_v21 = vpop.xlane.xlu1 %635 }
 0x2ad   : > { %v649_v39 = vadd.f32 %v639_v32, %v617_v30  ;;  %v648_v22 = vadd.f32 %v636_v21, %v616_v19 }
 0x2ae   : > { %v1268_v43 = vpop.eup %1267 }
 0x2af   : > { %658 = vst.msk [vmem:[#allocation3 + $0x30] sm:$0xff] %vm294_vm1, %v649_v39  ;;  %657 = vst.msk [vmem:[#allocation3 + $0x28] sm:$0xff] %vm294_vm1, %v648_v22  ;;  %884 = vperm.xlu1 %1222, %v1268_v43  }
 0x2b0   : > { %v642_v52 = vpop.xlane.xlu1 %641  ;;  %v1270_v55 = vpop.eup %1269 }
 0x2b1   : > { %v650_v54 = vadd.f32 %v642_v52, %v618_v48 }
 0x2b2   : > { %v860_v26 = vld [vmem:[#allocation3 + $0x20] sm:$0xff] }
 0x2b3   : > { %659 = vst.msk [vmem:[#allocation3 + $0x38] sm:$0xff] %vm294_vm1, %v650_v54  ;;  %874 = vperm.xlu1 %1222, %v1270_v55   ;;  %1275 = vrcp.f32 %v860_v26 }
 0x2b4   : > { %v1272_v58 = vpop.eup %1271  ;;  %v676_v7 = vpop.permute.xlu1 %675 }
 0x2b5   : > { %889 = vperm.xlu0 %1221, %v1272_v58   ;;  %v671_v8 = vpop.permute.xlu0 %670  ;;  %v709_v49 = vmul.f32 %v676_v7, %v661_v41 }
 0x2b6   : > { %v862_v62 = vld [vmem:[#allocation3 + $0x30] sm:$0xff]  ;;  %v861_v0 = vld [vmem:[#allocation3 + $0x28] sm:$0xff]  ;;  %v1274_v2 = vpop.eup %1273  ;;  %v708_v37 = vmul.f32 %v671_v8, %v660_v45 }
 0x2b7   : > { %1277 = vrcp.f32 %v862_v62 }
 0x2b8   : > { %1279 = vrcp.f32 %v861_v0  ;;  %v681_v40 = vpop.permute.xlu1 %680 }
 0x2b9   : > { %879 = vperm.xlu0 %1221, %v1274_v2   ;;  %v710_v33 = vmul.f32 %v681_v40, %v662_v9  ;;  %v686_v34 = vpop.permute.xlu0 %685 }
 0x2ba   : > { %v863_v24 = vld [vmem:[#allocation3 + $0x38] sm:$0xff]  ;;  %v711_v44 = vmul.f32 %v686_v34, %v663_v31 }
 0x2bb   : > { %1281 = vrcp.f32 %v863_v24 }
 0x2bc   : > { %v691_v53 = vpop.permute.xlu1 %690 }
 0x2bd   : > { %v696_v57 = vpop.permute.xlu0 %695  ;;  %v712_v12 = vmul.f32 %v691_v53, %v664_v61 }
 0x2be   : > { %v713_v15 = vmul.f32 %v696_v57, %v665_v16 }
 0x2c0   : > { %v1276_v3 = vpop.eup %1275  ;;  %v701_v60 = vpop.permute.xlu1 %700 }
 0x2c1   : > { %894 = vperm.xlu1 %1222, %v1276_v3   ;;  %v714_v63 = vmul.f32 %v701_v60, %v666_v59  ;;  %v706_v10 = vpop.permute.xlu0 %705 }
 0x2c2   : > { %v715_v13 = vmul.f32 %v706_v10, %v667_v1 }
 0x2c4   : > { %v1278_v4 = vpop.eup %1277 }
 0x2c5   : > { %v1280_v5 = vpop.eup %1279  ;;  %904 = vperm.xlu1 %1222, %v1278_v4  }
 0x2c6   : > { %899 = vperm.xlu0 %1221, %v1280_v5  }
 0x2c8   : > { %v1282_v6 = vpop.eup %1281 }
 0x2ca   : > { %909 = vperm.xlu0 %1221, %v1282_v6  }
 0x2d7   : > { %v1184_v36 = vpop.f32.mrf.mxu1 }
 0x2d8   : > { %v823_v38 = vadd.f32 %v1184_v36, %v710_v33 }
 0x2d9   : > { %v790_v42 = vpop.f32.mrf.mxu1 }
 0x2da   : > { %831 = vst.msk [vmem:[#allocation4 + $0x10] sm:$0xff] %vm311_vm0, %v823_v38  ;;  %v821_v46 = vadd.f32 %v790_v42, %v708_v37 }
 0x2db   : > { %v1185_v47 = vpop.f32.mrf.mxu1 }
 0x2dc   : > { %829 = vst.msk [vmem:[#allocation4] sm:$0xff] %vm311_vm0, %v821_v46  ;;  %v824_v50 = vadd.f32 %v1185_v47, %v711_v44 }
 0x2dd   : > { %v793_v51 = vpop.f32.mrf.mxu1 }
 0x2de   : > { %832 = vst.msk [vmem:[#allocation4 + $0x18] sm:$0xff] %vm311_vm0, %v824_v50  ;;  %v822_v56 = vadd.f32 %v793_v51, %v709_v49 }
 0x2e0   : > { %830 = vst.msk [vmem:[#allocation4 + $0x8] sm:$0xff] %vm311_vm0, %v822_v56 }
 0x2e1   : > { %v850_v28 = vld [vmem:[#allocation4 + $0x10] sm:$0xff] }
 0x2e3   : > { %v848_v32 = vld [vmem:[#allocation4] sm:$0xff] }
 0x2e5   : > { %v851_v39 = vld [vmem:[#allocation4 + $0x18] sm:$0xff] }
 0x2e7   : > { %v849_v55 = vld [vmem:[#allocation4 + $0x8] sm:$0xff] }
 0x2e8   : > { %v1188_v11 = vpop.f32.mrf.mxu1 }
 0x2e9   : > { %v827_v14 = vadd.f32 %v1188_v11, %v714_v63 }
 0x2ea   : > { %v806_v18 = vpop.f32.mrf.mxu1 }
 0x2eb   : > { %835 = vst.msk [vmem:[#allocation4 + $0x30] sm:$0xff] %vm311_vm0, %v827_v14  ;;  %v825_v20 = vadd.f32 %v806_v18, %v712_v12 }
 0x2ec   : > { %v1189_v23 = vpop.f32.mrf.mxu1 }
 0x2ed   : > { %833 = vst.msk [vmem:[#allocation4 + $0x20] sm:$0xff] %vm311_vm0, %v825_v20  ;;  %v828_v25 = vadd.f32 %v1189_v23, %v715_v13 }
 0x2ee   : > { %v809_v27 = vpop.f32.mrf.mxu1 }
 0x2ef   : > { %836 = vst.msk [vmem:[#allocation4 + $0x38] sm:$0xff] %vm311_vm0, %v828_v25  ;;  %v826_v17 = vadd.f32 %v809_v27, %v713_v15 }
 0x2f1   : > { %834 = vst.msk [vmem:[#allocation4 + $0x28] sm:$0xff] %vm311_vm0, %v826_v17 }
 0x2f2   : > { %v854_v3 = vld [vmem:[#allocation4 + $0x30] sm:$0xff] }
 0x2f4   : > { %v852_v62 = vld [vmem:[#allocation4 + $0x20] sm:$0xff] }
 0x2f6   : > { %v855_v45 = vld [vmem:[#allocation4 + $0x38] sm:$0xff] }
 0x2f8   : > { %v853_v5 = vld [vmem:[#allocation4 + $0x28] sm:$0xff] }
 0x32a   : > { %v885_v29 = vpop.permute.xlu1 %884 }
 0x32b   : > { %v914_v30 = vmul.f32 %v885_v29, %v850_v28 }
 0x32d   : > { %v1136_v19 = vpack.c.bf16 %v914_v30, %v914_v30 }
 0x32e   : > { %v875_v21 = vpop.permute.xlu1 %874 }
 0x32f   : > { %955 = vst.msk [vmem:[%s1574_s28 + $0x8] sm:$0xf] %vm952_vm3, %v1136_v19  ;;  %v912_v35 = vmul.f32 %v875_v21, %v848_v32 }
 0x330   : > { %v890_v22 = vpop.permute.xlu0 %889 }
 0x331   : > { %v1134_v43 = vpack.c.bf16 %v912_v35, %v912_v35  ;;  %v915_v48 = vmul.f32 %v890_v22, %v851_v39 }
 0x333   : > { %953 = vst.msk [vmem:[%s1574_s28] sm:$0xf] %vm952_vm3, %v1134_v43  ;;  %v1137_v52 = vpack.c.bf16 %v915_v48, %v915_v48 }
 0x334   : > { %v880_v54 = vpop.permute.xlu0 %879 }
 0x335   : > { %956 = vst.msk [vmem:[%s1574_s28 + $0xc] sm:$0xf] %vm952_vm3, %v1137_v52  ;;  %v913_v26 = vmul.f32 %v880_v54, %v849_v55 }
 0x337   : > { %v1135_v58 = vpack.c.bf16 %v913_v26, %v913_v26 }
 0x339   : > { %954 = vst.msk [vmem:[%s1574_s28 + $0x4] sm:$0xf] %vm952_vm3, %v1135_v58 }
 0x33c   : > { %v895_v0 = vpop.permute.xlu1 %894 }
 0x33d   : > { %v916_v2 = vmul.f32 %v895_v0, %v852_v62 }
 0x33f   : > { %v1138_v24 = vpack.c.bf16 %v916_v2, %v916_v2 }
 0x340   : > { %v905_v4 = vpop.permute.xlu1 %904 }
 0x341   : > { %957 = vst.msk [vmem:[%s1574_s28 + $0x10] sm:$0xf] %vm952_vm3, %v1138_v24  ;;  %v900_v6 = vpop.permute.xlu0 %899  ;;  %v918_v7 = vmul.f32 %v905_v4, %v854_v3 }
 0x342   : > { %v917_v8 = vmul.f32 %v900_v6, %v853_v5 }
 0x343   : > { %v1140_v9 = vpack.c.bf16 %v918_v7, %v918_v7 }
 0x344   : > { %v1139_v40 = vpack.c.bf16 %v917_v8, %v917_v8 }
 0x345   : > { %959 = vst.msk [vmem:[%s1574_s28 + $0x18] sm:$0xf] %vm952_vm3, %v1140_v9  ;;  %v910_v33 = vpop.permute.xlu0 %909 }
 0x346   : > { %958 = vst.msk [vmem:[%s1574_s28 + $0x14] sm:$0xf] %vm952_vm3, %v1139_v40  ;;  %v919_v31 = vmul.f32 %v910_v33, %v855_v45 }
 0x348   : > { %v1141_v34 = vpack.c.bf16 %v919_v31, %v919_v31 }
 0x34a   : > { %960 = vst.msk [vmem:[%s1574_s28 + $0x1c] sm:$0xf] %vm952_vm3, %v1141_v34 }
 0x34b PF: > { %s13_s14 = sadd.s32 1, %s1305_s14   ;;  %s1605_s12 = smov %s1301_s13 }
 0x34c   : > { %p10_p5 = scmp.ge.s32.totalorder %s13_s14, 10   ;;  %s1606_s13 = smov %s1608_s15 }
 0x34e   :  { %12 = sbr.rel (!%p10_p5) target bundleno = 2 (0x2), region = 76 }

// kernel: forward.20
= control target key start
LH: loop header
LB: loop body
LE: loop exit
PB: predicated region body
PF: predicated region fallthrough
CT: control target
= control target key end

     0   :  { %s787_s12 = smov 0   ;;  %s789_s13 = smov 0   ;;  %s858_s0 = inlined_call_operand.vmem [shape: bf16[2,64,128], index: 0, kind: input, shape index: {}]   ;;  %s859_s1 = inlined_call_operand.vmem [shape: bf16[128,128], index: 1, kind: input, shape index: {}]   ;;  %s860_s2 = inlined_call_operand.vmem [shape: bf16[2,64,128], index: 2, kind: input, shape index: {}]   ;;  %s861_s3 = inlined_call_operand.vmem [shape: bf16[2,64,128], index: 3, kind: output, shape index: {}]  }
   0x1   :  { %s791_s14 = smov 0  }
   0x2 LB: > { %s25_s15 = sadd.s32 1, %s761_s13  ;;  %p573_p0 = scmp.ge.s32.totalorder %s765_s14, 1  ;;  %s765_s14 = sphi %s791_s14, %s13_s14   ;;  %s761_s13 = sphi %s789_s13, %s863_s13   ;;  %s757_s12 = sphi %s787_s12, %s862_s12  }
   0x3   : > { %p27_p1 = scmp.ge.s32.totalorder %s25_s15, 2  ;;  %p175_p2 = scmp.lt.s32.totalorder %s765_s14, 3 }
   0x5   : > { %s865_s15 = smov (%p27_p1, %s25_s15), 0  ;;  %p176_p3 = pnand %p573_p0, %p175_p2 }
   0x6   : > { %p217_p4 = scmp.lt.s32.totalorder (!%p176_p3), %s757_s12, 1 }
   0x7   : > { %179 = sbr.rel (%p176_p3) target bundleno = 249 (0xf9), region = 32 }
   0xc   : > { %v731_v0 = vld [vmem:[%s859_s1 + $0x38] sm:$0xff]   ;;  %v732_v1 = vld [vmem:[%s859_s1 + $0x30] sm:$0xff]   ;;  %s867_s12 = smov (!%p217_p4, %s757_s12), 1  ;;  %v733_v2 = vld [vmem:[%s859_s1 + $0x28] sm:$0xff]  }
   0xd   : > { %667 = vmatprep.subr.bf16.mxu0 %v731_v0  ;;  %691 = vmatprep.subr.bf16.mxu1 %v731_v0  ;;  %s814_s22 = sshll.u32 %s867_s12, 5  ;;  %v734_v3 = vld [vmem:[%s859_s1 + $0x20] sm:$0xff]   ;;  %v735_v6 = vld [vmem:[%s859_s1 + $0x18] sm:$0xff]   ;;  %v736_v7 = vld [vmem:[%s859_s1 + $0x10] sm:$0xff]  }
   0xe   : > { %668 = vmatpush3.bf16.msra.mxu0 %v731_v0  ;;  %699 = vmatpush3.bf16.msra.mxu1 %v731_v0  ;;  %s820_s25 = scalar_lea.vmem %s858_s0, %s814_s22  ;;  %v737_v8 = vld [vmem:[%s859_s1 + $0x8] sm:$0xff]   ;;  %v738_v9 = vld [vmem:[%s859_s1] sm:$0xff]   ;;  %s234_s11 = scalar_lea.vmem %s860_s2, %s814_s22 }
   0xf   : > { %669 = vmatprep.subr.bf16.mxu0 %v732_v1  ;;  %692 = vmatprep.subr.bf16.mxu1 %v732_v1  ;;  %v739_v4 = vld [vmem:[%s820_s25] sm:$0xff]   ;;  %v740_v5 = vld [vmem:[%s820_s25 + $0x10] sm:$0xff]   ;;  %v741_v10 = vld [vmem:[%s820_s25 + $0x8] sm:$0xff]   ;;  %s244_s17 = scalar_lea.vmem %s861_s3, %s814_s22 }
  0x10   : > { %683 = vmatprep.mubr.bf16.mxu0 %v739_v4  ;;  %687 = vmatprep.mubr.bf16.mxu1 %v740_v5  ;;  %v742_v11 = vld [vmem:[%s820_s25 + $0x18] sm:$0xff]   ;;  %v649_v12 = vld [vmem:[%s234_s11 + $0x8] sm:$0xff]   ;;  %v614_v14 = vld [vmem:[%s234_s11] sm:$0xff]  }
  0x11   : > { %v651_v13 = vld [vmem:[%s234_s11 + $0x18] sm:$0xff]   ;;  %v650_v15 = vld [vmem:[%s234_s11 + $0x10] sm:$0xff]   ;;  %v619_v18 = vunpack.c.l.bf16 %v649_v12  ;;  %v620_v20 = vunpack.c.h.bf16 %v649_v12  ;;  %v615_v22 = vunpack.c.l.bf16 %v614_v14  ;;  %v616_v26 = vunpack.c.h.bf16 %v614_v14 }
  0x12   : > { %670 = vmatpush3.bf16.msra.mxu0 %v732_v1  ;;  %700 = vmatpush3.bf16.msra.mxu1 %v732_v1  ;;  %v627_v19 = vunpack.c.l.bf16 %v651_v13  ;;  %v628_v21 = vunpack.c.h.bf16 %v651_v13  ;;  %v623_v24 = vunpack.c.l.bf16 %v650_v15  ;;  %v624_v27 = vunpack.c.h.bf16 %v650_v15 }
  0x13   : > { %671 = vmatprep.subr.bf16.mxu0 %v733_v2  ;;  %693 = vmatprep.subr.bf16.mxu1 %v733_v2 }
  0x16   : > { %672 = vmatpush3.bf16.msra.mxu0 %v733_v2  ;;  %701 = vmatpush3.bf16.msra.mxu1 %v733_v2 }
  0x17   : > { %673 = vmatprep.subr.bf16.mxu0 %v734_v3  ;;  %694 = vmatprep.subr.bf16.mxu1 %v734_v3 }
  0x1a   : > { %674 = vmatpush3.bf16.msra.mxu0 %v734_v3  ;;  %702 = vmatpush3.bf16.msra.mxu1 %v734_v3 }
  0x1b   : > { %675 = vmatprep.subr.bf16.mxu0 %v735_v6  ;;  %695 = vmatprep.subr.bf16.mxu1 %v735_v6 }
  0x1e   : > { %676 = vmatpush3.bf16.msra.mxu0 %v735_v6  ;;  %703 = vmatpush3.bf16.msra.mxu1 %v735_v6 }
  0x1f   : > { %677 = vmatprep.subr.bf16.mxu0 %v736_v7  ;;  %696 = vmatprep.subr.bf16.mxu1 %v736_v7 }
  0x22   : > { %678 = vmatpush3.bf16.msra.mxu0 %v736_v7  ;;  %704 = vmatpush3.bf16.msra.mxu1 %v736_v7 }
  0x23   : > { %679 = vmatprep.subr.bf16.mxu0 %v737_v8  ;;  %697 = vmatprep.subr.bf16.mxu1 %v737_v8 }
  0x26   : > { %680 = vmatpush3.bf16.msra.mxu0 %v737_v8  ;;  %705 = vmatpush3.bf16.msra.mxu1 %v737_v8 }
  0x27   : > { %681 = vmatprep.subr.bf16.mxu0 %v738_v9  ;;  %698 = vmatprep.subr.bf16.mxu1 %v738_v9 }
  0x2a   : > { %682 = vmatpush3.bf16.msra.mxu0 %v738_v9  ;;  %706 = vmatpush3.bf16.msra.mxu1 %v738_v9 }
  0x2d   : > { %684 = vmatmul.mubr.bf16.vlgmr.msra.gmra.mxu0 %v741_v10  ;;  %688 = vmatmul.mubr.bf16.vlgmr.msra.gmra.mxu1 %v742_v11 }
  0xed   : > { %v685_v16 = vpop.f32.mrf.mxu0  ;;  %v689_v17 = vpop.f32.mrf.mxu1 }
  0xee   : > { %v402_v30 = vadd.f32 %v685_v16, %v619_v18  ;;  %v418_v31 = vadd.f32 %v689_v17, %v627_v19 }
  0xef   : > { %v393_v23 = vpop.f32.mrf.mxu0  ;;  %v409_v25 = vpop.f32.mrf.mxu1 }
  0xf0   : > { %v394_v34 = vadd.f32 %v615_v22, %v393_v23  ;;  %v410_v35 = vadd.f32 %v623_v24, %v409_v25 }
  0xf1   : > { %v686_v28 = vpop.f32.mrf.mxu0  ;;  %v690_v29 = vpop.f32.mrf.mxu1 }
  0xf2   : > { %v405_v32 = vadd.f32 %v686_v28, %v620_v20  ;;  %v421_v33 = vadd.f32 %v690_v29, %v628_v21 }
  0xf3   : > { %v396_v36 = vpop.f32.mrf.mxu0  ;;  %v412_v37 = vpop.f32.mrf.mxu1 }
  0xf4   : > { %v637_v38 = vpack.c.bf16 %v405_v32, %v402_v30  ;;  %v647_v39 = vpack.c.bf16 %v421_v33, %v418_v31  ;;  %v397_v40 = vadd.f32 %v616_v26, %v396_v36  ;;  %v413_v41 = vadd.f32 %v624_v27, %v412_v37 }
  0xf6   : > { %652 = vst [vmem:[%s244_s17 + $0x8] sm:$0xff] %v637_v38   ;;  %654 = vst [vmem:[%s244_s17 + $0x18] sm:$0xff] %v647_v39   ;;  %v632_v42 = vpack.c.bf16 %v397_v40, %v394_v34  ;;  %v642_v43 = vpack.c.bf16 %v413_v41, %v410_v35 }
  0xf8   : > { %633 = vst [vmem:[%s244_s17] sm:$0xff] %v632_v42   ;;  %653 = vst [vmem:[%s244_s17 + $0x10] sm:$0xff] %v642_v43  }
  0xf9 PF: > { %s13_s14 = sadd.s32 1, %s765_s14   ;;  %s862_s12 = smov %s761_s13 }
  0xfa   : > { %p10_p5 = scmp.ge.s32.totalorder %s13_s14, 4   ;;  %s863_s13 = smov %s865_s15 }
  0xfc   :  { %12 = sbr.rel (!%p10_p5) target bundleno = 2 (0x2), region = 65 }

// kernel: forward.23
= control target key start
LH: loop header
LB: loop body
LE: loop exit
PB: predicated region body
PF: predicated region fallthrough
CT: control target
= control target key end

     0   :  { %s905_s12 = smov 0   ;;  %s907_s13 = smov 0   ;;  %s1003_s0 = inlined_call_operand.vmem [shape: bf16[2,64,256], index: 0, kind: input, shape index: {}]   ;;  %s1004_s1 = inlined_call_operand.vmem [shape: bf16[256,128], index: 1, kind: input, shape index: {}]   ;;  %s1005_s2 = inlined_call_operand.vmem [shape: bf16[2,64,128], index: 2, kind: input, shape index: {}]   ;;  %s1006_s3 = inlined_call_operand.vmem [shape: bf16[2,64,128], index: 3, kind: output, shape index: {}]  }
   0x1   :  { %s909_s14 = smov 0  }
   0x2 LB: > { %s25_s15 = sadd.s32 1, %s879_s13  ;;  %p659_p0 = scmp.ge.s32.totalorder %s883_s14, 1  ;;  %s883_s14 = sphi %s909_s14, %s13_s14   ;;  %s879_s13 = sphi %s907_s13, %s1008_s13   ;;  %s875_s12 = sphi %s905_s12, %s1007_s12  }
   0x3   : > { %p27_p1 = scmp.ge.s32.totalorder %s25_s15, 2  ;;  %p176_p2 = scmp.lt.s32.totalorder %s883_s14, 3 }
   0x5   : > { %s1010_s15 = smov (%p27_p1, %s25_s15), 0  ;;  %p177_p3 = pnand %p659_p0, %p176_p2 }
   0x6   : > { %p219_p4 = scmp.lt.s32.totalorder (!%p177_p3), %s875_s12, 1 }
   0x7   : > { %180 = sbr.rel (%p177_p3) target bundleno = 259 (0x103), region = 32 }
   0xc   : > { %v833_v0 = vld [vmem:[%s1004_s1 + $0x78] sm:$0xff]   ;;  %v835_v2 = vld [vmem:[%s1004_s1 + $0x70] sm:$0xff]   ;;  %v837_v4 = vld [vmem:[%s1004_s1 + $0x68] sm:$0xff]   ;;  %s1012_s12 = smov (!%p219_p4, %s875_s12), 1 }
   0xd   : > { %v834_v1 = vld [vmem:[%s1004_s1 + $0x38] sm:$0xff]   ;;  %753 = vmatprep.subr.bf16.mxu0 %v833_v0  ;;  %793 = vmatprep.subr.bf16.mxu1 %v833_v0  ;;  %v836_v3 = vld [vmem:[%s1004_s1 + $0x30] sm:$0xff]   ;;  %v838_v5 = vld [vmem:[%s1004_s1 + $0x28] sm:$0xff]   ;;  %s700_s5 = sshll.u32 %s1012_s12, 6  ;;  %s701_s29 = sshll.u32 %s1012_s12, 5 }
   0xe   : > { %754 = vmatpush3.bf16.msra.mxu0 %v834_v1  ;;  %801 = vmatpush3.bf16.msra.mxu1 %v834_v1  ;;  %v839_v6 = vld [vmem:[%s1004_s1 + $0x60] sm:$0xff]   ;;  %v841_v8 = vld [vmem:[%s1004_s1 + $0x58] sm:$0xff]   ;;  %s956_s10 = scalar_lea.vmem %s1003_s0, %s700_s5  ;;  %v843_v10 = vld [vmem:[%s1004_s1 + $0x50] sm:$0xff]   ;;  %s237_s5 = scalar_lea.vmem %s1005_s2, %s701_s29 }
   0xf   : > { %755 = vmatprep.subr.bf16.mxu0 %v835_v2  ;;  %794 = vmatprep.subr.bf16.mxu1 %v835_v2  ;;  %v840_v7 = vld [vmem:[%s1004_s1 + $0x20] sm:$0xff]   ;;  %v842_v9 = vld [vmem:[%s1004_s1 + $0x18] sm:$0xff]   ;;  %v844_v13 = vld [vmem:[%s1004_s1 + $0x10] sm:$0xff]   ;;  %s247_s7 = scalar_lea.vmem %s1006_s3, %s701_s29 }
  0x10   : > { %v851_v11 = vld [vmem:[%s956_s10 + $0x4] ss:$8 sps:$4 sm:$0xff]   ;;  %v849_v18 = vld [vmem:[%s956_s10] ss:$8 sps:$4 sm:$0xff]   ;;  %v855_v20 = vld [vmem:[%s956_s10 + $0x14] ss:$8 sps:$4 sm:$0xff]  }
  0x11   : > { %v854_v12 = vld [vmem:[%s956_s10 + $0x24] ss:$8 sps:$4 sm:$0xff]   ;;  %474 = vmatprep.mubr.bf16.mxu0 %v851_v11  ;;  %v852_v19 = vld [vmem:[%s956_s10 + $0x20] ss:$8 sps:$4 sm:$0xff]   ;;  %v857_v21 = vld [vmem:[%s956_s10 + $0x34] ss:$8 sps:$4 sm:$0xff]  }
  0x12   : > { %756 = vmatpush3.bf16.msra.mxu0 %v836_v3  ;;  %802 = vmatpush3.bf16.msra.mxu1 %v836_v3  ;;  %v845_v14 = vld [vmem:[%s1004_s1 + $0x48] sm:$0xff]   ;;  %v847_v16 = vld [vmem:[%s1004_s1 + $0x40] sm:$0xff]   ;;  %v859_v22 = vld [vmem:[%s956_s10 + $0x10] ss:$8 sps:$4 sm:$0xff]  }
  0x13   : > { %757 = vmatprep.subr.bf16.mxu0 %v837_v4  ;;  %795 = vmatprep.subr.bf16.mxu1 %v837_v4  ;;  %v846_v15 = vld [vmem:[%s1004_s1 + $0x8] sm:$0xff]   ;;  %v848_v17 = vld [vmem:[%s1004_s1] sm:$0xff]   ;;  %v860_v23 = vld [vmem:[%s956_s10 + $0x30] ss:$8 sps:$4 sm:$0xff]  }
  0x14   : > { %490 = vmatprep.mubr.bf16.mxu1 %v854_v12  ;;  %v712_v26 = vld [vmem:[%s237_s5] sm:$0xff]   ;;  %v748_v27 = vld [vmem:[%s237_s5 + $0x10] sm:$0xff]   ;;  %v747_v48 = vld [vmem:[%s237_s5 + $0x8] sm:$0xff]  }
  0x15   : > { %v713_v30 = vunpack.c.l.bf16 %v712_v26  ;;  %v721_v31 = vunpack.c.l.bf16 %v748_v27  ;;  %v714_v36 = vunpack.c.h.bf16 %v712_v26  ;;  %v722_v37 = vunpack.c.h.bf16 %v748_v27  ;;  %v749_v49 = vld [vmem:[%s237_s5 + $0x18] sm:$0xff]  }
  0x16   : > { %758 = vmatpush3.bf16.msra.mxu0 %v838_v5  ;;  %803 = vmatpush3.bf16.msra.mxu1 %v838_v5  ;;  %v717_v54 = vunpack.c.l.bf16 %v747_v48  ;;  %v725_v55 = vunpack.c.l.bf16 %v749_v49  ;;  %v718_v60 = vunpack.c.h.bf16 %v747_v48  ;;  %v726_v61 = vunpack.c.h.bf16 %v749_v49 }
  0x17   : > { %759 = vmatprep.subr.bf16.mxu0 %v839_v6  ;;  %796 = vmatprep.subr.bf16.mxu1 %v839_v6 }
  0x1a   : > { %760 = vmatpush3.bf16.msra.mxu0 %v840_v7  ;;  %804 = vmatpush3.bf16.msra.mxu1 %v840_v7 }
  0x1b   : > { %761 = vmatprep.subr.bf16.mxu0 %v841_v8  ;;  %797 = vmatprep.subr.bf16.mxu1 %v841_v8 }
  0x1e   : > { %762 = vmatpush3.bf16.msra.mxu0 %v842_v9  ;;  %805 = vmatpush3.bf16.msra.mxu1 %v842_v9 }
  0x1f   : > { %763 = vmatprep.subr.bf16.mxu0 %v843_v10  ;;  %798 = vmatprep.subr.bf16.mxu1 %v843_v10 }
  0x22   : > { %764 = vmatpush3.bf16.msra.mxu0 %v844_v13  ;;  %806 = vmatpush3.bf16.msra.mxu1 %v844_v13 }
  0x23   : > { %765 = vmatprep.subr.bf16.mxu0 %v845_v14  ;;  %799 = vmatprep.subr.bf16.mxu1 %v845_v14 }
  0x26   : > { %766 = vmatpush3.bf16.msra.mxu0 %v846_v15  ;;  %807 = vmatpush3.bf16.msra.mxu1 %v846_v15 }
  0x27   : > { %767 = vmatprep.subr.bf16.mxu0 %v847_v16  ;;  %800 = vmatprep.subr.bf16.mxu1 %v847_v16 }
  0x2a   : > { %768 = vmatpush3.bf16.msra.mxu0 %v848_v17  ;;  %808 = vmatpush3.bf16.msra.mxu1 %v848_v17 }
  0x2d   : > { %475 = vmatmul.mubr.bf16.vlgmr.msra.gmra.mxu0 %v849_v18  ;;  %491 = vmatmul.mubr.bf16.vlgmr.msra.gmra.mxu1 %v852_v19 }
  0x2e   : > { %482 = vmatprep.mubr.bf16.mxu0 %v855_v20  ;;  %498 = vmatprep.mubr.bf16.mxu1 %v857_v21 }
  0x35   : > { %483 = vmatmul.mubr.bf16.gmra.mxu0 %v859_v22  ;;  %499 = vmatmul.mubr.bf16.gmra.mxu1 %v860_v23 }
  0xed   : > { %v769_v24 = vpop.f32.mrf.mxu0  ;;  %v781_v25 = vpop.f32.mrf.mxu1 }
  0xef   : > { %v770_v28 = vpop.f32.mrf.mxu0  ;;  %v782_v29 = vpop.f32.mrf.mxu1 }
  0xf0   : > { %v771_v34 = vadd.f32 %v770_v28, %v769_v24  ;;  %v783_v35 = vadd.f32 %v782_v29, %v781_v25 }
  0xf1   : > { %v772_v32 = vpop.f32.mrf.mxu0  ;;  %v784_v33 = vpop.f32.mrf.mxu1 }
  0xf2   : > { %v477_v44 = vadd.f32 %v771_v34, %v713_v30  ;;  %v493_v45 = vadd.f32 %v783_v35, %v721_v31 }
  0xf3   : > { %v773_v38 = vpop.f32.mrf.mxu0  ;;  %v785_v39 = vpop.f32.mrf.mxu1 }
  0xf4   : > { %v774_v40 = vadd.f32 %v773_v38, %v772_v32  ;;  %v786_v41 = vadd.f32 %v785_v39, %v784_v33 }
  0xf5   : > { %v775_v42 = vpop.f32.mrf.mxu0  ;;  %v787_v43 = vpop.f32.mrf.mxu1 }
  0xf6   : > { %v480_v46 = vadd.f32 %v774_v40, %v714_v36  ;;  %v496_v47 = vadd.f32 %v786_v41, %v722_v37 }
  0xf7   : > { %v776_v50 = vpop.f32.mrf.mxu0  ;;  %v788_v51 = vpop.f32.mrf.mxu1 }
  0xf8   : > { %v730_v52 = vpack.c.bf16 %v480_v46, %v477_v44  ;;  %v740_v53 = vpack.c.bf16 %v496_v47, %v493_v45  ;;  %v777_v58 = vadd.f32 %v776_v50, %v775_v42  ;;  %v789_v59 = vadd.f32 %v788_v51, %v787_v43 }
  0xf9   : > { %v778_v56 = vpop.f32.mrf.mxu0  ;;  %v790_v57 = vpop.f32.mrf.mxu1 }
  0xfa   : > { %731 = vst [vmem:[%s247_s7] sm:$0xff] %v730_v52   ;;  %751 = vst [vmem:[%s247_s7 + $0x10] sm:$0xff] %v740_v53   ;;  %v485_v2 = vadd.f32 %v777_v58, %v717_v54  ;;  %v501_v3 = vadd.f32 %v789_v59, %v725_v55 }
  0xfb   : > { %v779_v62 = vpop.f32.mrf.mxu0  ;;  %v791_v63 = vpop.f32.mrf.mxu1 }
  0xfc   : > { %v780_v0 = vadd.f32 %v779_v62, %v778_v56  ;;  %v792_v1 = vadd.f32 %v791_v63, %v790_v57 }
  0xfe   : > { %v488_v4 = vadd.f32 %v780_v0, %v718_v60  ;;  %v504_v5 = vadd.f32 %v792_v1, %v726_v61 }
 0x100   : > { %v735_v6 = vpack.c.bf16 %v488_v4, %v485_v2  ;;  %v745_v7 = vpack.c.bf16 %v504_v5, %v501_v3 }
 0x102   : > { %750 = vst [vmem:[%s247_s7 + $0x8] sm:$0xff] %v735_v6   ;;  %752 = vst [vmem:[%s247_s7 + $0x18] sm:$0xff] %v745_v7  }
 0x103 PF: > { %s13_s14 = sadd.s32 1, %s883_s14   ;;  %s1007_s12 = smov %s879_s13 }
 0x104   : > { %p10_p5 = scmp.ge.s32.totalorder %s13_s14, 4   ;;  %s1008_s13 = smov %s1010_s15 }
 0x106   :  { %12 = sbr.rel (!%p10_p5) target bundleno = 2 (0x2), region = 65 }

// kernel: forward.22
= control target key start
LH: loop header
LB: loop body
LE: loop exit
PB: predicated region body
PF: predicated region fallthrough
CT: control target
= control target key end

     0   :  { %s1222_s12 = smov 0   ;;  %s1224_s13 = smov 0   ;;  %s1550_s0 = inlined_call_operand.vmem [shape: bf16[2,64,128], index: 0, kind: input, shape index: {}]   ;;  %s1551_s1 = inlined_call_operand.vmem [shape: f32[2,1,128], index: 1, kind: input, shape index: {}]   ;;  %s1552_s2 = inlined_call_operand.vmem [shape: bf16[128,512], index: 2, kind: input, shape index: {}]   ;;  %s1553_s3 = inlined_call_operand.vmem [shape: bf16[2,64,256], index: 3, kind: output, shape index: {}]  }
   0x1   :  { %s1226_s14 = smov 0  }
   0x2 LB: > { %s25_s15 = sadd.s32 1, %s1195_s13  ;;  %p979_p0 = scmp.ge.s32.totalorder %s1199_s14, 1  ;;  %s1199_s14 = sphi %s1226_s14, %s13_s14   ;;  %s1195_s13 = sphi %s1224_s13, %s1555_s13   ;;  %s1191_s12 = sphi %s1222_s12, %s1554_s12  }
   0x3   : > { %p27_p1 = scmp.ge.s32.totalorder %s25_s15, 2  ;;  %p166_p2 = scmp.lt.s32.totalorder %s1199_s14, 3 }
   0x5   : > { %s1557_s15 = smov (%p27_p1, %s25_s15), 0  ;;  %p167_p3 = pnand %p979_p0, %p166_p2 }
   0x6   : > { %p203_p4 = scmp.lt.s32.totalorder (!%p167_p3), %s1191_s12, 1 }
   0x7   : > { %170 = sbr.rel (%p167_p3) target bundleno = 447 (0x1bf), region = 32 }
   0xc   : > { %v1081_v0 = vld [vmem:[%s1552_s2 + $0xe4] ss:$16 sps:$4 sm:$0xff]   ;;  %v1083_v1 = vld [vmem:[%s1552_s2 + $0xec] ss:$16 sps:$4 sm:$0xff]   ;;  %s1559_s12 = smov (!%p203_p4, %s1191_s12), 1  ;;  %v1201_v46 = vmov 0  }
   0xd   : > { %511 = vmatprep.subr.bf16.mxu0 %v1081_v0  ;;  %v1085_v2 = vld [vmem:[%s1552_s2 + $0xe0] ss:$16 sps:$4 sm:$0xff]   ;;  %v1086_v3 = vld [vmem:[%s1552_s2 + $0xe8] ss:$16 sps:$4 sm:$0xff]   ;;  %584 = vmatprep.subr.bf16.mxu1 %v1083_v1  ;;  %s1027_s24 = sshll.u32 %s1559_s12, 5  ;;  %s214_s17 = scalar_lea.vmem %s1551_s1, %s1559_s12 }
   0xe   : > { %512 = vmatpush1.bf16.msra.mxu0 %v1085_v2  ;;  %585 = vmatpush1.bf16.msra.mxu1 %v1086_v3  ;;  %s210_s27 = scalar_lea.vmem %s1550_s0, %s1027_s24  ;;  %v1087_v24 = vld [vmem:[%s1552_s2 + $0xc4] ss:$16 sps:$4 sm:$0xff]   ;;  %v1089_v25 = vld [vmem:[%s1552_s2 + $0xcc] ss:$16 sps:$4 sm:$0xff]   ;;  %v1091_v26 = vld [vmem:[%s1552_s2 + $0xc0] ss:$16 sps:$4 sm:$0xff]  }
   0xf   : > { %v1038_v4 = vld [vmem:[%s210_s27] sm:$0xff]   ;;  %v1053_v5 = vld [vmem:[%s210_s27 + $0x8] sm:$0xff]   ;;  %v1054_v10 = vld [vmem:[%s210_s27 + $0x10] sm:$0xff]   ;;  %513 = vmatprep.subr.bf16.mxu0 %v1087_v24  ;;  %586 = vmatprep.subr.bf16.mxu1 %v1089_v25  ;;  %s1028_s18 = sshll.u32 %s1559_s12, 6 }
  0x10   : > { %v1258_v6 = vunpack.c.l.bf16 %v1038_v4  ;;  %v1260_v7 = vunpack.c.l.bf16 %v1053_v5  ;;  %v1262_v8 = vunpack.c.h.bf16 %v1038_v4  ;;  %v1264_v9 = vunpack.c.h.bf16 %v1053_v5  ;;  %v1055_v13 = vld [vmem:[%s210_s27 + $0x18] sm:$0xff]   ;;  %v1093_v28 = vld [vmem:[%s1552_s2 + $0xa4] ss:$16 sps:$4 sm:$0xff]   ;;  %v1097_v30 = vld [vmem:[%s1552_s2 + $0xa0] ss:$16 sps:$4 sm:$0xff]   ;;  %543 = vmatprep.mubr.bf16.mxu0 %v1201_v46  ;;  %616 = vmatprep.mubr.bf16.mxu1 %v1201_v46  ;;  %s1503_s20 = scalar_lea.vmem %s1553_s3, %s1028_s18 }
  0x11   : > { %v1274_v16 = vunpack.c.h.bf16 %v1054_v10  ;;  %v1276_v17 = vunpack.c.l.bf16 %v1054_v10  ;;  %v1282_v20 = vunpack.c.h.bf16 %v1055_v13  ;;  %v1284_v21 = vunpack.c.l.bf16 %v1055_v13  ;;  %v1092_v27 = vld [vmem:[%s1552_s2 + $0xc8] ss:$16 sps:$4 sm:$0xff]   ;;  %v1095_v29 = vld [vmem:[%s1552_s2 + $0xac] ss:$16 sps:$4 sm:$0xff]   ;;  %v1099_v32 = vld [vmem:[%s1552_s2 + $0x84] ss:$16 sps:$4 sm:$0xff]  }
  0x12   : > { %v243_v11 = vmul.f32 %v1258_v6, %v1258_v6  ;;  %v245_v12 = vmul.f32 %v1260_v7, %v1260_v7  ;;  %v244_v14 = vmul.f32 %v1262_v8, %v1262_v8  ;;  %v246_v15 = vmul.f32 %v1264_v9, %v1264_v9  ;;  %514 = vmatpush1.bf16.msra.mxu0 %v1091_v26  ;;  %v1098_v31 = vld [vmem:[%s1552_s2 + $0xa8] ss:$16 sps:$4 sm:$0xff]   ;;  %v1101_v33 = vld [vmem:[%s1552_s2 + $0x8c] ss:$16 sps:$4 sm:$0xff]   ;;  %v1103_v34 = vld [vmem:[%s1552_s2 + $0x80] ss:$16 sps:$4 sm:$0xff]  }
  0x13   : > { %v248_v18 = vmul.f32 %v1274_v16, %v1274_v16  ;;  %v247_v19 = vmul.f32 %v1276_v17, %v1276_v17  ;;  %v250_v22 = vmul.f32 %v1282_v20, %v1282_v20  ;;  %v249_v23 = vmul.f32 %v1284_v21, %v1284_v21  ;;  %587 = vmatpush1.bf16.msra.mxu1 %v1092_v27  ;;  %v1104_v35 = vld [vmem:[%s1552_s2 + $0x88] ss:$16 sps:$4 sm:$0xff]   ;;  %v1105_v36 = vld [vmem:[%s1552_s2 + $0x64] ss:$16 sps:$4 sm:$0xff]   ;;  %v1107_v37 = vld [vmem:[%s1552_s2 + $0x6c] ss:$16 sps:$4 sm:$0xff]  }
  0x14   : > { %251 = vadd.xlane.f32.xlu0 %v243_v11  ;;  %255 = vadd.xlane.f32.xlu1 %v245_v12  ;;  %v1109_v38 = vld [vmem:[%s1552_s2 + $0x60] ss:$16 sps:$4 sm:$0xff]   ;;  %v1110_v39 = vld [vmem:[%s1552_s2 + $0x68] ss:$16 sps:$4 sm:$0xff]   ;;  %v1111_v40 = vld [vmem:[%s1552_s2 + $0x44] ss:$16 sps:$4 sm:$0xff]  }
  0x15   : > { %515 = vmatprep.subr.bf16.mxu0 %v1093_v28  ;;  %588 = vmatprep.subr.bf16.mxu1 %v1095_v29  ;;  %v1113_v41 = vld [vmem:[%s1552_s2 + $0x4c] ss:$16 sps:$4 sm:$0xff]   ;;  %v1115_v42 = vld [vmem:[%s1552_s2 + $0x40] ss:$16 sps:$4 sm:$0xff]   ;;  %v1116_v43 = vld [vmem:[%s1552_s2 + $0x48] ss:$16 sps:$4 sm:$0xff]  }
  0x16   : > { %516 = vmatpush1.bf16.msra.mxu0 %v1097_v30  ;;  %v1117_v44 = vld [vmem:[%s1552_s2 + $0x24] ss:$16 sps:$4 sm:$0xff]   ;;  %v1119_v45 = vld [vmem:[%s1552_s2 + $0x2c] ss:$16 sps:$4 sm:$0xff]   ;;  %v1121_v47 = vld [vmem:[%s1552_s2 + $0x20] ss:$16 sps:$4 sm:$0xff]  }
  0x17   : > { %589 = vmatpush1.bf16.msra.mxu1 %v1098_v31  ;;  %517 = vmatprep.subr.bf16.mxu0 %v1099_v32  ;;  %v1122_v48 = vld [vmem:[%s1552_s2 + $0x28] ss:$16 sps:$4 sm:$0xff]   ;;  %v1123_v49 = vld [vmem:[%s1552_s2 + $0x4] ss:$16 sps:$4 sm:$0xff]   ;;  %v1125_v50 = vld [vmem:[%s1552_s2 + $0xc] ss:$16 sps:$4 sm:$0xff]  }
  0x18   : > { %253 = vadd.xlane.f32.xlu0 %v244_v14  ;;  %257 = vadd.xlane.f32.xlu1 %v246_v15  ;;  %v1127_v51 = vld [vmem:[%s1552_s2] ss:$16 sps:$4 sm:$0xff]   ;;  %v1128_v52 = vld [vmem:[%s1552_s2 + $0x8] ss:$16 sps:$4 sm:$0xff]  }
  0x19   : > { %590 = vmatprep.subr.bf16.mxu1 %v1101_v33  ;;  %v984_v24 = vld [vmem:[%s214_s17] ss:$0 sm:$0xff] }
  0x1a   : > { %518 = vmatpush1.bf16.msra.mxu0 %v1103_v34 }
  0x1b   : > { %591 = vmatpush1.bf16.msra.mxu1 %v1104_v35  ;;  %519 = vmatprep.subr.bf16.mxu0 %v1105_v36 }
  0x1c   : > { %261 = vadd.xlane.f32.xlu1 %v248_v18  ;;  %259 = vadd.xlane.f32.xlu0 %v247_v19 }
  0x1d   : > { %592 = vmatprep.subr.bf16.mxu1 %v1107_v37 }
  0x1e   : > { %520 = vmatpush1.bf16.msra.mxu0 %v1109_v38 }
  0x1f   : > { %593 = vmatpush1.bf16.msra.mxu1 %v1110_v39  ;;  %521 = vmatprep.subr.bf16.mxu0 %v1111_v40 }
  0x20   : > { %265 = vadd.xlane.f32.xlu1 %v250_v22  ;;  %263 = vadd.xlane.f32.xlu0 %v249_v23 }
  0x21   : > { %594 = vmatprep.subr.bf16.mxu1 %v1113_v41 }
  0x22   : > { %522 = vmatpush1.bf16.msra.mxu0 %v1115_v42 }
  0x23   : > { %595 = vmatpush1.bf16.msra.mxu1 %v1116_v43  ;;  %523 = vmatprep.subr.bf16.mxu0 %v1117_v44 }
  0x24   : > { %596 = vmatprep.subr.bf16.mxu1 %v1119_v45 }
  0x26   : > { %524 = vmatpush1.bf16.msra.mxu0 %v1121_v47 }
  0x27   : > { %597 = vmatpush1.bf16.msra.mxu1 %v1122_v48  ;;  %525 = vmatprep.subr.bf16.mxu0 %v1123_v49 }
  0x28   : > { %598 = vmatprep.subr.bf16.mxu1 %v1125_v50 }
  0x2a   : > { %526 = vmatpush1.bf16.msra.mxu0 %v1127_v51 }
  0x2b   : > { %599 = vmatpush1.bf16.msra.mxu1 %v1128_v52 }
  0x9d   : > { %v252_v53 = vpop.xlane.xlu0 %251  ;;  %v256_v54 = vpop.xlane.xlu1 %255 }
  0x9e   : > { %v268_v55 = vmul.f32 0.0078125, %v252_v53  ;;  %v270_v56 = vmul.f32 0.0078125, %v256_v54 }
  0xa0   : > { %v276_v57 = vadd.f32 1e-06, %v268_v55  ;;  %v278_v62 = vadd.f32 1e-06, %v270_v56 }
  0xa1   : > { %v254_v58 = vpop.xlane.xlu0 %253  ;;  %v258_v59 = vpop.xlane.xlu1 %257 }
  0xa2   : > { %1129 = vrsqrt.f32 %v276_v57  ;;  %v269_v60 = vmul.f32 0.0078125, %v254_v58  ;;  %v271_v61 = vmul.f32 0.0078125, %v258_v59 }
  0xa4   : > { %v277_v63 = vadd.f32 1e-06, %v269_v60  ;;  %v279_v0 = vadd.f32 1e-06, %v271_v61 }
  0xa5   : > { %v262_v1 = vpop.xlane.xlu1 %261  ;;  %v260_v2 = vpop.xlane.xlu0 %259 }
  0xa6   : > { %1131 = vrsqrt.f32 %v277_v63  ;;  %v273_v3 = vmul.f32 0.0078125, %v262_v1  ;;  %v272_v4 = vmul.f32 0.0078125, %v260_v2 }
  0xa7   : > { %1133 = vrsqrt.f32 %v278_v62 }
  0xa8   : > { %1135 = vrsqrt.f32 %v279_v0  ;;  %v281_v5 = vadd.f32 1e-06, %v273_v3  ;;  %v280_v10 = vadd.f32 1e-06, %v272_v4 }
  0xa9   : > { %v266_v11 = vpop.xlane.xlu1 %265  ;;  %v264_v12 = vpop.xlane.xlu0 %263 }
  0xaa   : > { %1137 = vrsqrt.f32 %v281_v5  ;;  %v275_v13 = vmul.f32 0.0078125, %v266_v11  ;;  %v274_v14 = vmul.f32 0.0078125, %v264_v12 }
  0xab   : > { %1139 = vrsqrt.f32 %v280_v10 }
  0xac   : > { %v283_v18 = vadd.f32 1e-06, %v275_v13  ;;  %v282_v19 = vadd.f32 1e-06, %v274_v14 }
  0xae   : > { %1141 = vrsqrt.f32 %v283_v18 }
  0xaf   : > { %v1130_v15 = vpop.eup %1129  ;;  %1143 = vrsqrt.f32 %v282_v19 }
  0xb0   : > { %v292_v22 = vmul.f32 %v1130_v15, %v1258_v6 }
  0xb2   : > { %v307_v28 = vmul.f32 %v984_v24, %v292_v22 }
  0xb3   : > { %v1132_v23 = vpop.eup %1131 }
  0xb4   : > { %v1134_v25 = vpop.eup %1133  ;;  %v293_v26 = vmul.f32 %v1132_v23, %v1262_v8 }
  0xb5   : > { %v1136_v27 = vpop.eup %1135  ;;  %v294_v31 = vmul.f32 %v1134_v25, %v1260_v7 }
  0xb6   : > { %v308_v29 = vmul.f32 %v984_v24, %v293_v26  ;;  %v295_v32 = vmul.f32 %v1136_v27, %v1264_v9 }
  0xb7   : > { %v1138_v33 = vpop.eup %1137  ;;  %v309_v6 = vmul.f32 %v984_v24, %v294_v31 }
  0xb8   : > { %v315_v30 = vpack.c.bf16 %v308_v29, %v307_v28  ;;  %v1140_v34 = vpop.eup %1139  ;;  %v310_v8 = vmul.f32 %v984_v24, %v295_v32  ;;  %v297_v36 = vmul.f32 %v1138_v33, %v1274_v16 }
  0xb9   : > { %v296_v35 = vmul.f32 %v1140_v34, %v1276_v17 }
  0xba   : > { %544 = vmatmul.mubr.bf16.vlgmr.msra.gmra.mxu0 %v315_v30  ;;  %617 = vmatmul.mubr.bf16.vlgmr.msra.gmra.mxu1 %v315_v30  ;;  %v316_v37 = vpack.c.bf16 %v310_v8, %v309_v6  ;;  %v312_v9 = vmul.f32 %v984_v24, %v297_v36 }
  0xbb   : > { %553 = vmatprep.mubr.bf16.mxu0 %v1201_v46  ;;  %626 = vmatprep.mubr.bf16.mxu1 %v1201_v46  ;;  %v1142_v38 = vpop.eup %1141  ;;  %v311_v7 = vmul.f32 %v984_v24, %v296_v35 }
  0xbc   : > { %v1144_v39 = vpop.eup %1143  ;;  %v299_v42 = vmul.f32 %v1142_v38, %v1282_v20 }
  0xbd   : > { %v317_v40 = vpack.c.bf16 %v312_v9, %v311_v7  ;;  %v298_v41 = vmul.f32 %v1144_v39, %v1284_v21 }
  0xbe   : > { %v314_v16 = vmul.f32 %v984_v24, %v299_v42 }
  0xbf   : > { %v313_v17 = vmul.f32 %v984_v24, %v298_v41 }
  0xc1   : > { %v318_v43 = vpack.c.bf16 %v314_v16, %v313_v17 }
  0xc2   : > { %554 = vmatmul.mubr.bf16.gmra.mxu0 %v316_v37  ;;  %627 = vmatmul.mubr.bf16.gmra.mxu1 %v316_v37 }
  0xc3   : > { %563 = vmatprep.mubr.bf16.mxu0 %v1201_v46  ;;  %636 = vmatprep.mubr.bf16.mxu1 %v1201_v46 }
  0xca   : > { %564 = vmatmul.mubr.bf16.gmra.mxu0 %v317_v40  ;;  %637 = vmatmul.mubr.bf16.gmra.mxu1 %v317_v40 }
  0xcb   : > { %573 = vmatprep.mubr.bf16.mxu0 %v1201_v46  ;;  %646 = vmatprep.mubr.bf16.mxu1 %v1201_v46 }
  0xd2   : > { %574 = vmatmul.mubr.bf16.gmra.mxu0 %v318_v43  ;;  %647 = vmatmul.mubr.bf16.gmra.mxu1 %v318_v43 }
 0x17a   : > { %v1394_v44 = vpop.f32.mrf.mxu1  ;;  %v1399_v21 = vpop.f32.mrf.mxu0 }
 0x17b   : > { %v673_v45 = vmul.f32 0.044715, %v1394_v44  ;;  %v657_v41 = vmul.f32 0.5, %v1394_v44 }
 0x17c   : > { %v1397_v47 = vpop.f32.mrf.mxu1  ;;  %v1411_v54 = vpop.f32.mrf.mxu0 }
 0x17d   : > { %v689_v20 = vmul.f32 %v673_v45, %v1394_v44  ;;  %v674_v48 = vmul.f32 0.044715, %v1397_v47  ;;  %v658_v43 = vmul.f32 0.5, %v1397_v47 }
 0x17e   : > { %v1403_v49 = vpop.f32.mrf.mxu1  ;;  %v1424_v2 = vpop.f32.mrf.mxu0 }
 0x17f   : > { %v705_v50 = vmul.f32 %v689_v20, %v1394_v44  ;;  %v690_v46 = vmul.f32 %v674_v48, %v1397_v47  ;;  %v675_v51 = vmul.f32 0.044715, %v1403_v49 }
 0x180   : > { %v1408_v52 = vpop.f32.mrf.mxu1  ;;  %v1438_v22 = vpop.f32.mrf.mxu0 }
 0x181   : > { %v721_v53 = vadd.f32 %v705_v50, %v1394_v44  ;;  %v706_v55 = vmul.f32 %v690_v46, %v1397_v47  ;;  %v691_v56 = vmul.f32 %v675_v51, %v1403_v49  ;;  %v676_v57 = vmul.f32 0.044715, %v1408_v52 }
 0x182   : > { %v1416_v58 = vpop.f32.mrf.mxu1  ;;  %v1452_v6 = vpop.f32.mrf.mxu0  ;;  %v659_v46 = vmul.f32 0.5, %v1403_v49 }
 0x183   : > { %v737_v59 = vmul.f32 0.7978846, %v721_v53  ;;  %v722_v60 = vadd.f32 %v706_v55, %v1397_v47  ;;  %v707_v61 = vmul.f32 %v691_v56, %v1403_v49  ;;  %v692_v62 = vmul.f32 %v676_v57, %v1408_v52 }
 0x184   : > { %v677_v63 = vmul.f32 0.044715, %v1416_v58  ;;  %v1422_v0 = vpop.f32.mrf.mxu1  ;;  %v1468_v45 = vpop.f32.mrf.mxu0  ;;  %v660_v47 = vmul.f32 0.5, %v1408_v52 }
 0x185   : > { %1145 = vtanh.f32 %v737_v59  ;;  %v738_v1 = vmul.f32 0.7978846, %v722_v60  ;;  %v723_v3 = vadd.f32 %v707_v61, %v1403_v49  ;;  %v708_v4 = vmul.f32 %v692_v62, %v1408_v52 }
 0x186   : > { %v693_v5 = vmul.f32 %v677_v63, %v1416_v58  ;;  %v678_v10 = vmul.f32 0.044715, %v1422_v0  ;;  %v1430_v11 = vpop.f32.mrf.mxu1 }
 0x187   : > { %1147 = vtanh.f32 %v738_v1  ;;  %v739_v12 = vmul.f32 0.7978846, %v723_v3  ;;  %v679_v13 = vmul.f32 0.044715, %v1430_v11  ;;  %v724_v14 = vadd.f32 %v708_v4, %v1408_v52 }
 0x188   : > { %v709_v15 = vmul.f32 %v693_v5, %v1416_v58  ;;  %v694_v18 = vmul.f32 %v678_v10, %v1422_v0  ;;  %v1436_v19 = vpop.f32.mrf.mxu1  ;;  %v661_v4 = vmul.f32 0.5, %v1416_v58  ;;  %v1485_v5 = vpop.f32.mrf.mxu0 }
 0x189   : > { %1149 = vtanh.f32 %v739_v12  ;;  %v695_v23 = vmul.f32 %v679_v13, %v1430_v11  ;;  %v680_v24 = vmul.f32 0.044715, %v1436_v19  ;;  %v740_v25 = vmul.f32 0.7978846, %v724_v14 }
 0x18a   : > { %v725_v26 = vadd.f32 %v709_v15, %v1416_v58  ;;  %v710_v27 = vmul.f32 %v694_v18, %v1422_v0  ;;  %v1444_v28 = vpop.f32.mrf.mxu1 }
 0x18b   : > { %v711_v29 = vmul.f32 %v695_v23, %v1430_v11  ;;  %v696_v30 = vmul.f32 %v680_v24, %v1436_v19  ;;  %v681_v31 = vmul.f32 0.044715, %v1444_v28  ;;  %1151 = vtanh.f32 %v740_v25 }
 0x18c   : > { %v741_v32 = vmul.f32 0.7978846, %v725_v26  ;;  %v726_v33 = vadd.f32 %v710_v27, %v1422_v0  ;;  %v1450_v34 = vpop.f32.mrf.mxu1  ;;  %v662_v24 = vmul.f32 0.5, %v1422_v0 }
 0x18d   : > { %v727_v8 = vadd.f32 %v711_v29, %v1430_v11  ;;  %v712_v35 = vmul.f32 %v696_v30, %v1436_v19  ;;  %v697_v36 = vmul.f32 %v681_v31, %v1444_v28  ;;  %v682_v38 = vmul.f32 0.044715, %v1450_v34 }
 0x18e   : > { %1153 = vtanh.f32 %v741_v32  ;;  %v742_v37 = vmul.f32 0.7978846, %v726_v33  ;;  %v1458_v7 = vpop.f32.mrf.mxu1  ;;  %v561_v33 = vpop.f32.mrf.mxu0 }
 0x18f   : > { %v743_v9 = vmul.f32 0.7978846, %v727_v8  ;;  %v728_v39 = vadd.f32 %v712_v35, %v1436_v19  ;;  %v713_v40 = vmul.f32 %v697_v36, %v1444_v28  ;;  %v698_v42 = vmul.f32 %v682_v38, %v1450_v34 }
 0x190   : > { %1155 = vtanh.f32 %v742_v37  ;;  %v683_v17 = vmul.f32 0.044715, %v1458_v7  ;;  %v1465_v16 = vpop.f32.mrf.mxu1 }
 0x191   : > { %1157 = vtanh.f32 %v743_v9  ;;  %v744_v20 = vmul.f32 0.7978846, %v728_v39  ;;  %v729_v48 = vadd.f32 %v713_v40, %v1444_v28  ;;  %v714_v44 = vmul.f32 %v698_v42, %v1450_v34 }
 0x192   : > { %v1146_v50 = vpop.eup %1145  ;;  %v699_v51 = vmul.f32 %v683_v17, %v1458_v7  ;;  %v684_v53 = vmul.f32 0.044715, %v1465_v16  ;;  %v1475_v55 = vpop.f32.mrf.mxu1 }
 0x193   : > { %v769_v56 = vadd.f32 1.0, %v1146_v50  ;;  %1159 = vtanh.f32 %v744_v20  ;;  %v745_v57 = vmul.f32 0.7978846, %v729_v48  ;;  %v730_v60 = vadd.f32 %v714_v44, %v1450_v34  ;;  %v565_v20 = vpop.f32.mrf.mxu0 }
 0x194   : > { %v1148_v59 = vpop.eup %1147  ;;  %v715_v61 = vmul.f32 %v699_v51, %v1458_v7  ;;  %v700_v49 = vmul.f32 %v684_v53, %v1465_v16  ;;  %v685_v62 = vmul.f32 0.044715, %v1475_v55  ;;  %v1482_v63 = vpop.f32.mrf.mxu1 }
 0x195   : > { %v785_v1 = vmul.f32 %v769_v56, %v657_v41  ;;  %v770_v3 = vadd.f32 1.0, %v1148_v59  ;;  %1161 = vtanh.f32 %v745_v57  ;;  %v746_v10 = vmul.f32 0.7978846, %v730_v60 }
 0x196   : > { %v1150_v52 = vpop.eup %1149  ;;  %v731_v12 = vadd.f32 %v715_v61, %v1458_v7  ;;  %v716_v13 = vmul.f32 %v700_v49, %v1465_v16  ;;  %v701_v14 = vmul.f32 %v685_v62, %v1475_v55  ;;  %v1490_v15 = vpop.f32.mrf.mxu1  ;;  %v686_v58 = vmul.f32 0.044715, %v1482_v63 }
 0x197   : > { %v786_v18 = vmul.f32 %v770_v3, %v658_v43  ;;  %v771_v23 = vadd.f32 1.0, %v1150_v52  ;;  %1163 = vtanh.f32 %v746_v10  ;;  %v801_v30 = vmul.f32 %v785_v1, %v1399_v21  ;;  %v567_v3 = vpop.f32.mrf.mxu0 }
 0x198   : > { %v747_v25 = vmul.f32 0.7978846, %v731_v12  ;;  %v732_v26 = vadd.f32 %v716_v13, %v1465_v16  ;;  %v717_v27 = vmul.f32 %v701_v14, %v1475_v55  ;;  %v1152_v29 = vpop.eup %1151  ;;  %v702_v8 = vmul.f32 %v686_v58, %v1482_v63  ;;  %v1506_v37 = vpop.f32.mrf.mxu1 }
 0x199   : > { %v802_v31 = vmul.f32 %v786_v18, %v1411_v54  ;;  %v787_v32 = vmul.f32 %v771_v23, %v659_v46  ;;  %v772_v0 = vadd.f32 1.0, %v1152_v29  ;;  %v663_v54 = vmul.f32 0.5, %v1430_v11 }
 0x19a   : > { %1165 = vtanh.f32 %v747_v25  ;;  %v748_v35 = vmul.f32 0.7978846, %v732_v26  ;;  %v733_v36 = vadd.f32 %v717_v27, %v1475_v55  ;;  %v718_v9 = vmul.f32 %v702_v8, %v1482_v63  ;;  %v569_v27 = vpop.f32.mrf.mxu0 }
 0x19b   : > { %v1154_v21 = vpop.eup %1153  ;;  %v1029_v38 = vpack.c.bf16 %v802_v31, %v801_v30  ;;  %v687_v39 = vmul.f32 0.044715, %v1490_v15  ;;  %v788_v40 = vmul.f32 %v772_v0, %v660_v47  ;;  %v803_v43 = vmul.f32 %v787_v32, %v1424_v2 }
 0x19c   : > { %v773_v41 = vadd.f32 1.0, %v1154_v21  ;;  %1167 = vtanh.f32 %v748_v35  ;;  %v749_v42 = vmul.f32 0.7978846, %v733_v36  ;;  %v734_v48 = vadd.f32 %v718_v9, %v1482_v63 }
 0x19d   : > { %v1156_v17 = vpop.eup %1155  ;;  %865 = vst [vmem:[%s1503_s20] sm:$0xff] %v1029_v38  ;;  %v703_v50 = vmul.f32 %v687_v39, %v1490_v15  ;;  %v688_v46 = vmul.f32 0.044715, %v1506_v37  ;;  %v804_v44 = vmul.f32 %v788_v40, %v1438_v22  ;;  %v664_v49 = vmul.f32 0.5, %v1436_v19 }
 0x19e   : > { %v1158_v11 = vpop.eup %1157  ;;  %v789_v51 = vmul.f32 %v773_v41, %v661_v4  ;;  %v774_v53 = vadd.f32 1.0, %v1156_v17  ;;  %1169 = vtanh.f32 %v749_v42  ;;  %v750_v47 = vmul.f32 0.7978846, %v734_v48 }
 0x19f   : > { %v775_v56 = vadd.f32 1.0, %v1158_v11  ;;  %v719_v57 = vmul.f32 %v703_v50, %v1490_v15  ;;  %v704_v2 = vmul.f32 %v688_v46, %v1506_v37  ;;  %v1030_v60 = vpack.c.bf16 %v804_v44, %v803_v43 }
 0x1a0   : > { %v1160_v59 = vpop.eup %1159  ;;  %v790_v61 = vmul.f32 %v774_v53, %v662_v24  ;;  %1171 = vtanh.f32 %v750_v47  ;;  %v805_v52 = vmul.f32 %v789_v51, %v1452_v6  ;;  %v665_v19 = vmul.f32 0.5, %v1444_v28 }
 0x1a1   : > { %v791_v62 = vmul.f32 %v775_v56, %v663_v54  ;;  %v776_v1 = vadd.f32 1.0, %v1160_v59  ;;  %v735_v22 = vadd.f32 %v719_v57, %v1490_v15  ;;  %866 = vst [vmem:[%s1503_s20 + $0x8] sm:$0xff] %v1030_v60  ;;  %v720_v12 = vmul.f32 %v704_v2, %v1506_v37 }
 0x1a2   : > { %v1162_v4 = vpop.eup %1161  ;;  %v806_v10 = vmul.f32 %v790_v61, %v1468_v45  ;;  %v666_v45 = vmul.f32 0.5, %v1450_v34  ;;  %v667_v28 = vmul.f32 0.5, %v1458_v7  ;;  %v669_v7 = vmul.f32 0.5, %v1475_v55 }
 0x1a3   : > { %v792_v13 = vmul.f32 %v776_v1, %v664_v49  ;;  %v777_v14 = vadd.f32 1.0, %v1162_v4  ;;  %v751_v18 = vmul.f32 0.7978846, %v735_v22  ;;  %v736_v24 = vadd.f32 %v720_v12, %v1506_v37 }
 0x1a4   : > { %v1031_v23 = vpack.c.bf16 %v806_v10, %v805_v52  ;;  %v1164_v58 = vpop.eup %1163  ;;  %v807_v25 = vmul.f32 %v791_v62, %v1485_v5  ;;  %v571_v5 = vpop.f32.mrf.mxu0  ;;  %v670_v50 = vmul.f32 0.5, %v1482_v63  ;;  %v671_v55 = vmul.f32 0.5, %v1490_v15 }
 0x1a5   : > { %v808_v26 = vmul.f32 %v792_v13, %v561_v33  ;;  %1173 = vtanh.f32 %v751_v18  ;;  %v793_v6 = vmul.f32 %v777_v14, %v665_v19  ;;  %v778_v29 = vadd.f32 1.0, %v1164_v58 }
 0x1a6   : > { %867 = vst [vmem:[%s1503_s20 + $0x10] sm:$0xff] %v1031_v23  ;;  %v752_v30 = vmul.f32 0.7978846, %v736_v24  ;;  %v668_v33 = vmul.f32 0.5, %v1465_v16  ;;  %v575_v41 = vpop.f32.mrf.mxu0  ;;  %v672_v60 = vmul.f32 0.5, %v1506_v37 }
 0x1a7   : > { %v1166_v31 = vpop.eup %1165  ;;  %v1032_v32 = vpack.c.bf16 %v808_v26, %v807_v25  ;;  %v794_v8 = vmul.f32 %v778_v29, %v666_v45  ;;  %v809_v36 = vmul.f32 %v793_v6, %v565_v20 }
 0x1a8   : > { %v779_v0 = vadd.f32 1.0, %v1166_v31  ;;  %1175 = vtanh.f32 %v752_v30  ;;  %v577_v46 = vpop.f32.mrf.mxu0 }
 0x1a9   : > { %v1168_v35 = vpop.eup %1167  ;;  %868 = vst [vmem:[%s1503_s20 + $0x18] sm:$0xff] %v1032_v32  ;;  %v810_v21 = vmul.f32 %v794_v8, %v567_v3 }
 0x1aa   : > { %v795_v38 = vmul.f32 %v779_v0, %v667_v28  ;;  %v780_v54 = vadd.f32 1.0, %v1168_v35  ;;  %v579_v2 = vpop.f32.mrf.mxu0 }
 0x1ab   : > { %v1170_v34 = vpop.eup %1169  ;;  %v1033_v9 = vpack.c.bf16 %v810_v21, %v809_v36 }
 0x1ac   : > { %v796_v39 = vmul.f32 %v780_v54, %v668_v33  ;;  %v781_v40 = vadd.f32 1.0, %v1170_v34  ;;  %v811_v17 = vmul.f32 %v795_v38, %v569_v27  ;;  %v581_v49 = vpop.f32.mrf.mxu0 }
 0x1ad   : > { %v1172_v42 = vpop.eup %1171  ;;  %869 = vst [vmem:[%s1503_s20 + $0x20] sm:$0xff] %v1033_v9 }
 0x1ae   : > { %v812_v43 = vmul.f32 %v796_v39, %v571_v5  ;;  %v797_v48 = vmul.f32 %v781_v40, %v669_v7  ;;  %v782_v16 = vadd.f32 1.0, %v1172_v42 }
 0x1b0   : > { %v1034_v20 = vpack.c.bf16 %v812_v43, %v811_v17  ;;  %v798_v11 = vmul.f32 %v782_v16, %v670_v50  ;;  %v813_v51 = vmul.f32 %v797_v48, %v575_v41 }
 0x1b2   : > { %v1174_v44 = vpop.eup %1173  ;;  %870 = vst [vmem:[%s1503_s20 + $0x28] sm:$0xff] %v1034_v20  ;;  %v814_v53 = vmul.f32 %v798_v11, %v577_v46 }
 0x1b3   : > { %v783_v56 = vadd.f32 1.0, %v1174_v44 }
 0x1b4   : > { %v1035_v57 = vpack.c.bf16 %v814_v53, %v813_v51 }
 0x1b5   : > { %v1176_v47 = vpop.eup %1175  ;;  %v799_v59 = vmul.f32 %v783_v56, %v671_v55 }
 0x1b6   : > { %v784_v63 = vadd.f32 1.0, %v1176_v47  ;;  %871 = vst [vmem:[%s1503_s20 + $0x30] sm:$0xff] %v1035_v57 }
 0x1b7   : > { %v815_v62 = vmul.f32 %v799_v59, %v579_v2 }
 0x1b8   : > { %v800_v61 = vmul.f32 %v784_v63, %v672_v60 }
 0x1ba   : > { %v816_v1 = vmul.f32 %v800_v61, %v581_v49 }
 0x1bc   : > { %v1036_v3 = vpack.c.bf16 %v816_v1, %v815_v62 }
 0x1be   : > { %872 = vst [vmem:[%s1503_s20 + $0x38] sm:$0xff] %v1036_v3 }
 0x1bf PF: > { %s13_s14 = sadd.s32 1, %s1199_s14   ;;  %s1554_s12 = smov %s1195_s13 }
 0x1c0   : > { %p10_p5 = scmp.ge.s32.totalorder %s13_s14, 4   ;;  %s1555_s13 = smov %s1557_s15 }
 0x1c2   :  { %12 = sbr.rel (!%p10_p5) target bundleno = 2 (0x2), region = 65 }

// kernel: forward.31
= control target key start
LH: loop header
LB: loop body
LE: loop exit
PB: predicated region body
PF: predicated region fallthrough
CT: control target
= control target key end

     0   :  { %vm237_vm0 = vcmask 130048   ;;  %s481_s1 = inlined_call_operand.vmem [shape: bf16[128,16], index: 1, kind: input, shape index: {}]   ;;  %s482_s0 = inlined_call_operand.vmem [shape: bf16[128,128], index: 0, kind: input, shape index: {}]   ;;  %s483_s2 = inlined_call_operand.vmem [shape: f32[128,16], index: 2, kind: output, shape index: {}]  }
   0x1   :  { %v338_v0 = vld [vmem:[%s481_s1 + $0x38] sm:$0xff]   ;;  %v339_v1 = vld [vmem:[%s481_s1 + $0x30] sm:$0xff]   ;;  %v340_v2 = vld [vmem:[%s481_s1 + $0x28] sm:$0xff]  }
   0x2   :  { %290 = vmatprep.subr.bf16.mxu0 %v338_v0  ;;  %322 = vmatprep.subr.bf16.mxu1 %v338_v0  ;;  %v341_v3 = vld [vmem:[%s481_s1 + $0x20] sm:$0xff]   ;;  %v342_v6 = vld [vmem:[%s481_s1 + $0x18] sm:$0xff]   ;;  %v343_v7 = vld [vmem:[%s481_s1 + $0x10] sm:$0xff]  }
   0x3   :  { %291 = vmatpush3.bf16.msra.mxu0 %v338_v0  ;;  %330 = vmatpush3.bf16.msra.mxu1 %v338_v0  ;;  %v346_v4 = vld [vmem:[%s482_s0] sm:$0xff]   ;;  %v344_v8 = vld [vmem:[%s481_s1 + $0x8] sm:$0xff]   ;;  %v350_v12 = vld [vmem:[%s482_s0 + $0x10] sm:$0xff]  }
   0x4   :  { %292 = vmatprep.subr.bf16.mxu0 %v339_v1  ;;  %323 = vmatprep.subr.bf16.mxu1 %v339_v1  ;;  %v347_v5 = vld [vmem:[%s482_s0 + $0x20] sm:$0xff]   ;;  %v348_v10 = vld [vmem:[%s482_s0 + $0x8] sm:$0xff]   ;;  %v351_v13 = vld [vmem:[%s482_s0 + $0x30] sm:$0xff]  }
   0x5   :  { %306 = vmatprep.mubr.bf16.mxu0 %v346_v4  ;;  %314 = vmatprep.mubr.bf16.mxu1 %v347_v5  ;;  %v345_v9 = vld [vmem:[%s481_s1] sm:$0xff]   ;;  %v349_v11 = vld [vmem:[%s482_s0 + $0x28] sm:$0xff]   ;;  %v352_v14 = vld [vmem:[%s482_s0 + $0x18] sm:$0xff]  }
   0x6   :  { %v353_v15 = vld [vmem:[%s482_s0 + $0x38] sm:$0xff]  }
   0x7   :  { %293 = vmatpush3.bf16.msra.mxu0 %v339_v1  ;;  %331 = vmatpush3.bf16.msra.mxu1 %v339_v1 }
   0x8   :  { %294 = vmatprep.subr.bf16.mxu0 %v340_v2  ;;  %324 = vmatprep.subr.bf16.mxu1 %v340_v2 }
   0xb   :  { %295 = vmatpush3.bf16.msra.mxu0 %v340_v2  ;;  %332 = vmatpush3.bf16.msra.mxu1 %v340_v2 }
   0xc   :  { %296 = vmatprep.subr.bf16.mxu0 %v341_v3  ;;  %325 = vmatprep.subr.bf16.mxu1 %v341_v3 }
   0xf   :  { %297 = vmatpush3.bf16.msra.mxu0 %v341_v3  ;;  %333 = vmatpush3.bf16.msra.mxu1 %v341_v3 }
  0x10   :  { %298 = vmatprep.subr.bf16.mxu0 %v342_v6  ;;  %326 = vmatprep.subr.bf16.mxu1 %v342_v6 }
  0x13   :  { %299 = vmatpush3.bf16.msra.mxu0 %v342_v6  ;;  %334 = vmatpush3.bf16.msra.mxu1 %v342_v6 }
  0x14   :  { %300 = vmatprep.subr.bf16.mxu0 %v343_v7  ;;  %327 = vmatprep.subr.bf16.mxu1 %v343_v7 }
  0x17   :  { %301 = vmatpush3.bf16.msra.mxu0 %v343_v7  ;;  %335 = vmatpush3.bf16.msra.mxu1 %v343_v7 }
  0x18   :  { %302 = vmatprep.subr.bf16.mxu0 %v344_v8  ;;  %328 = vmatprep.subr.bf16.mxu1 %v344_v8 }
  0x1b   :  { %303 = vmatpush3.bf16.msra.mxu0 %v344_v8  ;;  %336 = vmatpush3.bf16.msra.mxu1 %v344_v8 }
  0x1c   :  { %304 = vmatprep.subr.bf16.mxu0 %v345_v9  ;;  %329 = vmatprep.subr.bf16.mxu1 %v345_v9 }
  0x1f   :  { %305 = vmatpush3.bf16.msra.mxu0 %v345_v9  ;;  %337 = vmatpush3.bf16.msra.mxu1 %v345_v9 }
  0x22   :  { %307 = vmatmul.mubr.bf16.vlgmr.msra.gmra.mxu0 %v348_v10  ;;  %315 = vmatmul.mubr.bf16.vlgmr.msra.gmra.mxu1 %v349_v11 }
  0x23   :  { %310 = vmatprep.mubr.bf16.mxu0 %v350_v12  ;;  %318 = vmatprep.mubr.bf16.mxu1 %v351_v13 }
  0x2a   :  { %311 = vmatmul.mubr.bf16.gmra.mxu0 %v352_v14  ;;  %319 = vmatmul.mubr.bf16.gmra.mxu1 %v353_v15 }
  0xe2   :  { %v308_v16 = vpop.f32.mrf.mxu0  ;;  %v316_v17 = vpop.f32.mrf.mxu1 }
  0xe3   :  { %240 = vst.msk [vmem:[%s483_s2 + $0x10] sm:$0xff] %vm237_vm0, %v308_v16  ;;  %248 = vst.msk [vmem:[%s483_s2 + $0x50] sm:$0xff] %vm237_vm0, %v316_v17 }
  0xe4   :  { %v174_v18 = vpop.f32.mrf.mxu0  ;;  %v206_v19 = vpop.f32.mrf.mxu1 }
  0xe5   :  { %238 = vst.msk [vmem:[%s483_s2] sm:$0xff] %vm237_vm0, %v174_v18  ;;  %246 = vst.msk [vmem:[%s483_s2 + $0x40] sm:$0xff] %vm237_vm0, %v206_v19 }
  0xe6   :  { %v309_v20 = vpop.f32.mrf.mxu0  ;;  %v317_v21 = vpop.f32.mrf.mxu1 }
  0xe7   :  { %241 = vst.msk [vmem:[%s483_s2 + $0x18] sm:$0xff] %vm237_vm0, %v309_v20  ;;  %249 = vst.msk [vmem:[%s483_s2 + $0x58] sm:$0xff] %vm237_vm0, %v317_v21 }
  0xe8   :  { %v177_v22 = vpop.f32.mrf.mxu0  ;;  %v209_v23 = vpop.f32.mrf.mxu1 }
  0xe9   :  { %239 = vst.msk [vmem:[%s483_s2 + $0x8] sm:$0xff] %vm237_vm0, %v177_v22  ;;  %247 = vst.msk [vmem:[%s483_s2 + $0x48] sm:$0xff] %vm237_vm0, %v209_v23 }
  0xea   :  { %v312_v24 = vpop.f32.mrf.mxu0  ;;  %v320_v25 = vpop.f32.mrf.mxu1 }
  0xeb   :  { %244 = vst.msk [vmem:[%s483_s2 + $0x30] sm:$0xff] %vm237_vm0, %v312_v24  ;;  %252 = vst.msk [vmem:[%s483_s2 + $0x70] sm:$0xff] %vm237_vm0, %v320_v25 }
  0xec   :  { %v190_v26 = vpop.f32.mrf.mxu0  ;;  %v222_v27 = vpop.f32.mrf.mxu1 }
  0xed   :  { %242 = vst.msk [vmem:[%s483_s2 + $0x20] sm:$0xff] %vm237_vm0, %v190_v26  ;;  %250 = vst.msk [vmem:[%s483_s2 + $0x60] sm:$0xff] %vm237_vm0, %v222_v27 }
  0xee   :  { %v313_v28 = vpop.f32.mrf.mxu0  ;;  %v321_v29 = vpop.f32.mrf.mxu1 }
  0xef   :  { %245 = vst.msk [vmem:[%s483_s2 + $0x38] sm:$0xff] %vm237_vm0, %v313_v28  ;;  %253 = vst.msk [vmem:[%s483_s2 + $0x78] sm:$0xff] %vm237_vm0, %v321_v29 }
  0xf0   :  { %v193_v30 = vpop.f32.mrf.mxu0  ;;  %v225_v31 = vpop.f32.mrf.mxu1 }
  0xf1   :  { %243 = vst.msk [vmem:[%s483_s2 + $0x28] sm:$0xff] %vm237_vm0, %v193_v30  ;;  %251 = vst.msk [vmem:[%s483_s2 + $0x68] sm:$0xff] %vm237_vm0, %v225_v31 }

</bundles_post_ra>
